<compile_context>
chip_gen: v6e
topology: v6e:2x2x1
jax: 0.10.0
libtpu: 0.0.40
codegen_flags: <defaults>
</compile_context>

<pallas_src>
import functools
import math

import jax
import jax.numpy as jnp
from jax.experimental import pallas as pl
from jax.experimental.pallas import tpu as pltpu

COMPUTE_DTYPE = jnp.bfloat16        # MXU operand dtype (accumulation stays f32)

_CFG = None


def _chip_config():
    """Per-chip tile caps + scoped VMEM budget (v5e/v6e: 128 MiB; v7x: 64 MiB)."""
    global _CFG
    if _CFG is None:
        try:
            vmem = int(pltpu.get_tpu_info().vmem_capacity_bytes)
        except Exception:
            vmem = 64 * 1024 * 1024                       # conservative fallback
        if vmem >= 96 * 1024 * 1024:                      # v5e / v6e (128 MiB)
            _CFG = dict(vmem_limit=64 * 1024 * 1024, max_m=1024, max_n=512, max_k=512)
        else:                                             # v7x (64 MiB)
            _CFG = dict(vmem_limit=32 * 1024 * 1024, max_m=512, max_n=256, max_k=512)
    return _CFG


# -----------------------------------------------------------------------------
# Tile-size helpers (respect the (8, 128) block constraint: a block dim must be
# a multiple of 8 / 128 on the last two axes, or equal the full array extent).
# -----------------------------------------------------------------------------
def _pick_tile(dim, cap, align):
    """Largest multiple of `align` <= cap dividing dim exactly, else the full dim."""
    if dim <= cap:
        return dim
    t = (cap // align) * align
    while t >= align:
        if dim % t == 0:
            return t
        t -= align
    return dim


def _pick_lane_tile(dim, cap):
    """Tile for a lane (last) dim: prefer 256-multiples (256-wide MXU), then 128."""
    if dim <= cap:
        return dim
    for align in (256, 128):
        if dim % align == 0 and cap >= align:
            t = (cap // align) * align
            while t >= align:
                if dim % t == 0:
                    return t
                t -= align
    return dim


def _pick_groups_per_block(g, cig, cog):
    """Groups per grid step so the channel blocks are lane-dense (or full extent)."""
    if g * max(cig, cog) <= 512:
        return g                                   # small widths: all groups at once
    for cand in range(g, 0, -1):
        if g % cand:
            continue
        cb_in, cb_out = cand * cig, cand * cog
        if cb_in % 128 == 0 and cb_out % 128 == 0 and max(cb_in, cb_out) <= 512:
            return cand
    return g                                       # fallback: full channel extent


# -----------------------------------------------------------------------------
# Pallas kernels
# -----------------------------------------------------------------------------
def _mm_bn_act_kernel(x_ref, w_ref, scale_ref, bias_ref, o_ref, acc_ref, *, relu):
    """Tiled matmul + folded-BN scale/bias + optional ReLU (K axis = grid axis 2)."""
    @pl.when(pl.program_id(2) == 0)
    def _():
        acc_ref[...] = jnp.zeros_like(acc_ref)

    acc_ref[...] += jnp.dot(x_ref[...], w_ref[...],
                            preferred_element_type=jnp.float32)

    @pl.when(pl.program_id(2) == pl.num_programs(2) - 1)
    def _():
        y = acc_ref[...] * scale_ref[...] + bias_ref[...]
        if relu:
            y = jnp.maximum(y, 0.0)
        o_ref[...] = y.astype(o_ref.dtype)


def _grouped_conv3x3_kernel(x_ref, w_ref, scale_ref, bias_ref, o_ref, pool_ref, *,
                            stride, ho, wo, cig, cog, gpb, inv_hw):
    """One (group-block, sample) step of the fused 3x3 grouped conv + BN + ReLU,
    with the SE global-average pool fused as a second output.

    x_ref:      (s*s, 1, Hq, Wq, gpb*cig)   stride-phase padded input (channel block)
    w_ref:      (gpb, 9*cig, cog)           tap-concatenated weights (long K)
    scale/bias: (1, 1, gpb*cog)             folded BN
    o_ref:      (1, Ho*Wo, gpb*cog)         lane-dense main output
    pool_ref:   (1, 1, gpb*cog)             per-(sample, channel) spatial mean (SE)
    """
    outs = []
    for g in range(gpb):
        taps = []
        for kh in range(3):
            for kw in range(3):
                p = (kh % stride) * stride + (kw % stride)
                r0, c0 = kh // stride, kw // stride
                tap = x_ref[p, 0, r0:r0 + ho, c0:c0 + wo,
                            g * cig:(g + 1) * cig]            # (Ho, Wo, cig)
                taps.append(tap.reshape(ho * wo, cig))
        lhs = jnp.concatenate(taps, axis=-1)                  # (Ho*Wo, 9*cig)
        outs.append(jnp.dot(lhs, w_ref[g],                    # one long-K MXU matmul
                            preferred_element_type=jnp.float32))
    y = outs[0] if gpb == 1 else jnp.concatenate(outs, axis=-1)   # (Ho*Wo, gpb*cog)
    y = y * scale_ref[0] + bias_ref[0]
    y = jnp.maximum(y, 0.0)
    o_ref[0] = y.astype(o_ref.dtype)
    pool_ref[0] = jnp.sum(y, axis=0, keepdims=True) * inv_hw      # fused SE pooling


def _convc_fused_kernel(x_ref, s_ref, w_ref, scale_ref, bias_ref, sc_ref,
                        o_ref, acc_ref):
    """Final 1x1 conv with SE scaling (bf16) + folded BN + residual add + ReLU."""
    @pl.when(pl.program_id(3) == 0)
    def _():
        acc_ref[...] = jnp.zeros_like(acc_ref)

    xs = x_ref[0] * s_ref[0]                                  # bf16 * bf16 SE scale
    acc_ref[...] += jnp.dot(xs, w_ref[...], preferred_element_type=jnp.float32)

    @pl.when(pl.program_id(3) == pl.num_programs(3) - 1)
    def _():
        y = acc_ref[...] * scale_ref[...] + bias_ref[...] + sc_ref[0].astype(jnp.float32)
        o_ref[0] = jnp.maximum(y, 0.0).astype(o_ref.dtype)


# -----------------------------------------------------------------------------
# Pallas wrappers
# -----------------------------------------------------------------------------
def fused_matmul_bn_act(x2d, w, scale, bias, relu):
    """x2d: (M, K) x w: (K, Cout) + BN(scale,bias) [+ ReLU] -> (M, Cout)."""
    cfg = _chip_config()
    m, k = x2d.shape
    _, cout = w.shape
    tm = _pick_tile(m, cfg["max_m"], 8)
    m_pad = m
    if tm > cfg["max_m"]:
        # No aligned divisor <= cap: pad M (zero rows are discarded afterwards)
        # instead of a single giant block that could overflow v7x VMEM.
        tm = cfg["max_m"]
        m_pad = ((m + tm - 1) // tm) * tm
        x2d = jnp.pad(x2d, ((0, m_pad - m), (0, 0)))
    tk = _pick_lane_tile(k, cfg["max_k"])
    tn = _pick_lane_tile(cout, cfg["max_n"])
    kern = functools.partial(_mm_bn_act_kernel, relu=relu)
    out = pl.pallas_call(
        kern,
        out_shape=jax.ShapeDtypeStruct((m_pad, cout), x2d.dtype),
        grid_spec=pltpu.PrefetchScalarGridSpec(
            num_scalar_prefetch=0,
            grid=(m_pad // tm, cout // tn, k // tk),
            in_specs=[
                pl.BlockSpec((tm, tk), lambda i, j, kk: (i, kk)),
                pl.BlockSpec((tk, tn), lambda i, j, kk: (kk, j)),
                pl.BlockSpec((1, tn), lambda i, j, kk: (0, j)),
                pl.BlockSpec((1, tn), lambda i, j, kk: (0, j)),
            ],
            out_specs=pl.BlockSpec((tm, tn), lambda i, j, kk: (i, j)),
            scratch_shapes=[pltpu.VMEM((tm, tn), jnp.float32)],
        ),
        compiler_params=pltpu.CompilerParams(
            dimension_semantics=("parallel", "parallel", "arbitrary"),
            vmem_limit_bytes=cfg["vmem_limit"]),
    )(x2d, w, scale, bias)
    return out[:m] if m_pad != m else out


def grouped_conv3x3_bn_relu_pool(a_nhwc, wg, scale, bias, stride):
    """Grouped 3x3 conv (pad=1, given stride) + BN + ReLU, fused SE avg-pool.

    a_nhwc: (N, H, W, G*cig); wg: (G, 9*cig, cog); scale/bias: (1, G*cog).
    Returns y3 (N, Ho*Wo, G*cog) bf16, pooled (N, 1, G*cog) f32, ho, wo.
    """
    cfg = _chip_config()
    n, h, w, _ = a_nhwc.shape
    g, k9, cog = wg.shape
    cig = k9 // 9
    c_out = g * cog
    ho = (h - 1) // stride + 1
    wo = (w - 1) // stride + 1

    # Pad + stride-phase split (groups stay on the channel axis: no transpose).
    if stride == 1:
        xp = jnp.pad(a_nhwc, ((0, 0), (1, 1), (1, 1), (0, 0)))
        phases = xp[None]                                     # free expand_dims
    else:
        pad_h = (-(h + 2)) % stride
        pad_w = (-(w + 2)) % stride
        xp = jnp.pad(a_nhwc, ((0, 0), (1, 1 + pad_h), (1, 1 + pad_w), (0, 0)))
        phases = jnp.stack([xp[:, ph::stride, pw::stride, :]
                            for ph in range(stride) for pw in range(stride)],
                           axis=0)                            # (s*s, N, Hq, Wq, C)
    ss, _, hq, wq, _ = phases.shape

    gpb = _pick_groups_per_block(g, cig, cog)                 # lane-dense channel block
    ngb = g // gpb

    kern = functools.partial(_grouped_conv3x3_kernel, stride=stride, ho=ho, wo=wo,
                             cig=cig, cog=cog, gpb=gpb, inv_hw=1.0 / (ho * wo))
    y3, pooled = pl.pallas_call(
        kern,
        out_shape=(jax.ShapeDtypeStruct((n, ho * wo, c_out), a_nhwc.dtype),
                   jax.ShapeDtypeStruct((n, 1, c_out), jnp.float32)),
        grid_spec=pltpu.PrefetchScalarGridSpec(
            num_scalar_prefetch=0,
            grid=(ngb, n),          # groups outer -> weights stay resident over samples
            in_specs=[
                pl.BlockSpec((ss, 1, hq, wq, gpb * cig),
                             lambda gb, bn: (0, bn, 0, 0, gb)),
                pl.BlockSpec((gpb, k9, cog), lambda gb, bn: (gb, 0, 0)),
                pl.BlockSpec((1, 1, gpb * cog), lambda gb, bn: (0, 0, gb)),
                pl.BlockSpec((1, 1, gpb * cog), lambda gb, bn: (0, 0, gb)),
            ],
            out_specs=(
                pl.BlockSpec((1, ho * wo, gpb * cog), lambda gb, bn: (bn, 0, gb)),
                pl.BlockSpec((1, 1, gpb * cog), lambda gb, bn: (bn, 0, gb)),
            ),
        ),
        compiler_params=pltpu.CompilerParams(
            dimension_semantics=("parallel", "parallel"),
            vmem_limit_bytes=cfg["vmem_limit"]),
    )(phases, wg, scale.reshape(1, 1, c_out), bias.reshape(1, 1, c_out))
    return y3, pooled, ho, wo


def conv1x1_se_residual(x3, se_s, w, scale, bias, shortcut3):
    """Final 1x1 conv: out = ReLU(BN((x*se_s) @ w) + shortcut).  Tiled over cout."""
    cfg = _chip_config()
    n, hw, k = x3.shape
    cout = w.shape[1]
    thw = _pick_tile(hw, cfg["max_m"], 8)
    tk = _pick_lane_tile(k, cfg["max_k"])
    tn = _pick_lane_tile(cout, cfg["max_n"])
    return pl.pallas_call(
        _convc_fused_kernel,
        out_shape=jax.ShapeDtypeStruct((n, hw, cout), x3.dtype),
        grid_spec=pltpu.PrefetchScalarGridSpec(
            num_scalar_prefetch=0,
            grid=(n, hw // thw, cout // tn, k // tk),
            in_specs=[
                pl.BlockSpec((1, thw, tk), lambda bn, i, j, kk: (bn, i, kk)),
                pl.BlockSpec((1, 1, tk), lambda bn, i, j, kk: (bn, 0, kk)),
                pl.BlockSpec((tk, tn), lambda bn, i, j, kk: (kk, j)),
                pl.BlockSpec((1, tn), lambda bn, i, j, kk: (0, j)),
                pl.BlockSpec((1, tn), lambda bn, i, j, kk: (0, j)),
                pl.BlockSpec((1, thw, tn), lambda bn, i, j, kk: (bn, i, j)),
            ],
            out_specs=pl.BlockSpec((1, thw, tn), lambda bn, i, j, kk: (bn, i, j)),
            scratch_shapes=[pltpu.VMEM((thw, tn), jnp.float32)],
        ),
        compiler_params=pltpu.CompilerParams(
            dimension_semantics=("parallel", "parallel", "parallel", "arbitrary"),
            vmem_limit_bytes=cfg["vmem_limit"]),
    )(x3, se_s, w, scale, bias, shortcut3)


# -----------------------------------------------------------------------------
# Parameter init (eval-mode BN folded into per-channel scale/bias)
# -----------------------------------------------------------------------------
def init_bn(key, c, eps=1e-5):
    k1, k2, k3, k4 = jax.random.split(key, 4)
    gamma = jax.random.uniform(k1, (c,), minval=0.5, maxval=1.5)
    beta = 0.1 * jax.random.normal(k2, (c,))
    mean = 0.1 * jax.random.normal(k3, (c,))
    var = jax.random.uniform(k4, (c,), minval=0.5, maxval=1.5)
    scale = gamma / jnp.sqrt(var + eps)
    bias = beta - mean * scale
    return (scale.reshape(1, c).astype(jnp.float32),
            bias.reshape(1, c).astype(jnp.float32))


def conv_w(key, cin, cout, dtype=COMPUTE_DTYPE):
    return (jax.random.normal(key, (cin, cout)) / math.sqrt(cin)).astype(dtype)


def init_block_params(key, w_in, w_out, stride, bm, gw, se_r):
    w_b = int(round(w_out * bm))
    num_gs = w_b // gw
    cig = w_b // num_gs
    keys = jax.random.split(key, 12)
    params = {}
    if (w_in != w_out) or (stride != 1):
        s, b = init_bn(keys[1], w_out)
        params["proj"] = dict(w=conv_w(keys[0], w_in, w_out), scale=s, bias=b)
    else:
        params["proj"] = None
    s, b = init_bn(keys[3], w_b)
    params["a"] = dict(w=conv_w(keys[2], w_in, w_b), scale=s, bias=b)
    # Grouped 3x3 weights, tap-concatenated K layout: (G, 9*cig, cog).
    wg = (jax.random.normal(keys[4], (num_gs, 3, 3, cig, cig))
          / math.sqrt(9 * cig)).reshape(num_gs, 9 * cig, cig).astype(COMPUTE_DTYPE)
    s, b = init_bn(keys[5], w_b)
    params["b"] = dict(w=wg, scale=s, bias=b)
    if se_r:
        w_se = int(round(w_in * se_r))
        params["se"] = dict(
            w1=(jax.random.normal(keys[6], (w_b, w_se)) / math.sqrt(w_b)).astype(jnp.float32),
            b1=(0.01 * jax.random.normal(keys[7], (1, w_se))).astype(jnp.float32),
            w2=(jax.random.normal(keys[8], (w_se, w_b)) / math.sqrt(w_se)).astype(jnp.float32),
            b2=(0.01 * jax.random.normal(keys[9], (1, w_b))).astype(jnp.float32))
    else:
        params["se"] = None
    s, b = init_bn(keys[11], w_out)
    params["c"] = dict(w=conv_w(keys[10], w_b, w_out), scale=s, bias=b)
    return params


# -----------------------------------------------------------------------------
# Block / stage forward (NHWC internally, bf16 activations)
# -----------------------------------------------------------------------------
def res_bottleneck_block(x, params, stride):
    n, h, w, cin = x.shape
    w_b = params["a"]["w"].shape[1]
    w_out = params["c"]["w"].shape[1]
    # ---- a: 1x1 conv + BN + ReLU ----
    a = fused_matmul_bn_act(x.reshape(n * h * w, cin), params["a"]["w"],
                            params["a"]["scale"], params["a"]["bias"], relu=True)
    a = a.reshape(n, h, w, w_b)
    # ---- b: fused 3x3 grouped conv + BN + ReLU + SE avg-pool ----
    b3, pooled, ho, wo = grouped_conv3x3_bn_relu_pool(
        a, params["b"]["w"], params["b"]["scale"], params["b"]["bias"], stride)
    hwo = ho * wo
    # ---- shortcut ----
    if params["proj"] is not None:
        xs = x[:, ::stride, ::stride, :].reshape(n * hwo, cin)
        shortcut = fused_matmul_bn_act(xs, params["proj"]["w"],
                                       params["proj"]["scale"],
                                       params["proj"]["bias"], relu=False)
        shortcut = shortcut.reshape(n, hwo, w_out)
    else:
        shortcut = x.reshape(n, hwo, w_out)
    # ---- SE: tiny FCs on the Pallas-pooled vector (per review: plain XLA) ----
    if params["se"] is not None:
        p = params["se"]
        hse = jnp.maximum(jnp.einsum("nxc,ce->nxe", pooled, p["w1"]) + p["b1"], 0.0)
        se_s = jax.nn.sigmoid(jnp.einsum("nxe,ec->nxc", hse, p["w2"]) + p["b2"])
        se_s = se_s.astype(COMPUTE_DTYPE)
    else:
        se_s = jnp.ones((n, 1, w_b), COMPUTE_DTYPE)
    # ---- c: 1x1 conv * SE + BN + residual add + ReLU (single fused kernel) ----
    out = conv1x1_se_residual(b3, se_s, params["c"]["w"], params["c"]["scale"],
                              params["c"]["bias"], shortcut)
    return out.reshape(n, ho, wo, w_out)


class AnyStagePallas:
    """AnyNet stage: d ResBottleneckBlocks with the same output width."""

    def __init__(self, key, w_in, w_out, stride, d, bm, gw, se_r):
        self.strides = []
        self.blocks = []
        keys = jax.random.split(key, d)
        for i in range(d):
            b_stride = stride if i == 0 else 1
            b_w_in = w_in if i == 0 else w_out
            self.strides.append(b_stride)
            self.blocks.append(
                init_block_params(keys[i], b_w_in, w_out, b_stride, bm, gw, se_r))

    def __call__(self, x_nchw):
        x = jnp.transpose(x_nchw, (0, 2, 3, 1)).astype(COMPUTE_DTYPE)  # NCHW->NHWC
        for p, s in zip(self.blocks, self.strides):
            x = res_bottleneck_block(x, p, s)
        return jnp.transpose(x, (0, 3, 1, 2)).astype(x_nchw.dtype)     # NHWC->NCHW


# -----------------------------------------------------------------------------
if __name__ == "__main__":
    key = jax.random.PRNGKey(0)
    k_x, k_p = jax.random.split(key)

    # Small RegNet-like stage: w_in=8, w_out=16, stride=2, d=2, bm=1.0,
    # group width gw=8 (-> 2 groups), se_r=0.25.
    N, W_IN, H, W = 2, 8, 16, 16
    W_OUT, STRIDE, D, BM, GW, SE_R = 16, 2, 2, 1.0, 8, 0.25

    x = jax.random.normal(k_x, (N, W_IN, H, W), dtype=jnp.float32)  # NCHW

    stage = AnyStagePallas(k_p, W_IN, W_OUT, STRIDE, D, BM, GW, SE_R)
    fwd = jax.jit(stage.__call__)
    out = fwd(x)
    jax.block_until_ready(out)

    assert out.shape == (N, W_OUT, H // STRIDE, W // STRIDE), out.shape
    assert jnp.all(jnp.isfinite(out))
    print("KERNEL_OK")
</pallas_src>

<mosaic_0001>
module attributes {stable_mosaic.version = 11 : i64} {
  func.func @_mm_bn_act_kernel(%arg0: i32, %arg1: i32, %arg2: i32, %arg3: memref<128x8xbf16, #tpu.memory_space<vmem>>, %arg4: memref<8x16xbf16, #tpu.memory_space<vmem>>, %arg5: memref<1x16xf32, #tpu.memory_space<vmem>>, %arg6: memref<1x16xf32, #tpu.memory_space<vmem>>, %arg7: memref<128x16xbf16, #tpu.memory_space<vmem>>, %arg8: memref<128x16xf32, #tpu.memory_space<vmem>>) attributes {dimension_semantics = [#tpu.dimension_semantics<parallel>, #tpu.dimension_semantics<parallel>, #tpu.dimension_semantics<arbitrary>], iteration_bounds = array<i64: 1, 1, 1>, scalar_prefetch = 0 : i64, scratch_operands = 1 : i64, tpu.core_type = #tpu.core_type<tc>, window_params = [{transform_indices = @transform_0, window_bounds = array<i64: 128, 8>}, {transform_indices = @transform_1, window_bounds = array<i64: 8, 16>}, {transform_indices = @transform_2, window_bounds = array<i64: 1, 16>}, {transform_indices = @transform_3, window_bounds = array<i64: 1, 16>}, {transform_indices = @transform_4, window_bounds = array<i64: 128, 16>}]} {
    %c0_i32 = arith.constant 0 : i32
    %0 = arith.cmpi eq, %arg2, %c0_i32 : i32
    %1 = arith.extui %0 : i1 to i32
    %c0_i32_0 = arith.constant 0 : i32
    %2 = arith.cmpi ne, %1, %c0_i32_0 : i32
    scf.if %2 {
      %cst_10 = arith.constant 0.000000e+00 : f32
      %12 = vector.broadcast %cst_10 : f32 to vector<128x16xf32>
      %c0_11 = arith.constant 0 : index
      %c0_12 = arith.constant 0 : index
      %13 = vector.load %arg8[%c0_11, %c0_12] : memref<128x16xf32, #tpu.memory_space<vmem>>, vector<128x16xf32>
      tpu.vector_store %arg8[%c0_11, %c0_12], %12 {strides = array<i32>} : memref<128x16xf32, #tpu.memory_space<vmem>>, vector<128x16xf32>,
    } else {
    }
    %c0 = arith.constant 0 : index
    %c0_1 = arith.constant 0 : index
    %3 = vector.load %arg8[%c0, %c0_1] : memref<128x16xf32, #tpu.memory_space<vmem>>, vector<128x16xf32>
    %c0_2 = arith.constant 0 : index
    %c0_3 = arith.constant 0 : index
    %4 = vector.load %arg3[%c0_2, %c0_3] : memref<128x8xbf16, #tpu.memory_space<vmem>>, vector<128x8xbf16>
    %c0_4 = arith.constant 0 : index
    %c0_5 = arith.constant 0 : index
    %5 = vector.load %arg4[%c0_4, %c0_5] : memref<8x16xbf16, #tpu.memory_space<vmem>>, vector<8x16xbf16>
    %cst = arith.constant dense<0.000000e+00> : vector<128x16xf32>
    %6 = tpu.matmul %4, %5, %cst {dimension_numbers = #tpu.dot_dimension_numbers<[1], [0], [0], [1], [0, 0, 1, 1], [], []>} : vector<128x8xbf16>, vector<8x16xbf16>, vector<128x16xf32> -> vector<128x16xf32>
    %7 = arith.addf %3, %6 : vector<128x16xf32>
    %c0_6 = arith.constant 0 : index
    %c0_7 = arith.constant 0 : index
    %8 = vector.load %arg8[%c0_6, %c0_7] : memref<128x16xf32, #tpu.memory_space<vmem>>, vector<128x16xf32>
    tpu.vector_store %arg8[%c0_6, %c0_7], %7 {strides = array<i32>} : memref<128x16xf32, #tpu.memory_space<vmem>>, vector<128x16xf32>,
    %c0_i32_8 = arith.constant 0 : i32
    %9 = arith.cmpi eq, %arg2, %c0_i32_8 : i32
    %10 = arith.extui %9 : i1 to i32
    %c0_i32_9 = arith.constant 0 : i32
    %11 = arith.cmpi ne, %10, %c0_i32_9 : i32
    scf.if %11 {
      %c0_10 = arith.constant 0 : index
      %c0_11 = arith.constant 0 : index
      %12 = vector.load %arg8[%c0_10, %c0_11] : memref<128x16xf32, #tpu.memory_space<vmem>>, vector<128x16xf32>
      %c0_12 = arith.constant 0 : index
      %c0_13 = arith.constant 0 : index
      %13 = vector.load %arg5[%c0_12, %c0_13] : memref<1x16xf32, #tpu.memory_space<vmem>>, vector<1x16xf32>
      %14 = vector.broadcast %13 : vector<1x16xf32> to vector<128x16xf32>
      %15 = arith.mulf %12, %14 : vector<128x16xf32>
      %c0_14 = arith.constant 0 : index
      %c0_15 = arith.constant 0 : index
      %16 = vector.load %arg6[%c0_14, %c0_15] : memref<1x16xf32, #tpu.memory_space<vmem>>, vector<1x16xf32>
      %17 = vector.broadcast %16 : vector<1x16xf32> to vector<128x16xf32>
      %18 = arith.addf %15, %17 : vector<128x16xf32>
      %19 = arith.truncf %18 : vector<128x16xf32> to vector<128x16xbf16>
      %c0_16 = arith.constant 0 : index
      %c0_17 = arith.constant 0 : index
      %20 = vector.load %arg7[%c0_16, %c0_17] : memref<128x16xbf16, #tpu.memory_space<vmem>>, vector<128x16xbf16>
      tpu.vector_store %arg7[%c0_16, %c0_17], %19 {strides = array<i32>} : memref<128x16xbf16, #tpu.memory_space<vmem>>, vector<128x16xbf16>,
    } else {
    }
    return
  }
  func.func @transform_0(%arg0: i32, %arg1: i32, %arg2: i32) -> (i32, i32) {
    %c0_i32 = arith.constant 0 : i32
    return %arg0, %arg2 : i32, i32
  }
  func.func @transform_1(%arg0: i32, %arg1: i32, %arg2: i32) -> (i32, i32) {
    %c0_i32 = arith.constant 0 : i32
    return %arg2, %arg1 : i32, i32
  }
  func.func @transform_2(%arg0: i32, %arg1: i32, %arg2: i32) -> (i32, i32) {
    %c0_i32 = arith.constant 0 : i32
    %c0_i32_0 = arith.constant 0 : i32
    return %c0_i32, %arg1 : i32, i32
  }
  func.func @transform_3(%arg0: i32, %arg1: i32, %arg2: i32) -> (i32, i32) {
    %c0_i32 = arith.constant 0 : i32
    %c0_i32_0 = arith.constant 0 : i32
    return %c0_i32, %arg1 : i32, i32
  }
  func.func @transform_4(%arg0: i32, %arg1: i32, %arg2: i32) -> (i32, i32) {
    %c0_i32 = arith.constant 0 : i32
    return %arg0, %arg1 : i32, i32
  }
}

module attributes {stable_mosaic.version = 11 : i64} {
  func.func @_mm_bn_act_kernel(%arg0: i32, %arg1: i32, %arg2: i32, %arg3: memref<512x8xbf16, #tpu.memory_space<vmem>>, %arg4: memref<8x16xbf16, #tpu.memory_space<vmem>>, %arg5: memref<1x16xf32, #tpu.memory_space<vmem>>, %arg6: memref<1x16xf32, #tpu.memory_space<vmem>>, %arg7: memref<512x16xbf16, #tpu.memory_space<vmem>>, %arg8: memref<512x16xf32, #tpu.memory_space<vmem>>) attributes {dimension_semantics = [#tpu.dimension_semantics<parallel>, #tpu.dimension_semantics<parallel>, #tpu.dimension_semantics<arbitrary>], iteration_bounds = array<i64: 1, 1, 1>, scalar_prefetch = 0 : i64, scratch_operands = 1 : i64, tpu.core_type = #tpu.core_type<tc>, window_params = [{transform_indices = @transform_0, window_bounds = array<i64: 512, 8>}, {transform_indices = @transform_1, window_bounds = array<i64: 8, 16>}, {transform_indices = @transform_2, window_bounds = array<i64: 1, 16>}, {transform_indices = @transform_3, window_bounds = array<i64: 1, 16>}, {transform_indices = @transform_4, window_bounds = array<i64: 512, 16>}]} {
    %c0_i32 = arith.constant 0 : i32
    %0 = arith.cmpi eq, %arg2, %c0_i32 : i32
    %1 = arith.extui %0 : i1 to i32
    %c0_i32_0 = arith.constant 0 : i32
    %2 = arith.cmpi ne, %1, %c0_i32_0 : i32
    scf.if %2 {
      %cst_10 = arith.constant 0.000000e+00 : f32
      %12 = vector.broadcast %cst_10 : f32 to vector<512x16xf32>
      %c0_11 = arith.constant 0 : index
      %c0_12 = arith.constant 0 : index
      %13 = vector.load %arg8[%c0_11, %c0_12] : memref<512x16xf32, #tpu.memory_space<vmem>>, vector<512x16xf32>
      tpu.vector_store %arg8[%c0_11, %c0_12], %12 {strides = array<i32>} : memref<512x16xf32, #tpu.memory_space<vmem>>, vector<512x16xf32>,
    } else {
    }
    %c0 = arith.constant 0 : index
    %c0_1 = arith.constant 0 : index
    %3 = vector.load %arg8[%c0, %c0_1] : memref<512x16xf32, #tpu.memory_space<vmem>>, vector<512x16xf32>
    %c0_2 = arith.constant 0 : index
    %c0_3 = arith.constant 0 : index
    %4 = vector.load %arg3[%c0_2, %c0_3] : memref<512x8xbf16, #tpu.memory_space<vmem>>, vector<512x8xbf16>
    %c0_4 = arith.constant 0 : index
    %c0_5 = arith.constant 0 : index
    %5 = vector.load %arg4[%c0_4, %c0_5] : memref<8x16xbf16, #tpu.memory_space<vmem>>, vector<8x16xbf16>
    %cst = arith.constant dense<0.000000e+00> : vector<512x16xf32>
    %6 = tpu.matmul %4, %5, %cst {dimension_numbers = #tpu.dot_dimension_numbers<[1], [0], [0], [1], [0, 0, 1, 1], [], []>} : vector<512x8xbf16>, vector<8x16xbf16>, vector<512x16xf32> -> vector<512x16xf32>
    %7 = arith.addf %3, %6 : vector<512x16xf32>
    %c0_6 = arith.constant 0 : index
    %c0_7 = arith.constant 0 : index
    %8 = vector.load %arg8[%c0_6, %c0_7] : memref<512x16xf32, #tpu.memory_space<vmem>>, vector<512x16xf32>
    tpu.vector_store %arg8[%c0_6, %c0_7], %7 {strides = array<i32>} : memref<512x16xf32, #tpu.memory_space<vmem>>, vector<512x16xf32>,
    %c0_i32_8 = arith.constant 0 : i32
    %9 = arith.cmpi eq, %arg2, %c0_i32_8 : i32
    %10 = arith.extui %9 : i1 to i32
    %c0_i32_9 = arith.constant 0 : i32
    %11 = arith.cmpi ne, %10, %c0_i32_9 : i32
    scf.if %11 {
      %c0_10 = arith.constant 0 : index
      %c0_11 = arith.constant 0 : index
      %12 = vector.load %arg8[%c0_10, %c0_11] : memref<512x16xf32, #tpu.memory_space<vmem>>, vector<512x16xf32>
      %c0_12 = arith.constant 0 : index
      %c0_13 = arith.constant 0 : index
      %13 = vector.load %arg5[%c0_12, %c0_13] : memref<1x16xf32, #tpu.memory_space<vmem>>, vector<1x16xf32>
      %14 = vector.broadcast %13 : vector<1x16xf32> to vector<512x16xf32>
      %15 = arith.mulf %12, %14 : vector<512x16xf32>
      %c0_14 = arith.constant 0 : index
      %c0_15 = arith.constant 0 : index
      %16 = vector.load %arg6[%c0_14, %c0_15] : memref<1x16xf32, #tpu.memory_space<vmem>>, vector<1x16xf32>
      %17 = vector.broadcast %16 : vector<1x16xf32> to vector<512x16xf32>
      %18 = arith.addf %15, %17 : vector<512x16xf32>
      %cst_16 = arith.constant 0.000000e+00 : f32
      %19 = vector.broadcast %cst_16 : f32 to vector<512x16xf32>
      %20 = arith.maximumf %18, %19 : vector<512x16xf32>
      %21 = arith.truncf %20 : vector<512x16xf32> to vector<512x16xbf16>
      %c0_17 = arith.constant 0 : index
      %c0_18 = arith.constant 0 : index
      %22 = vector.load %arg7[%c0_17, %c0_18] : memref<512x16xbf16, #tpu.memory_space<vmem>>, vector<512x16xbf16>
      tpu.vector_store %arg7[%c0_17, %c0_18], %21 {strides = array<i32>} : memref<512x16xbf16, #tpu.memory_space<vmem>>, vector<512x16xbf16>,
    } else {
    }
    return
  }
  func.func @transform_0(%arg0: i32, %arg1: i32, %arg2: i32) -> (i32, i32) {
    %c0_i32 = arith.constant 0 : i32
    return %arg0, %arg2 : i32, i32
  }
  func.func @transform_1(%arg0: i32, %arg1: i32, %arg2: i32) -> (i32, i32) {
    %c0_i32 = arith.constant 0 : i32
    return %arg2, %arg1 : i32, i32
  }
  func.func @transform_2(%arg0: i32, %arg1: i32, %arg2: i32) -> (i32, i32) {
    %c0_i32 = arith.constant 0 : i32
    %c0_i32_0 = arith.constant 0 : i32
    return %c0_i32, %arg1 : i32, i32
  }
  func.func @transform_3(%arg0: i32, %arg1: i32, %arg2: i32) -> (i32, i32) {
    %c0_i32 = arith.constant 0 : i32
    %c0_i32_0 = arith.constant 0 : i32
    return %c0_i32, %arg1 : i32, i32
  }
  func.func @transform_4(%arg0: i32, %arg1: i32, %arg2: i32) -> (i32, i32) {
    %c0_i32 = arith.constant 0 : i32
    return %arg0, %arg1 : i32, i32
  }
}

module attributes {stable_mosaic.version = 11 : i64} {
  func.func @_grouped_conv3x3_kernel(%arg0: i32, %arg1: i32, %arg2: memref<4x1x9x9x16xbf16, #tpu.memory_space<vmem>>, %arg3: memref<2x72x8xbf16, #tpu.memory_space<vmem>>, %arg4: memref<1x1x16xf32, #tpu.memory_space<vmem>>, %arg5: memref<1x1x16xf32, #tpu.memory_space<vmem>>, %arg6: memref<1x64x16xbf16, #tpu.memory_space<vmem>>, %arg7: memref<1x1x16xf32, #tpu.memory_space<vmem>>) attributes {dimension_semantics = [#tpu.dimension_semantics<parallel>, #tpu.dimension_semantics<parallel>], iteration_bounds = array<i64: 1, 2>, scalar_prefetch = 0 : i64, scratch_operands = 0 : i64, tpu.core_type = #tpu.core_type<tc>, window_params = [{transform_indices = @transform_0, window_bounds = array<i64: 4, 1, 9, 9, 16>}, {transform_indices = @transform_1, window_bounds = array<i64: 2, 72, 8>}, {transform_indices = @transform_2, window_bounds = array<i64: 1, 1, 16>}, {transform_indices = @transform_3, window_bounds = array<i64: 1, 1, 16>}, {transform_indices = @transform_4, window_bounds = array<i64: 1, 64, 16>}, {transform_indices = @transform_5, window_bounds = array<i64: 1, 1, 16>}]} {
    %c0 = arith.constant 0 : index
    %c0_0 = arith.constant 0 : index
    %c0_1 = arith.constant 0 : index
    %c0_2 = arith.constant 0 : index
    %c0_3 = arith.constant 0 : index
    %0 = vector.load %arg2[%c0, %c0_0, %c0_1, %c0_2, %c0_3] : memref<4x1x9x9x16xbf16, #tpu.memory_space<vmem>>, vector<1x1x8x8x8xbf16>
    %1 = vector.shape_cast %0 : vector<1x1x8x8x8xbf16> to vector<8x8x8xbf16>
    %2 = vector.shape_cast %1 : vector<8x8x8xbf16> to vector<64x8xbf16>
    %c1 = arith.constant 1 : index
    %c0_4 = arith.constant 0 : index
    %c0_5 = arith.constant 0 : index
    %c0_6 = arith.constant 0 : index
    %c0_7 = arith.constant 0 : index
    %3 = vector.load %arg2[%c1, %c0_4, %c0_5, %c0_6, %c0_7] : memref<4x1x9x9x16xbf16, #tpu.memory_space<vmem>>, vector<1x1x8x8x8xbf16>
    %4 = vector.shape_cast %3 : vector<1x1x8x8x8xbf16> to vector<8x8x8xbf16>
    %5 = vector.shape_cast %4 : vector<8x8x8xbf16> to vector<64x8xbf16>
    %c0_8 = arith.constant 0 : index
    %c0_9 = arith.constant 0 : index
    %c0_10 = arith.constant 0 : index
    %c1_11 = arith.constant 1 : index
    %c0_12 = arith.constant 0 : index
    %6 = vector.load %arg2[%c0_8, %c0_9, %c0_10, %c1_11, %c0_12] : memref<4x1x9x9x16xbf16, #tpu.memory_space<vmem>>, vector<1x1x8x8x8xbf16>
    %7 = vector.shape_cast %6 : vector<1x1x8x8x8xbf16> to vector<8x8x8xbf16>
    %8 = vector.shape_cast %7 : vector<8x8x8xbf16> to vector<64x8xbf16>
    %c2 = arith.constant 2 : index
    %c0_13 = arith.constant 0 : index
    %c0_14 = arith.constant 0 : index
    %c0_15 = arith.constant 0 : index
    %c0_16 = arith.constant 0 : index
    %9 = vector.load %arg2[%c2, %c0_13, %c0_14, %c0_15, %c0_16] : memref<4x1x9x9x16xbf16, #tpu.memory_space<vmem>>, vector<1x1x8x8x8xbf16>
    %10 = vector.shape_cast %9 : vector<1x1x8x8x8xbf16> to vector<8x8x8xbf16>
    %11 = vector.shape_cast %10 : vector<8x8x8xbf16> to vector<64x8xbf16>
    %c3 = arith.constant 3 : index
    %c0_17 = arith.constant 0 : index
    %c0_18 = arith.constant 0 : index
    %c0_19 = arith.constant 0 : index
    %c0_20 = arith.constant 0 : index
    %12 = vector.load %arg2[%c3, %c0_17, %c0_18, %c0_19, %c0_20] : memref<4x1x9x9x16xbf16, #tpu.memory_space<vmem>>, vector<1x1x8x8x8xbf16>
    %13 = vector.shape_cast %12 : vector<1x1x8x8x8xbf16> to vector<8x8x8xbf16>
    %14 = vector.shape_cast %13 : vector<8x8x8xbf16> to vector<64x8xbf16>
    %c2_21 = arith.constant 2 : index
    %c0_22 = arith.constant 0 : index
    %c0_23 = arith.constant 0 : index
    %c1_24 = arith.constant 1 : index
    %c0_25 = arith.constant 0 : index
    %15 = vector.load %arg2[%c2_21, %c0_22, %c0_23, %c1_24, %c0_25] : memref<4x1x9x9x16xbf16, #tpu.memory_space<vmem>>, vector<1x1x8x8x8xbf16>
    %16 = vector.shape_cast %15 : vector<1x1x8x8x8xbf16> to vector<8x8x8xbf16>
    %17 = vector.shape_cast %16 : vector<8x8x8xbf16> to vector<64x8xbf16>
    %c0_26 = arith.constant 0 : index
    %c0_27 = arith.constant 0 : index
    %c1_28 = arith.constant 1 : index
    %c0_29 = arith.constant 0 : index
    %c0_30 = arith.constant 0 : index
    %18 = vector.load %arg2[%c0_26, %c0_27, %c1_28, %c0_29, %c0_30] : memref<4x1x9x9x16xbf16, #tpu.memory_space<vmem>>, vector<1x1x8x8x8xbf16>
    %19 = vector.shape_cast %18 : vector<1x1x8x8x8xbf16> to vector<8x8x8xbf16>
    %20 = vector.shape_cast %19 : vector<8x8x8xbf16> to vector<64x8xbf16>
    %c1_31 = arith.constant 1 : index
    %c0_32 = arith.constant 0 : index
    %c1_33 = arith.constant 1 : index
    %c0_34 = arith.constant 0 : index
    %c0_35 = arith.constant 0 : index
    %21 = vector.load %arg2[%c1_31, %c0_32, %c1_33, %c0_34, %c0_35] : memref<4x1x9x9x16xbf16, #tpu.memory_space<vmem>>, vector<1x1x8x8x8xbf16>
    %22 = vector.shape_cast %21 : vector<1x1x8x8x8xbf16> to vector<8x8x8xbf16>
    %23 = vector.shape_cast %22 : vector<8x8x8xbf16> to vector<64x8xbf16>
    %c0_36 = arith.constant 0 : index
    %c0_37 = arith.constant 0 : index
    %c1_38 = arith.constant 1 : index
    %c1_39 = arith.constant 1 : index
    %c0_40 = arith.constant 0 : index
    %24 = vector.load %arg2[%c0_36, %c0_37, %c1_38, %c1_39, %c0_40] : memref<4x1x9x9x16xbf16, #tpu.memory_space<vmem>>, vector<1x1x8x8x8xbf16>
    %25 = vector.shape_cast %24 : vector<1x1x8x8x8xbf16> to vector<8x8x8xbf16>
    %26 = vector.shape_cast %25 : vector<8x8x8xbf16> to vector<64x8xbf16>
    %27 = tpu.concatenate %2, %5, %8, %11, %14, %17, %20, %23, %26 in 1 : vector<64x8xbf16>, vector<64x8xbf16>, vector<64x8xbf16>, vector<64x8xbf16>, vector<64x8xbf16>, vector<64x8xbf16>, vector<64x8xbf16>, vector<64x8xbf16>, vector<64x8xbf16> -> vector<64x72xbf16>
    %c0_41 = arith.constant 0 : index
    %c0_42 = arith.constant 0 : index
    %c0_43 = arith.constant 0 : index
    %28 = vector.load %arg3[%c0_41, %c0_42, %c0_43] : memref<2x72x8xbf16, #tpu.memory_space<vmem>>, vector<1x72x8xbf16>
    %29 = vector.shape_cast %28 : vector<1x72x8xbf16> to vector<72x8xbf16>
    %cst = arith.constant dense<0.000000e+00> : vector<64x8xf32>
    %30 = tpu.matmul %27, %29, %cst {dimension_numbers = #tpu.dot_dimension_numbers<[1], [0], [0], [1], [0, 0, 1, 1], [], []>} : vector<64x72xbf16>, vector<72x8xbf16>, vector<64x8xf32> -> vector<64x8xf32>
    %c0_44 = arith.constant 0 : index
    %c0_45 = arith.constant 0 : index
    %c0_46 = arith.constant 0 : index
    %c0_47 = arith.constant 0 : index
    %c8 = arith.constant 8 : index
    %31 = vector.load %arg2[%c0_44, %c0_45, %c0_46, %c0_47, %c8] : memref<4x1x9x9x16xbf16, #tpu.memory_space<vmem>>, vector<1x1x8x8x8xbf16>
    %32 = vector.shape_cast %31 : vector<1x1x8x8x8xbf16> to vector<8x8x8xbf16>
    %33 = vector.shape_cast %32 : vector<8x8x8xbf16> to vector<64x8xbf16>
    %c1_48 = arith.constant 1 : index
    %c0_49 = arith.constant 0 : index
    %c0_50 = arith.constant 0 : index
    %c0_51 = arith.constant 0 : index
    %c8_52 = arith.constant 8 : index
    %34 = vector.load %arg2[%c1_48, %c0_49, %c0_50, %c0_51, %c8_52] : memref<4x1x9x9x16xbf16, #tpu.memory_space<vmem>>, vector<1x1x8x8x8xbf16>
    %35 = vector.shape_cast %34 : vector<1x1x8x8x8xbf16> to vector<8x8x8xbf16>
    %36 = vector.shape_cast %35 : vector<8x8x8xbf16> to vector<64x8xbf16>
    %c0_53 = arith.constant 0 : index
    %c0_54 = arith.constant 0 : index
    %c0_55 = arith.constant 0 : index
    %c1_56 = arith.constant 1 : index
    %c8_57 = arith.constant 8 : index
    %37 = vector.load %arg2[%c0_53, %c0_54, %c0_55, %c1_56, %c8_57] : memref<4x1x9x9x16xbf16, #tpu.memory_space<vmem>>, vector<1x1x8x8x8xbf16>
    %38 = vector.shape_cast %37 : vector<1x1x8x8x8xbf16> to vector<8x8x8xbf16>
    %39 = vector.shape_cast %38 : vector<8x8x8xbf16> to vector<64x8xbf16>
    %c2_58 = arith.constant 2 : index
    %c0_59 = arith.constant 0 : index
    %c0_60 = arith.constant 0 : index
    %c0_61 = arith.constant 0 : index
    %c8_62 = arith.constant 8 : index
    %40 = vector.load %arg2[%c2_58, %c0_59, %c0_60, %c0_61, %c8_62] : memref<4x1x9x9x16xbf16, #tpu.memory_space<vmem>>, vector<1x1x8x8x8xbf16>
    %41 = vector.shape_cast %40 : vector<1x1x8x8x8xbf16> to vector<8x8x8xbf16>
    %42 = vector.shape_cast %41 : vector<8x8x8xbf16> to vector<64x8xbf16>
    %c3_63 = arith.constant 3 : index
    %c0_64 = arith.constant 0 : index
    %c0_65 = arith.constant 0 : index
    %c0_66 = arith.constant 0 : index
    %c8_67 = arith.constant 8 : index
    %43 = vector.load %arg2[%c3_63, %c0_64, %c0_65, %c0_66, %c8_67] : memref<4x1x9x9x16xbf16, #tpu.memory_space<vmem>>, vector<1x1x8x8x8xbf16>
    %44 = vector.shape_cast %43 : vector<1x1x8x8x8xbf16> to vector<8x8x8xbf16>
    %45 = vector.shape_cast %44 : vector<8x8x8xbf16> to vector<64x8xbf16>
    %c2_68 = arith.constant 2 : index
    %c0_69 = arith.constant 0 : index
    %c0_70 = arith.constant 0 : index
    %c1_71 = arith.constant 1 : index
    %c8_72 = arith.constant 8 : index
    %46 = vector.load %arg2[%c2_68, %c0_69, %c0_70, %c1_71, %c8_72] : memref<4x1x9x9x16xbf16, #tpu.memory_space<vmem>>, vector<1x1x8x8x8xbf16>
    %47 = vector.shape_cast %46 : vector<1x1x8x8x8xbf16> to vector<8x8x8xbf16>
    %48 = vector.shape_cast %47 : vector<8x8x8xbf16> to vector<64x8xbf16>
    %c0_73 = arith.constant 0 : index
    %c0_74 = arith.constant 0 : index
    %c1_75 = arith.constant 1 : index
    %c0_76 = arith.constant 0 : index
    %c8_77 = arith.constant 8 : index
    %49 = vector.load %arg2[%c0_73, %c0_74, %c1_75, %c0_76, %c8_77] : memref<4x1x9x9x16xbf16, #tpu.memory_space<vmem>>, vector<1x1x8x8x8xbf16>
    %50 = vector.shape_cast %49 : vector<1x1x8x8x8xbf16> to vector<8x8x8xbf16>
    %51 = vector.shape_cast %50 : vector<8x8x8xbf16> to vector<64x8xbf16>
    %c1_78 = arith.constant 1 : index
    %c0_79 = arith.constant 0 : index
    %c1_80 = arith.constant 1 : index
    %c0_81 = arith.constant 0 : index
    %c8_82 = arith.constant 8 : index
    %52 = vector.load %arg2[%c1_78, %c0_79, %c1_80, %c0_81, %c8_82] : memref<4x1x9x9x16xbf16, #tpu.memory_space<vmem>>, vector<1x1x8x8x8xbf16>
    %53 = vector.shape_cast %52 : vector<1x1x8x8x8xbf16> to vector<8x8x8xbf16>
    %54 = vector.shape_cast %53 : vector<8x8x8xbf16> to vector<64x8xbf16>
    %c0_83 = arith.constant 0 : index
    %c0_84 = arith.constant 0 : index
    %c1_85 = arith.constant 1 : index
    %c1_86 = arith.constant 1 : index
    %c8_87 = arith.constant 8 : index
    %55 = vector.load %arg2[%c0_83, %c0_84, %c1_85, %c1_86, %c8_87] : memref<4x1x9x9x16xbf16, #tpu.memory_space<vmem>>, vector<1x1x8x8x8xbf16>
    %56 = vector.shape_cast %55 : vector<1x1x8x8x8xbf16> to vector<8x8x8xbf16>
    %57 = vector.shape_cast %56 : vector<8x8x8xbf16> to vector<64x8xbf16>
    %58 = tpu.concatenate %33, %36, %39, %42, %45, %48, %51, %54, %57 in 1 : vector<64x8xbf16>, vector<64x8xbf16>, vector<64x8xbf16>, vector<64x8xbf16>, vector<64x8xbf16>, vector<64x8xbf16>, vector<64x8xbf16>, vector<64x8xbf16>, vector<64x8xbf16> -> vector<64x72xbf16>
    %c1_88 = arith.constant 1 : index
    %c0_89 = arith.constant 0 : index
    %c0_90 = arith.constant 0 : index
    %59 = vector.load %arg3[%c1_88, %c0_89, %c0_90] : memref<2x72x8xbf16, #tpu.memory_space<vmem>>, vector<1x72x8xbf16>
    %60 = vector.shape_cast %59 : vector<1x72x8xbf16> to vector<72x8xbf16>
    %cst_91 = arith.constant dense<0.000000e+00> : vector<64x8xf32>
    %61 = tpu.matmul %58, %60, %cst_91 {dimension_numbers = #tpu.dot_dimension_numbers<[1], [0], [0], [1], [0, 0, 1, 1], [], []>} : vector<64x72xbf16>, vector<72x8xbf16>, vector<64x8xf32> -> vector<64x8xf32>
    %62 = tpu.concatenate %30, %61 in 1 : vector<64x8xf32>, vector<64x8xf32> -> vector<64x16xf32>
    %c0_92 = arith.constant 0 : index
    %c0_93 = arith.constant 0 : index
    %c0_94 = arith.constant 0 : index
    %63 = vector.load %arg4[%c0_92, %c0_93, %c0_94] : memref<1x1x16xf32, #tpu.memory_space<vmem>>, vector<1x1x16xf32>
    %64 = vector.shape_cast %63 : vector<1x1x16xf32> to vector<1x16xf32>
    %65 = vector.broadcast %64 : vector<1x16xf32> to vector<64x16xf32>
    %66 = arith.mulf %62, %65 : vector<64x16xf32>
    %c0_95 = arith.constant 0 : index
    %c0_96 = arith.constant 0 : index
    %c0_97 = arith.constant 0 : index
    %67 = vector.load %arg5[%c0_95, %c0_96, %c0_97] : memref<1x1x16xf32, #tpu.memory_space<vmem>>, vector<1x1x16xf32>
    %68 = vector.shape_cast %67 : vector<1x1x16xf32> to vector<1x16xf32>
    %69 = vector.broadcast %68 : vector<1x16xf32> to vector<64x16xf32>
    %70 = arith.addf %66, %69 : vector<64x16xf32>
    %cst_98 = arith.constant 0.000000e+00 : f32
    %71 = vector.broadcast %cst_98 : f32 to vector<64x16xf32>
    %72 = arith.maximumf %70, %71 : vector<64x16xf32>
    %73 = arith.truncf %72 : vector<64x16xf32> to vector<64x16xbf16>
    %c0_99 = arith.constant 0 : index
    %c0_100 = arith.constant 0 : index
    %c0_101 = arith.constant 0 : index
    %74 = vector.load %arg6[%c0_99, %c0_100, %c0_101] : memref<1x64x16xbf16, #tpu.memory_space<vmem>>, vector<1x64x16xbf16>
    %75 = vector.shape_cast %74 : vector<1x64x16xbf16> to vector<64x16xbf16>
    %76 = vector.shape_cast %73 : vector<64x16xbf16> to vector<1x64x16xbf16>
    tpu.vector_store %arg6[%c0_99, %c0_100, %c0_101], %76 {strides = array<i32>} : memref<1x64x16xbf16, #tpu.memory_space<vmem>>, vector<1x64x16xbf16>,
    %cst_102 = arith.constant dense<0.000000e+00> : vector<16xf32>
    %77 = vector.multi_reduction <add>, %72, %cst_102 [0] : vector<64x16xf32> to vector<16xf32>
    %78 = vector.shape_cast %77 : vector<16xf32> to vector<1x16xf32>
    %cst_103 = arith.constant 1.562500e-02 : f32
    %79 = vector.broadcast %cst_103 : f32 to vector<1x16xf32>
    %80 = arith.mulf %78, %79 : vector<1x16xf32>
    %c0_104 = arith.constant 0 : index
    %c0_105 = arith.constant 0 : index
    %c0_106 = arith.constant 0 : index
    %81 = vector.load %arg7[%c0_104, %c0_105, %c0_106] : memref<1x1x16xf32, #tpu.memory_space<vmem>>, vector<1x1x16xf32>
    %82 = vector.shape_cast %81 : vector<1x1x16xf32> to vector<1x16xf32>
    %83 = vector.shape_cast %80 : vector<1x16xf32> to vector<1x1x16xf32>
    tpu.vector_store %arg7[%c0_104, %c0_105, %c0_106], %83 {strides = array<i32>} : memref<1x1x16xf32, #tpu.memory_space<vmem>>, vector<1x1x16xf32>,
    return
  }
  func.func @transform_0(%arg0: i32, %arg1: i32) -> (i32, i32, i32, i32, i32) {
    %c0_i32 = arith.constant 0 : i32
    %c0_i32_0 = arith.constant 0 : i32
    %c0_i32_1 = arith.constant 0 : i32
    %c0_i32_2 = arith.constant 0 : i32
    return %c0_i32, %arg1, %c0_i32_0, %c0_i32_1, %arg0 : i32, i32, i32, i32, i32
  }
  func.func @transform_1(%arg0: i32, %arg1: i32) -> (i32, i32, i32) {
    %c0_i32 = arith.constant 0 : i32
    %c0_i32_0 = arith.constant 0 : i32
    %c0_i32_1 = arith.constant 0 : i32
    return %arg0, %c0_i32, %c0_i32_0 : i32, i32, i32
  }
  func.func @transform_2(%arg0: i32, %arg1: i32) -> (i32, i32, i32) {
    %c0_i32 = arith.constant 0 : i32
    %c0_i32_0 = arith.constant 0 : i32
    %c0_i32_1 = arith.constant 0 : i32
    return %c0_i32, %c0_i32_0, %arg0 : i32, i32, i32
  }
  func.func @transform_3(%arg0: i32, %arg1: i32) -> (i32, i32, i32) {
    %c0_i32 = arith.constant 0 : i32
    %c0_i32_0 = arith.constant 0 : i32
    %c0_i32_1 = arith.constant 0 : i32
    return %c0_i32, %c0_i32_0, %arg0 : i32, i32, i32
  }
  func.func @transform_4(%arg0: i32, %arg1: i32) -> (i32, i32, i32) {
    %c0_i32 = arith.constant 0 : i32
    %c0_i32_0 = arith.constant 0 : i32
    return %arg1, %c0_i32, %arg0 : i32, i32, i32
  }
  func.func @transform_5(%arg0: i32, %arg1: i32) -> (i32, i32, i32) {
    %c0_i32 = arith.constant 0 : i32
    %c0_i32_0 = arith.constant 0 : i32
    return %arg1, %c0_i32, %arg0 : i32, i32, i32
  }
}

module attributes {stable_mosaic.version = 11 : i64} {
  func.func @_convc_fused_kernel(%arg0: i32, %arg1: i32, %arg2: i32, %arg3: i32, %arg4: memref<1x64x16xbf16, #tpu.memory_space<vmem>>, %arg5: memref<1x1x16xbf16, #tpu.memory_space<vmem>>, %arg6: memref<16x16xbf16, #tpu.memory_space<vmem>>, %arg7: memref<1x16xf32, #tpu.memory_space<vmem>>, %arg8: memref<1x16xf32, #tpu.memory_space<vmem>>, %arg9: memref<1x64x16xbf16, #tpu.memory_space<vmem>>, %arg10: memref<1x64x16xbf16, #tpu.memory_space<vmem>>, %arg11: memref<64x16xf32, #tpu.memory_space<vmem>>) attributes {dimension_semantics = [#tpu.dimension_semantics<parallel>, #tpu.dimension_semantics<parallel>, #tpu.dimension_semantics<parallel>, #tpu.dimension_semantics<arbitrary>], iteration_bounds = array<i64: 2, 1, 1, 1>, scalar_prefetch = 0 : i64, scratch_operands = 1 : i64, tpu.core_type = #tpu.core_type<tc>, window_params = [{transform_indices = @transform_0, window_bounds = array<i64: 1, 64, 16>}, {transform_indices = @transform_1, window_bounds = array<i64: 1, 1, 16>}, {transform_indices = @transform_2, window_bounds = array<i64: 16, 16>}, {transform_indices = @transform_3, window_bounds = array<i64: 1, 16>}, {transform_indices = @transform_4, window_bounds = array<i64: 1, 16>}, {transform_indices = @transform_5, window_bounds = array<i64: 1, 64, 16>}, {transform_indices = @transform_6, window_bounds = array<i64: 1, 64, 16>}]} {
    %c0_i32 = arith.constant 0 : i32
    %0 = arith.cmpi eq, %arg3, %c0_i32 : i32
    %1 = arith.extui %0 : i1 to i32
    %c0_i32_0 = arith.constant 0 : i32
    %2 = arith.cmpi ne, %1, %c0_i32_0 : i32
    scf.if %2 {
      %cst_14 = arith.constant 0.000000e+00 : f32
      %17 = vector.broadcast %cst_14 : f32 to vector<64x16xf32>
      %c0_15 = arith.constant 0 : index
      %c0_16 = arith.constant 0 : index
      %18 = vector.load %arg11[%c0_15, %c0_16] : memref<64x16xf32, #tpu.memory_space<vmem>>, vector<64x16xf32>
      tpu.vector_store %arg11[%c0_15, %c0_16], %17 {strides = array<i32>} : memref<64x16xf32, #tpu.memory_space<vmem>>, vector<64x16xf32>,
    } else {
    }
    %c0 = arith.constant 0 : index
    %c0_1 = arith.constant 0 : index
    %c0_2 = arith.constant 0 : index
    %3 = vector.load %arg4[%c0, %c0_1, %c0_2] : memref<1x64x16xbf16, #tpu.memory_space<vmem>>, vector<1x64x16xbf16>
    %4 = vector.shape_cast %3 : vector<1x64x16xbf16> to vector<64x16xbf16>
    %c0_3 = arith.constant 0 : index
    %c0_4 = arith.constant 0 : index
    %c0_5 = arith.constant 0 : index
    %5 = vector.load %arg5[%c0_3, %c0_4, %c0_5] : memref<1x1x16xbf16, #tpu.memory_space<vmem>>, vector<1x1x16xbf16>
    %6 = vector.shape_cast %5 : vector<1x1x16xbf16> to vector<1x16xbf16>
    %7 = vector.broadcast %6 : vector<1x16xbf16> to vector<64x16xbf16>
    %8 = arith.mulf %4, %7 : vector<64x16xbf16>
    %c0_6 = arith.constant 0 : index
    %c0_7 = arith.constant 0 : index
    %9 = vector.load %arg11[%c0_6, %c0_7] : memref<64x16xf32, #tpu.memory_space<vmem>>, vector<64x16xf32>
    %c0_8 = arith.constant 0 : index
    %c0_9 = arith.constant 0 : index
    %10 = vector.load %arg6[%c0_8, %c0_9] : memref<16x16xbf16, #tpu.memory_space<vmem>>, vector<16x16xbf16>
    %cst = arith.constant dense<0.000000e+00> : vector<64x16xf32>
    %11 = tpu.matmul %8, %10, %cst {dimension_numbers = #tpu.dot_dimension_numbers<[1], [0], [0], [1], [0, 0, 1, 1], [], []>} : vector<64x16xbf16>, vector<16x16xbf16>, vector<64x16xf32> -> vector<64x16xf32>
    %12 = arith.addf %9, %11 : vector<64x16xf32>
    %c0_10 = arith.constant 0 : index
    %c0_11 = arith.constant 0 : index
    %13 = vector.load %arg11[%c0_10, %c0_11] : memref<64x16xf32, #tpu.memory_space<vmem>>, vector<64x16xf32>
    tpu.vector_store %arg11[%c0_10, %c0_11], %12 {strides = array<i32>} : memref<64x16xf32, #tpu.memory_space<vmem>>, vector<64x16xf32>,
    %c0_i32_12 = arith.constant 0 : i32
    %14 = arith.cmpi eq, %arg3, %c0_i32_12 : i32
    %15 = arith.extui %14 : i1 to i32
    %c0_i32_13 = arith.constant 0 : i32
    %16 = arith.cmpi ne, %15, %c0_i32_13 : i32
    scf.if %16 {
      %c0_14 = arith.constant 0 : index
      %c0_15 = arith.constant 0 : index
      %17 = vector.load %arg11[%c0_14, %c0_15] : memref<64x16xf32, #tpu.memory_space<vmem>>, vector<64x16xf32>
      %c0_16 = arith.constant 0 : index
      %c0_17 = arith.constant 0 : index
      %18 = vector.load %arg7[%c0_16, %c0_17] : memref<1x16xf32, #tpu.memory_space<vmem>>, vector<1x16xf32>
      %19 = vector.broadcast %18 : vector<1x16xf32> to vector<64x16xf32>
      %20 = arith.mulf %17, %19 : vector<64x16xf32>
      %c0_18 = arith.constant 0 : index
      %c0_19 = arith.constant 0 : index
      %21 = vector.load %arg8[%c0_18, %c0_19] : memref<1x16xf32, #tpu.memory_space<vmem>>, vector<1x16xf32>
      %22 = vector.broadcast %21 : vector<1x16xf32> to vector<64x16xf32>
      %23 = arith.addf %20, %22 : vector<64x16xf32>
      %c0_20 = arith.constant 0 : index
      %c0_21 = arith.constant 0 : index
      %c0_22 = arith.constant 0 : index
      %24 = vector.load %arg9[%c0_20, %c0_21, %c0_22] : memref<1x64x16xbf16, #tpu.memory_space<vmem>>, vector<1x64x16xbf16>
      %25 = vector.shape_cast %24 : vector<1x64x16xbf16> to vector<64x16xbf16>
      %26 = arith.extf %25 : vector<64x16xbf16> to vector<64x16xf32>
      %27 = arith.addf %23, %26 : vector<64x16xf32>
      %cst_23 = arith.constant 0.000000e+00 : f32
      %28 = vector.broadcast %cst_23 : f32 to vector<64x16xf32>
      %29 = arith.maximumf %27, %28 : vector<64x16xf32>
      %30 = arith.truncf %29 : vector<64x16xf32> to vector<64x16xbf16>
      %c0_24 = arith.constant 0 : index
      %c0_25 = arith.constant 0 : index
      %c0_26 = arith.constant 0 : index
      %31 = vector.load %arg10[%c0_24, %c0_25, %c0_26] : memref<1x64x16xbf16, #tpu.memory_space<vmem>>, vector<1x64x16xbf16>
      %32 = vector.shape_cast %31 : vector<1x64x16xbf16> to vector<64x16xbf16>
      %33 = vector.shape_cast %30 : vector<64x16xbf16> to vector<1x64x16xbf16>
      tpu.vector_store %arg10[%c0_24, %c0_25, %c0_26], %33 {strides = array<i32>} : memref<1x64x16xbf16, #tpu.memory_space<vmem>>, vector<1x64x16xbf16>,
    } else {
    }
    return
  }
  func.func @transform_0(%arg0: i32, %arg1: i32, %arg2: i32, %arg3: i32) -> (i32, i32, i32) {
    %c0_i32 = arith.constant 0 : i32
    return %arg0, %arg1, %arg3 : i32, i32, i32
  }
  func.func @transform_1(%arg0: i32, %arg1: i32, %arg2: i32, %arg3: i32) -> (i32, i32, i32) {
    %c0_i32 = arith.constant 0 : i32
    %c0_i32_0 = arith.constant 0 : i32
    return %arg0, %c0_i32, %arg3 : i32, i32, i32
  }
  func.func @transform_2(%arg0: i32, %arg1: i32, %arg2: i32, %arg3: i32) -> (i32, i32) {
    %c0_i32 = arith.constant 0 : i32
    return %arg3, %arg2 : i32, i32
  }
  func.func @transform_3(%arg0: i32, %arg1: i32, %arg2: i32, %arg3: i32) -> (i32, i32) {
    %c0_i32 = arith.constant 0 : i32
    %c0_i32_0 = arith.constant 0 : i32
    return %c0_i32, %arg2 : i32, i32
  }
  func.func @transform_4(%arg0: i32, %arg1: i32, %arg2: i32, %arg3: i32) -> (i32, i32) {
    %c0_i32 = arith.constant 0 : i32
    %c0_i32_0 = arith.constant 0 : i32
    return %c0_i32, %arg2 : i32, i32
  }
  func.func @transform_5(%arg0: i32, %arg1: i32, %arg2: i32, %arg3: i32) -> (i32, i32, i32) {
    %c0_i32 = arith.constant 0 : i32
    return %arg0, %arg1, %arg2 : i32, i32, i32
  }
  func.func @transform_6(%arg0: i32, %arg1: i32, %arg2: i32, %arg3: i32) -> (i32, i32, i32) {
    %c0_i32 = arith.constant 0 : i32
    return %arg0, %arg1, %arg2 : i32, i32, i32
  }
}

module attributes {stable_mosaic.version = 11 : i64} {
  func.func @_mm_bn_act_kernel(%arg0: i32, %arg1: i32, %arg2: i32, %arg3: memref<128x16xbf16, #tpu.memory_space<vmem>>, %arg4: memref<16x16xbf16, #tpu.memory_space<vmem>>, %arg5: memref<1x16xf32, #tpu.memory_space<vmem>>, %arg6: memref<1x16xf32, #tpu.memory_space<vmem>>, %arg7: memref<128x16xbf16, #tpu.memory_space<vmem>>, %arg8: memref<128x16xf32, #tpu.memory_space<vmem>>) attributes {dimension_semantics = [#tpu.dimension_semantics<parallel>, #tpu.dimension_semantics<parallel>, #tpu.dimension_semantics<arbitrary>], iteration_bounds = array<i64: 1, 1, 1>, scalar_prefetch = 0 : i64, scratch_operands = 1 : i64, tpu.core_type = #tpu.core_type<tc>, window_params = [{transform_indices = @transform_0, window_bounds = array<i64: 128, 16>}, {transform_indices = @transform_1, window_bounds = array<i64: 16, 16>}, {transform_indices = @transform_2, window_bounds = array<i64: 1, 16>}, {transform_indices = @transform_3, window_bounds = array<i64: 1, 16>}, {transform_indices = @transform_4, window_bounds = array<i64: 128, 16>}]} {
    %c0_i32 = arith.constant 0 : i32
    %0 = arith.cmpi eq, %arg2, %c0_i32 : i32
    %1 = arith.extui %0 : i1 to i32
    %c0_i32_0 = arith.constant 0 : i32
    %2 = arith.cmpi ne, %1, %c0_i32_0 : i32
    scf.if %2 {
      %cst_10 = arith.constant 0.000000e+00 : f32
      %12 = vector.broadcast %cst_10 : f32 to vector<128x16xf32>
      %c0_11 = arith.constant 0 : index
      %c0_12 = arith.constant 0 : index
      %13 = vector.load %arg8[%c0_11, %c0_12] : memref<128x16xf32, #tpu.memory_space<vmem>>, vector<128x16xf32>
      tpu.vector_store %arg8[%c0_11, %c0_12], %12 {strides = array<i32>} : memref<128x16xf32, #tpu.memory_space<vmem>>, vector<128x16xf32>,
    } else {
    }
    %c0 = arith.constant 0 : index
    %c0_1 = arith.constant 0 : index
    %3 = vector.load %arg8[%c0, %c0_1] : memref<128x16xf32, #tpu.memory_space<vmem>>, vector<128x16xf32>
    %c0_2 = arith.constant 0 : index
    %c0_3 = arith.constant 0 : index
    %4 = vector.load %arg3[%c0_2, %c0_3] : memref<128x16xbf16, #tpu.memory_space<vmem>>, vector<128x16xbf16>
    %c0_4 = arith.constant 0 : index
    %c0_5 = arith.constant 0 : index
    %5 = vector.load %arg4[%c0_4, %c0_5] : memref<16x16xbf16, #tpu.memory_space<vmem>>, vector<16x16xbf16>
    %cst = arith.constant dense<0.000000e+00> : vector<128x16xf32>
    %6 = tpu.matmul %4, %5, %cst {dimension_numbers = #tpu.dot_dimension_numbers<[1], [0], [0], [1], [0, 0, 1, 1], [], []>} : vector<128x16xbf16>, vector<16x16xbf16>, vector<128x16xf32> -> vector<128x16xf32>
    %7 = arith.addf %3, %6 : vector<128x16xf32>
    %c0_6 = arith.constant 0 : index
    %c0_7 = arith.constant 0 : index
    %8 = vector.load %arg8[%c0_6, %c0_7] : memref<128x16xf32, #tpu.memory_space<vmem>>, vector<128x16xf32>
    tpu.vector_store %arg8[%c0_6, %c0_7], %7 {strides = array<i32>} : memref<128x16xf32, #tpu.memory_space<vmem>>, vector<128x16xf32>,
    %c0_i32_8 = arith.constant 0 : i32
    %9 = arith.cmpi eq, %arg2, %c0_i32_8 : i32
    %10 = arith.extui %9 : i1 to i32
    %c0_i32_9 = arith.constant 0 : i32
    %11 = arith.cmpi ne, %10, %c0_i32_9 : i32
    scf.if %11 {
      %c0_10 = arith.constant 0 : index
      %c0_11 = arith.constant 0 : index
      %12 = vector.load %arg8[%c0_10, %c0_11] : memref<128x16xf32, #tpu.memory_space<vmem>>, vector<128x16xf32>
      %c0_12 = arith.constant 0 : index
      %c0_13 = arith.constant 0 : index
      %13 = vector.load %arg5[%c0_12, %c0_13] : memref<1x16xf32, #tpu.memory_space<vmem>>, vector<1x16xf32>
      %14 = vector.broadcast %13 : vector<1x16xf32> to vector<128x16xf32>
      %15 = arith.mulf %12, %14 : vector<128x16xf32>
      %c0_14 = arith.constant 0 : index
      %c0_15 = arith.constant 0 : index
      %16 = vector.load %arg6[%c0_14, %c0_15] : memref<1x16xf32, #tpu.memory_space<vmem>>, vector<1x16xf32>
      %17 = vector.broadcast %16 : vector<1x16xf32> to vector<128x16xf32>
      %18 = arith.addf %15, %17 : vector<128x16xf32>
      %cst_16 = arith.constant 0.000000e+00 : f32
      %19 = vector.broadcast %cst_16 : f32 to vector<128x16xf32>
      %20 = arith.maximumf %18, %19 : vector<128x16xf32>
      %21 = arith.truncf %20 : vector<128x16xf32> to vector<128x16xbf16>
      %c0_17 = arith.constant 0 : index
      %c0_18 = arith.constant 0 : index
      %22 = vector.load %arg7[%c0_17, %c0_18] : memref<128x16xbf16, #tpu.memory_space<vmem>>, vector<128x16xbf16>
      tpu.vector_store %arg7[%c0_17, %c0_18], %21 {strides = array<i32>} : memref<128x16xbf16, #tpu.memory_space<vmem>>, vector<128x16xbf16>,
    } else {
    }
    return
  }
  func.func @transform_0(%arg0: i32, %arg1: i32, %arg2: i32) -> (i32, i32) {
    %c0_i32 = arith.constant 0 : i32
    return %arg0, %arg2 : i32, i32
  }
  func.func @transform_1(%arg0: i32, %arg1: i32, %arg2: i32) -> (i32, i32) {
    %c0_i32 = arith.constant 0 : i32
    return %arg2, %arg1 : i32, i32
  }
  func.func @transform_2(%arg0: i32, %arg1: i32, %arg2: i32) -> (i32, i32) {
    %c0_i32 = arith.constant 0 : i32
    %c0_i32_0 = arith.constant 0 : i32
    return %c0_i32, %arg1 : i32, i32
  }
  func.func @transform_3(%arg0: i32, %arg1: i32, %arg2: i32) -> (i32, i32) {
    %c0_i32 = arith.constant 0 : i32
    %c0_i32_0 = arith.constant 0 : i32
    return %c0_i32, %arg1 : i32, i32
  }
  func.func @transform_4(%arg0: i32, %arg1: i32, %arg2: i32) -> (i32, i32) {
    %c0_i32 = arith.constant 0 : i32
    return %arg0, %arg1 : i32, i32
  }
}

module attributes {stable_mosaic.version = 11 : i64} {
  func.func @_grouped_conv3x3_kernel(%arg0: i32, %arg1: i32, %arg2: memref<1x1x10x10x16xbf16, #tpu.memory_space<vmem>>, %arg3: memref<2x72x8xbf16, #tpu.memory_space<vmem>>, %arg4: memref<1x1x16xf32, #tpu.memory_space<vmem>>, %arg5: memref<1x1x16xf32, #tpu.memory_space<vmem>>, %arg6: memref<1x64x16xbf16, #tpu.memory_space<vmem>>, %arg7: memref<1x1x16xf32, #tpu.memory_space<vmem>>) attributes {dimension_semantics = [#tpu.dimension_semantics<parallel>, #tpu.dimension_semantics<parallel>], iteration_bounds = array<i64: 1, 2>, scalar_prefetch = 0 : i64, scratch_operands = 0 : i64, tpu.core_type = #tpu.core_type<tc>, window_params = [{transform_indices = @transform_0, window_bounds = array<i64: 1, 1, 10, 10, 16>}, {transform_indices = @transform_1, window_bounds = array<i64: 2, 72, 8>}, {transform_indices = @transform_2, window_bounds = array<i64: 1, 1, 16>}, {transform_indices = @transform_3, window_bounds = array<i64: 1, 1, 16>}, {transform_indices = @transform_4, window_bounds = array<i64: 1, 64, 16>}, {transform_indices = @transform_5, window_bounds = array<i64: 1, 1, 16>}]} {
    %c0 = arith.constant 0 : index
    %c0_0 = arith.constant 0 : index
    %c0_1 = arith.constant 0 : index
    %c0_2 = arith.constant 0 : index
    %c0_3 = arith.constant 0 : index
    %0 = vector.load %arg2[%c0, %c0_0, %c0_1, %c0_2, %c0_3] : memref<1x1x10x10x16xbf16, #tpu.memory_space<vmem>>, vector<1x1x8x8x8xbf16>
    %1 = vector.shape_cast %0 : vector<1x1x8x8x8xbf16> to vector<8x8x8xbf16>
    %2 = vector.shape_cast %1 : vector<8x8x8xbf16> to vector<64x8xbf16>
    %c0_4 = arith.constant 0 : index
    %c0_5 = arith.constant 0 : index
    %c0_6 = arith.constant 0 : index
    %c1 = arith.constant 1 : index
    %c0_7 = arith.constant 0 : index
    %3 = vector.load %arg2[%c0_4, %c0_5, %c0_6, %c1, %c0_7] : memref<1x1x10x10x16xbf16, #tpu.memory_space<vmem>>, vector<1x1x8x8x8xbf16>
    %4 = vector.shape_cast %3 : vector<1x1x8x8x8xbf16> to vector<8x8x8xbf16>
    %5 = vector.shape_cast %4 : vector<8x8x8xbf16> to vector<64x8xbf16>
    %c0_8 = arith.constant 0 : index
    %c0_9 = arith.constant 0 : index
    %c0_10 = arith.constant 0 : index
    %c2 = arith.constant 2 : index
    %c0_11 = arith.constant 0 : index
    %6 = vector.load %arg2[%c0_8, %c0_9, %c0_10, %c2, %c0_11] : memref<1x1x10x10x16xbf16, #tpu.memory_space<vmem>>, vector<1x1x8x8x8xbf16>
    %7 = vector.shape_cast %6 : vector<1x1x8x8x8xbf16> to vector<8x8x8xbf16>
    %8 = vector.shape_cast %7 : vector<8x8x8xbf16> to vector<64x8xbf16>
    %c0_12 = arith.constant 0 : index
    %c0_13 = arith.constant 0 : index
    %c1_14 = arith.constant 1 : index
    %c0_15 = arith.constant 0 : index
    %c0_16 = arith.constant 0 : index
    %9 = vector.load %arg2[%c0_12, %c0_13, %c1_14, %c0_15, %c0_16] : memref<1x1x10x10x16xbf16, #tpu.memory_space<vmem>>, vector<1x1x8x8x8xbf16>
    %10 = vector.shape_cast %9 : vector<1x1x8x8x8xbf16> to vector<8x8x8xbf16>
    %11 = vector.shape_cast %10 : vector<8x8x8xbf16> to vector<64x8xbf16>
    %c0_17 = arith.constant 0 : index
    %c0_18 = arith.constant 0 : index
    %c1_19 = arith.constant 1 : index
    %c1_20 = arith.constant 1 : index
    %c0_21 = arith.constant 0 : index
    %12 = vector.load %arg2[%c0_17, %c0_18, %c1_19, %c1_20, %c0_21] : memref<1x1x10x10x16xbf16, #tpu.memory_space<vmem>>, vector<1x1x8x8x8xbf16>
    %13 = vector.shape_cast %12 : vector<1x1x8x8x8xbf16> to vector<8x8x8xbf16>
    %14 = vector.shape_cast %13 : vector<8x8x8xbf16> to vector<64x8xbf16>
    %c0_22 = arith.constant 0 : index
    %c0_23 = arith.constant 0 : index
    %c1_24 = arith.constant 1 : index
    %c2_25 = arith.constant 2 : index
    %c0_26 = arith.constant 0 : index
    %15 = vector.load %arg2[%c0_22, %c0_23, %c1_24, %c2_25, %c0_26] : memref<1x1x10x10x16xbf16, #tpu.memory_space<vmem>>, vector<1x1x8x8x8xbf16>
    %16 = vector.shape_cast %15 : vector<1x1x8x8x8xbf16> to vector<8x8x8xbf16>
    %17 = vector.shape_cast %16 : vector<8x8x8xbf16> to vector<64x8xbf16>
    %c0_27 = arith.constant 0 : index
    %c0_28 = arith.constant 0 : index
    %c2_29 = arith.constant 2 : index
    %c0_30 = arith.constant 0 : index
    %c0_31 = arith.constant 0 : index
    %18 = vector.load %arg2[%c0_27, %c0_28, %c2_29, %c0_30, %c0_31] : memref<1x1x10x10x16xbf16, #tpu.memory_space<vmem>>, vector<1x1x8x8x8xbf16>
    %19 = vector.shape_cast %18 : vector<1x1x8x8x8xbf16> to vector<8x8x8xbf16>
    %20 = vector.shape_cast %19 : vector<8x8x8xbf16> to vector<64x8xbf16>
    %c0_32 = arith.constant 0 : index
    %c0_33 = arith.constant 0 : index
    %c2_34 = arith.constant 2 : index
    %c1_35 = arith.constant 1 : index
    %c0_36 = arith.constant 0 : index
    %21 = vector.load %arg2[%c0_32, %c0_33, %c2_34, %c1_35, %c0_36] : memref<1x1x10x10x16xbf16, #tpu.memory_space<vmem>>, vector<1x1x8x8x8xbf16>
    %22 = vector.shape_cast %21 : vector<1x1x8x8x8xbf16> to vector<8x8x8xbf16>
    %23 = vector.shape_cast %22 : vector<8x8x8xbf16> to vector<64x8xbf16>
    %c0_37 = arith.constant 0 : index
    %c0_38 = arith.constant 0 : index
    %c2_39 = arith.constant 2 : index
    %c2_40 = arith.constant 2 : index
    %c0_41 = arith.constant 0 : index
    %24 = vector.load %arg2[%c0_37, %c0_38, %c2_39, %c2_40, %c0_41] : memref<1x1x10x10x16xbf16, #tpu.memory_space<vmem>>, vector<1x1x8x8x8xbf16>
    %25 = vector.shape_cast %24 : vector<1x1x8x8x8xbf16> to vector<8x8x8xbf16>
    %26 = vector.shape_cast %25 : vector<8x8x8xbf16> to vector<64x8xbf16>
    %27 = tpu.concatenate %2, %5, %8, %11, %14, %17, %20, %23, %26 in 1 : vector<64x8xbf16>, vector<64x8xbf16>, vector<64x8xbf16>, vector<64x8xbf16>, vector<64x8xbf16>, vector<64x8xbf16>, vector<64x8xbf16>, vector<64x8xbf16>, vector<64x8xbf16> -> vector<64x72xbf16>
    %c0_42 = arith.constant 0 : index
    %c0_43 = arith.constant 0 : index
    %c0_44 = arith.constant 0 : index
    %28 = vector.load %arg3[%c0_42, %c0_43, %c0_44] : memref<2x72x8xbf16, #tpu.memory_space<vmem>>, vector<1x72x8xbf16>
    %29 = vector.shape_cast %28 : vector<1x72x8xbf16> to vector<72x8xbf16>
    %cst = arith.constant dense<0.000000e+00> : vector<64x8xf32>
    %30 = tpu.matmul %27, %29, %cst {dimension_numbers = #tpu.dot_dimension_numbers<[1], [0], [0], [1], [0, 0, 1, 1], [], []>} : vector<64x72xbf16>, vector<72x8xbf16>, vector<64x8xf32> -> vector<64x8xf32>
    %c0_45 = arith.constant 0 : index
    %c0_46 = arith.constant 0 : index
    %c0_47 = arith.constant 0 : index
    %c0_48 = arith.constant 0 : index
    %c8 = arith.constant 8 : index
    %31 = vector.load %arg2[%c0_45, %c0_46, %c0_47, %c0_48, %c8] : memref<1x1x10x10x16xbf16, #tpu.memory_space<vmem>>, vector<1x1x8x8x8xbf16>
    %32 = vector.shape_cast %31 : vector<1x1x8x8x8xbf16> to vector<8x8x8xbf16>
    %33 = vector.shape_cast %32 : vector<8x8x8xbf16> to vector<64x8xbf16>
    %c0_49 = arith.constant 0 : index
    %c0_50 = arith.constant 0 : index
    %c0_51 = arith.constant 0 : index
    %c1_52 = arith.constant 1 : index
    %c8_53 = arith.constant 8 : index
    %34 = vector.load %arg2[%c0_49, %c0_50, %c0_51, %c1_52, %c8_53] : memref<1x1x10x10x16xbf16, #tpu.memory_space<vmem>>, vector<1x1x8x8x8xbf16>
    %35 = vector.shape_cast %34 : vector<1x1x8x8x8xbf16> to vector<8x8x8xbf16>
    %36 = vector.shape_cast %35 : vector<8x8x8xbf16> to vector<64x8xbf16>
    %c0_54 = arith.constant 0 : index
    %c0_55 = arith.constant 0 : index
    %c0_56 = arith.constant 0 : index
    %c2_57 = arith.constant 2 : index
    %c8_58 = arith.constant 8 : index
    %37 = vector.load %arg2[%c0_54, %c0_55, %c0_56, %c2_57, %c8_58] : memref<1x1x10x10x16xbf16, #tpu.memory_space<vmem>>, vector<1x1x8x8x8xbf16>
    %38 = vector.shape_cast %37 : vector<1x1x8x8x8xbf16> to vector<8x8x8xbf16>
    %39 = vector.shape_cast %38 : vector<8x8x8xbf16> to vector<64x8xbf16>
    %c0_59 = arith.constant 0 : index
    %c0_60 = arith.constant 0 : index
    %c1_61 = arith.constant 1 : index
    %c0_62 = arith.constant 0 : index
    %c8_63 = arith.constant 8 : index
    %40 = vector.load %arg2[%c0_59, %c0_60, %c1_61, %c0_62, %c8_63] : memref<1x1x10x10x16xbf16, #tpu.memory_space<vmem>>, vector<1x1x8x8x8xbf16>
    %41 = vector.shape_cast %40 : vector<1x1x8x8x8xbf16> to vector<8x8x8xbf16>
    %42 = vector.shape_cast %41 : vector<8x8x8xbf16> to vector<64x8xbf16>
    %c0_64 = arith.constant 0 : index
    %c0_65 = arith.constant 0 : index
    %c1_66 = arith.constant 1 : index
    %c1_67 = arith.constant 1 : index
    %c8_68 = arith.constant 8 : index
    %43 = vector.load %arg2[%c0_64, %c0_65, %c1_66, %c1_67, %c8_68] : memref<1x1x10x10x16xbf16, #tpu.memory_space<vmem>>, vector<1x1x8x8x8xbf16>
    %44 = vector.shape_cast %43 : vector<1x1x8x8x8xbf16> to vector<8x8x8xbf16>
    %45 = vector.shape_cast %44 : vector<8x8x8xbf16> to vector<64x8xbf16>
    %c0_69 = arith.constant 0 : index
    %c0_70 = arith.constant 0 : index
    %c1_71 = arith.constant 1 : index
    %c2_72 = arith.constant 2 : index
    %c8_73 = arith.constant 8 : index
    %46 = vector.load %arg2[%c0_69, %c0_70, %c1_71, %c2_72, %c8_73] : memref<1x1x10x10x16xbf16, #tpu.memory_space<vmem>>, vector<1x1x8x8x8xbf16>
    %47 = vector.shape_cast %46 : vector<1x1x8x8x8xbf16> to vector<8x8x8xbf16>
    %48 = vector.shape_cast %47 : vector<8x8x8xbf16> to vector<64x8xbf16>
    %c0_74 = arith.constant 0 : index
    %c0_75 = arith.constant 0 : index
    %c2_76 = arith.constant 2 : index
    %c0_77 = arith.constant 0 : index
    %c8_78 = arith.constant 8 : index
    %49 = vector.load %arg2[%c0_74, %c0_75, %c2_76, %c0_77, %c8_78] : memref<1x1x10x10x16xbf16, #tpu.memory_space<vmem>>, vector<1x1x8x8x8xbf16>
    %50 = vector.shape_cast %49 : vector<1x1x8x8x8xbf16> to vector<8x8x8xbf16>
    %51 = vector.shape_cast %50 : vector<8x8x8xbf16> to vector<64x8xbf16>
    %c0_79 = arith.constant 0 : index
    %c0_80 = arith.constant 0 : index
    %c2_81 = arith.constant 2 : index
    %c1_82 = arith.constant 1 : index
    %c8_83 = arith.constant 8 : index
    %52 = vector.load %arg2[%c0_79, %c0_80, %c2_81, %c1_82, %c8_83] : memref<1x1x10x10x16xbf16, #tpu.memory_space<vmem>>, vector<1x1x8x8x8xbf16>
    %53 = vector.shape_cast %52 : vector<1x1x8x8x8xbf16> to vector<8x8x8xbf16>
    %54 = vector.shape_cast %53 : vector<8x8x8xbf16> to vector<64x8xbf16>
    %c0_84 = arith.constant 0 : index
    %c0_85 = arith.constant 0 : index
    %c2_86 = arith.constant 2 : index
    %c2_87 = arith.constant 2 : index
    %c8_88 = arith.constant 8 : index
    %55 = vector.load %arg2[%c0_84, %c0_85, %c2_86, %c2_87, %c8_88] : memref<1x1x10x10x16xbf16, #tpu.memory_space<vmem>>, vector<1x1x8x8x8xbf16>
    %56 = vector.shape_cast %55 : vector<1x1x8x8x8xbf16> to vector<8x8x8xbf16>
    %57 = vector.shape_cast %56 : vector<8x8x8xbf16> to vector<64x8xbf16>
    %58 = tpu.concatenate %33, %36, %39, %42, %45, %48, %51, %54, %57 in 1 : vector<64x8xbf16>, vector<64x8xbf16>, vector<64x8xbf16>, vector<64x8xbf16>, vector<64x8xbf16>, vector<64x8xbf16>, vector<64x8xbf16>, vector<64x8xbf16>, vector<64x8xbf16> -> vector<64x72xbf16>
    %c1_89 = arith.constant 1 : index
    %c0_90 = arith.constant 0 : index
    %c0_91 = arith.constant 0 : index
    %59 = vector.load %arg3[%c1_89, %c0_90, %c0_91] : memref<2x72x8xbf16, #tpu.memory_space<vmem>>, vector<1x72x8xbf16>
    %60 = vector.shape_cast %59 : vector<1x72x8xbf16> to vector<72x8xbf16>
    %cst_92 = arith.constant dense<0.000000e+00> : vector<64x8xf32>
    %61 = tpu.matmul %58, %60, %cst_92 {dimension_numbers = #tpu.dot_dimension_numbers<[1], [0], [0], [1], [0, 0, 1, 1], [], []>} : vector<64x72xbf16>, vector<72x8xbf16>, vector<64x8xf32> -> vector<64x8xf32>
    %62 = tpu.concatenate %30, %61 in 1 : vector<64x8xf32>, vector<64x8xf32> -> vector<64x16xf32>
    %c0_93 = arith.constant 0 : index
    %c0_94 = arith.constant 0 : index
    %c0_95 = arith.constant 0 : index
    %63 = vector.load %arg4[%c0_93, %c0_94, %c0_95] : memref<1x1x16xf32, #tpu.memory_space<vmem>>, vector<1x1x16xf32>
    %64 = vector.shape_cast %63 : vector<1x1x16xf32> to vector<1x16xf32>
    %65 = vector.broadcast %64 : vector<1x16xf32> to vector<64x16xf32>
    %66 = arith.mulf %62, %65 : vector<64x16xf32>
    %c0_96 = arith.constant 0 : index
    %c0_97 = arith.constant 0 : index
    %c0_98 = arith.constant 0 : index
    %67 = vector.load %arg5[%c0_96, %c0_97, %c0_98] : memref<1x1x16xf32, #tpu.memory_space<vmem>>, vector<1x1x16xf32>
    %68 = vector.shape_cast %67 : vector<1x1x16xf32> to vector<1x16xf32>
    %69 = vector.broadcast %68 : vector<1x16xf32> to vector<64x16xf32>
    %70 = arith.addf %66, %69 : vector<64x16xf32>
    %cst_99 = arith.constant 0.000000e+00 : f32
    %71 = vector.broadcast %cst_99 : f32 to vector<64x16xf32>
    %72 = arith.maximumf %70, %71 : vector<64x16xf32>
    %73 = arith.truncf %72 : vector<64x16xf32> to vector<64x16xbf16>
    %c0_100 = arith.constant 0 : index
    %c0_101 = arith.constant 0 : index
    %c0_102 = arith.constant 0 : index
    %74 = vector.load %arg6[%c0_100, %c0_101, %c0_102] : memref<1x64x16xbf16, #tpu.memory_space<vmem>>, vector<1x64x16xbf16>
    %75 = vector.shape_cast %74 : vector<1x64x16xbf16> to vector<64x16xbf16>
    %76 = vector.shape_cast %73 : vector<64x16xbf16> to vector<1x64x16xbf16>
    tpu.vector_store %arg6[%c0_100, %c0_101, %c0_102], %76 {strides = array<i32>} : memref<1x64x16xbf16, #tpu.memory_space<vmem>>, vector<1x64x16xbf16>,
    %cst_103 = arith.constant dense<0.000000e+00> : vector<16xf32>
    %77 = vector.multi_reduction <add>, %72, %cst_103 [0] : vector<64x16xf32> to vector<16xf32>
    %78 = vector.shape_cast %77 : vector<16xf32> to vector<1x16xf32>
    %cst_104 = arith.constant 1.562500e-02 : f32
    %79 = vector.broadcast %cst_104 : f32 to vector<1x16xf32>
    %80 = arith.mulf %78, %79 : vector<1x16xf32>
    %c0_105 = arith.constant 0 : index
    %c0_106 = arith.constant 0 : index
    %c0_107 = arith.constant 0 : index
    %81 = vector.load %arg7[%c0_105, %c0_106, %c0_107] : memref<1x1x16xf32, #tpu.memory_space<vmem>>, vector<1x1x16xf32>
    %82 = vector.shape_cast %81 : vector<1x1x16xf32> to vector<1x16xf32>
    %83 = vector.shape_cast %80 : vector<1x16xf32> to vector<1x1x16xf32>
    tpu.vector_store %arg7[%c0_105, %c0_106, %c0_107], %83 {strides = array<i32>} : memref<1x1x16xf32, #tpu.memory_space<vmem>>, vector<1x1x16xf32>,
    return
  }
  func.func @transform_0(%arg0: i32, %arg1: i32) -> (i32, i32, i32, i32, i32) {
    %c0_i32 = arith.constant 0 : i32
    %c0_i32_0 = arith.constant 0 : i32
    %c0_i32_1 = arith.constant 0 : i32
    %c0_i32_2 = arith.constant 0 : i32
    return %c0_i32, %arg1, %c0_i32_0, %c0_i32_1, %arg0 : i32, i32, i32, i32, i32
  }
  func.func @transform_1(%arg0: i32, %arg1: i32) -> (i32, i32, i32) {
    %c0_i32 = arith.constant 0 : i32
    %c0_i32_0 = arith.constant 0 : i32
    %c0_i32_1 = arith.constant 0 : i32
    return %arg0, %c0_i32, %c0_i32_0 : i32, i32, i32
  }
  func.func @transform_2(%arg0: i32, %arg1: i32) -> (i32, i32, i32) {
    %c0_i32 = arith.constant 0 : i32
    %c0_i32_0 = arith.constant 0 : i32
    %c0_i32_1 = arith.constant 0 : i32
    return %c0_i32, %c0_i32_0, %arg0 : i32, i32, i32
  }
  func.func @transform_3(%arg0: i32, %arg1: i32) -> (i32, i32, i32) {
    %c0_i32 = arith.constant 0 : i32
    %c0_i32_0 = arith.constant 0 : i32
    %c0_i32_1 = arith.constant 0 : i32
    return %c0_i32, %c0_i32_0, %arg0 : i32, i32, i32
  }
  func.func @transform_4(%arg0: i32, %arg1: i32) -> (i32, i32, i32) {
    %c0_i32 = arith.constant 0 : i32
    %c0_i32_0 = arith.constant 0 : i32
    return %arg1, %c0_i32, %arg0 : i32, i32, i32
  }
  func.func @transform_5(%arg0: i32, %arg1: i32) -> (i32, i32, i32) {
    %c0_i32 = arith.constant 0 : i32
    %c0_i32_0 = arith.constant 0 : i32
    return %arg1, %c0_i32, %arg0 : i32, i32, i32
  }
}

</mosaic_0001>

<bundles_post_ra>
// kernel: a_call__.9
= control target key start
LH: loop header
LB: loop body
LE: loop exit
PB: predicated region body
PF: predicated region fallthrough
CT: control target
= control target key end

     0   :  { %vm137_vm0 = vcmask 1043456   ;;  %vm112_vm1 = vcmask 64512   ;;  %vm22_vm2 = vcmask 130048   ;;  %v511_v1 = vmov 0.0   ;;  %s713_s1 = inlined_call_operand.vmem [shape: bf16[8,16], index: 1, kind: input, shape index: {}]   ;;  %s714_s0 = inlined_call_operand.vmem [shape: bf16[128,8], index: 0, kind: input, shape index: {}]   ;;  %s715_s2 = inlined_call_operand.vmem [shape: f32[1,16], index: 2, kind: input, shape index: {}]   ;;  %s716_s3 = inlined_call_operand.vmem [shape: f32[1,16], index: 3, kind: input, shape index: {}]   ;;  %s717_s4 = inlined_call_operand.vmem [shape: bf16[128,16], index: 4, kind: output, shape index: {}]  }
   0x1   :  { %v71_v0 = vld [vmem:[%s713_s1] sm:$0xf]  ;;  %25 = vst.msk [vmem:[#allocation2 + $0x10] sm:$0xff] %vm22_vm2, %v511_v1  ;;  %23 = vst.msk [vmem:[#allocation2] sm:$0xff] %vm22_vm2, %v511_v1  ;;  %v505_v5 = vld [vmem:[%s714_s0 + $0x8] sm:$0xff]   ;;  %vm400_vm3 = vcmask 125952  }
   0x2   :  { %24 = vst.msk [vmem:[#allocation2 + $0x8] sm:$0xff] %vm22_vm2, %v511_v1  ;;  %26 = vst.msk [vmem:[#allocation2 + $0x18] sm:$0xff] %vm22_vm2, %v511_v1  ;;  %500 = vmatprep.subr.msk.bf16.mxu0 %vm137_vm0, %v71_v0  ;;  %501 = vmatprep.subr.msk.bf16.mxu1 %vm137_vm0, %v71_v0  ;;  %v139_v2 = vsel %vm137_vm0, %v71_v0, 0  ;;  %v503_v3 = vld [vmem:[%s714_s0] sm:$0xff]   ;;  %v506_v6 = vld [vmem:[%s714_s0 + $0x28] sm:$0xff]  }
   0x3   :  { %27 = vst.msk [vmem:[#allocation2 + $0x20] sm:$0xff] %vm22_vm2, %v511_v1  ;;  %28 = vst.msk [vmem:[#allocation2 + $0x28] sm:$0xff] %vm22_vm2, %v511_v1  ;;  %481 = vmatpush3.bf16.msra.mxu0 %v139_v2  ;;  %499 = vmatpush3.bf16.msra.mxu1 %v139_v2  ;;  %v504_v4 = vld [vmem:[%s714_s0 + $0x20] sm:$0xff]   ;;  %v507_v7 = vld [vmem:[%s714_s0 + $0x10] sm:$0xff]  }
   0x4   :  { %29 = vst.msk [vmem:[#allocation2 + $0x30] sm:$0xff] %vm22_vm2, %v511_v1  ;;  %30 = vst.msk [vmem:[#allocation2 + $0x38] sm:$0xff] %vm22_vm2, %v511_v1  ;;  %482 = vmatprep.mubr.msk.bf16.mxu0 %vm112_vm1, %v503_v3  ;;  %490 = vmatprep.mubr.msk.bf16.mxu1 %vm112_vm1, %v504_v4  ;;  %v508_v8 = vld [vmem:[%s714_s0 + $0x30] sm:$0xff]   ;;  %v509_v9 = vld [vmem:[%s714_s0 + $0x18] sm:$0xff]  }
   0x5   :  { %31 = vst.msk [vmem:[#allocation2 + $0x40] sm:$0xff] %vm22_vm2, %v511_v1  ;;  %32 = vst.msk [vmem:[#allocation2 + $0x48] sm:$0xff] %vm22_vm2, %v511_v1  ;;  %v510_v10 = vld [vmem:[%s714_s0 + $0x38] sm:$0xff]   ;;  %v599_v36 = vld [vmem:[%s715_s2] ss:$0 sm:$0xff] }
   0x6   :  { %33 = vst.msk [vmem:[#allocation2 + $0x50] sm:$0xff] %vm22_vm2, %v511_v1  ;;  %34 = vst.msk [vmem:[#allocation2 + $0x58] sm:$0xff] %vm22_vm2, %v511_v1  ;;  %483 = vmatmul.mubr.msk.bf16.vlgmr.msra.gmra.mxu0 %vm112_vm1, %v505_v5  ;;  %491 = vmatmul.mubr.msk.bf16.vlgmr.msra.gmra.mxu1 %vm112_vm1, %v506_v6  ;;  %v606_v44 = vld [vmem:[%s716_s3] ss:$0 sm:$0xff] }
   0x7   :  { %35 = vst.msk [vmem:[#allocation2 + $0x60] sm:$0xff] %vm22_vm2, %v511_v1  ;;  %36 = vst.msk [vmem:[#allocation2 + $0x68] sm:$0xff] %vm22_vm2, %v511_v1  ;;  %486 = vmatprep.mubr.msk.bf16.mxu0 %vm112_vm1, %v507_v7  ;;  %494 = vmatprep.mubr.msk.bf16.mxu1 %vm112_vm1, %v508_v8 }
   0x8   :  { %37 = vst.msk [vmem:[#allocation2 + $0x70] sm:$0xff] %vm22_vm2, %v511_v1  ;;  %38 = vst.msk [vmem:[#allocation2 + $0x78] sm:$0xff] %vm22_vm2, %v511_v1  ;;  %v41_v11 = vld [vmem:[#allocation2 + $0x10] sm:$0xff]  ;;  %v39_v14 = vld [vmem:[#allocation2] sm:$0xff] }
   0x9   :  { %v42_v20 = vld [vmem:[#allocation2 + $0x18] sm:$0xff]  ;;  %v40_v26 = vld [vmem:[#allocation2 + $0x8] sm:$0xff] }
   0xa   :  { %v43_v39 = vld [vmem:[#allocation2 + $0x20] sm:$0xff]  ;;  %v44_v57 = vld [vmem:[#allocation2 + $0x28] sm:$0xff] }
   0xb   :  { %v45_v32 = vld [vmem:[#allocation2 + $0x30] sm:$0xff]  ;;  %v46_v47 = vld [vmem:[#allocation2 + $0x38] sm:$0xff] }
   0xc   :  { %v47_v17 = vld [vmem:[#allocation2 + $0x40] sm:$0xff]  ;;  %v48_v29 = vld [vmem:[#allocation2 + $0x48] sm:$0xff] }
   0xd   :  { %v49_v12 = vld [vmem:[#allocation2 + $0x50] sm:$0xff]  ;;  %v50_v23 = vld [vmem:[#allocation2 + $0x58] sm:$0xff] }
   0xe   :  { %487 = vmatmul.mubr.msk.bf16.gmra.mxu0 %vm112_vm1, %v509_v9  ;;  %495 = vmatmul.mubr.msk.bf16.gmra.mxu1 %vm112_vm1, %v510_v10  ;;  %v51_v42 = vld [vmem:[#allocation2 + $0x60] sm:$0xff]  ;;  %v52_v63 = vld [vmem:[#allocation2 + $0x68] sm:$0xff] }
   0xf   :  { %v53_v35 = vld [vmem:[#allocation2 + $0x70] sm:$0xff]  ;;  %v54_v52 = vld [vmem:[#allocation2 + $0x78] sm:$0xff] }
  0xc6   :  { %v484_v13 = vpop.f32.mrf.mxu0  ;;  %v492_v16 = vpop.f32.mrf.mxu1 }
  0xc7   :  { %v240_v15 = vadd.f32 %v484_v13, %v41_v11  ;;  %v248_v18 = vadd.f32 %v492_v16, %v49_v12 }
  0xc8   :  { %v175_v19 = vpop.f32.mrf.mxu0  ;;  %v207_v22 = vpop.f32.mrf.mxu1 }
  0xc9   :  { %257 = vst.msk [vmem:[#allocation2 + $0x10] sm:$0xff] %vm22_vm2, %v240_v15  ;;  %v238_v21 = vadd.f32 %v175_v19, %v39_v14  ;;  %265 = vst.msk [vmem:[#allocation2 + $0x50] sm:$0xff] %vm22_vm2, %v248_v18  ;;  %v246_v24 = vadd.f32 %v207_v22, %v47_v17 }
  0xca   :  { %v485_v25 = vpop.f32.mrf.mxu0  ;;  %v493_v28 = vpop.f32.mrf.mxu1 }
  0xcb   :  { %255 = vst.msk [vmem:[#allocation2] sm:$0xff] %vm22_vm2, %v238_v21  ;;  %v241_v27 = vadd.f32 %v485_v25, %v42_v20  ;;  %263 = vst.msk [vmem:[#allocation2 + $0x40] sm:$0xff] %vm22_vm2, %v246_v24  ;;  %v249_v30 = vadd.f32 %v493_v28, %v50_v23 }
  0xcc   :  { %v178_v31 = vpop.f32.mrf.mxu0  ;;  %v210_v34 = vpop.f32.mrf.mxu1 }
  0xcd   :  { %258 = vst.msk [vmem:[#allocation2 + $0x18] sm:$0xff] %vm22_vm2, %v241_v27  ;;  %v239_v33 = vadd.f32 %v178_v31, %v40_v26  ;;  %266 = vst.msk [vmem:[#allocation2 + $0x58] sm:$0xff] %vm22_vm2, %v249_v30  ;;  %v247_v37 = vadd.f32 %v210_v34, %v48_v29 }
  0xce   :  { %v488_v38 = vpop.f32.mrf.mxu0  ;;  %v496_v41 = vpop.f32.mrf.mxu1 }
  0xcf   :  { %256 = vst.msk [vmem:[#allocation2 + $0x8] sm:$0xff] %vm22_vm2, %v239_v33  ;;  %v244_v40 = vadd.f32 %v488_v38, %v45_v32  ;;  %264 = vst.msk [vmem:[#allocation2 + $0x48] sm:$0xff] %vm22_vm2, %v247_v37  ;;  %v252_v45 = vadd.f32 %v496_v41, %v53_v35 }
  0xd0   :  { %v276_v43 = vld [vmem:[#allocation2 + $0x10] sm:$0xff]  ;;  %v191_v46 = vpop.f32.mrf.mxu0  ;;  %v223_v51 = vpop.f32.mrf.mxu1 }
  0xd1   :  { %v299_v48 = vmul.f32 %v599_v36, %v276_v43  ;;  %v284_v49 = vld [vmem:[#allocation2 + $0x50] sm:$0xff]  ;;  %261 = vst.msk [vmem:[#allocation2 + $0x30] sm:$0xff] %vm22_vm2, %v244_v40  ;;  %v242_v50 = vadd.f32 %v191_v46, %v43_v39  ;;  %269 = vst.msk [vmem:[#allocation2 + $0x70] sm:$0xff] %vm22_vm2, %v252_v45  ;;  %v250_v55 = vadd.f32 %v223_v51, %v51_v42 }
  0xd2   :  { %v307_v53 = vmul.f32 %v599_v36, %v284_v49  ;;  %v274_v54 = vld [vmem:[#allocation2] sm:$0xff]  ;;  %v489_v56 = vpop.f32.mrf.mxu0  ;;  %v497_v62 = vpop.f32.mrf.mxu1 }
  0xd3   :  { %v322_v58 = vadd.f32 %v606_v44, %v299_v48  ;;  %v297_v59 = vmul.f32 %v599_v36, %v274_v54  ;;  %v282_v60 = vld [vmem:[#allocation2 + $0x40] sm:$0xff]  ;;  %259 = vst.msk [vmem:[#allocation2 + $0x20] sm:$0xff] %vm22_vm2, %v242_v50  ;;  %v245_v61 = vadd.f32 %v489_v56, %v46_v47  ;;  %267 = vst.msk [vmem:[#allocation2 + $0x60] sm:$0xff] %vm22_vm2, %v250_v55 }
  0xd4   :  { %v330_v0 = vadd.f32 %v606_v44, %v307_v53  ;;  %v305_v1 = vmul.f32 %v599_v36, %v282_v60  ;;  %v277_v2 = vld [vmem:[#allocation2 + $0x18] sm:$0xff]  ;;  %v253_v3 = vadd.f32 %v497_v62, %v54_v52  ;;  %v194_v4 = vpop.f32.mrf.mxu0  ;;  %v226_v10 = vpop.f32.mrf.mxu1 }
  0xd5   :  { %v457_v5 = vpack.c.bf16 %v322_v58, %v322_v58  ;;  %v320_v6 = vadd.f32 %v606_v44, %v297_v59  ;;  %v300_v7 = vmul.f32 %v599_v36, %v277_v2  ;;  %v285_v8 = vld [vmem:[#allocation2 + $0x58] sm:$0xff]  ;;  %262 = vst.msk [vmem:[#allocation2 + $0x38] sm:$0xff] %vm22_vm2, %v245_v61  ;;  %v243_v9 = vadd.f32 %v194_v4, %v44_v57 }
  0xd6   :  { %v465_v11 = vpack.c.bf16 %v330_v0, %v330_v0  ;;  %v328_v12 = vadd.f32 %v606_v44, %v305_v1  ;;  %v308_v13 = vmul.f32 %v599_v36, %v285_v8  ;;  %v275_v14 = vld [vmem:[#allocation2 + $0x8] sm:$0xff]  ;;  %270 = vst.msk [vmem:[#allocation2 + $0x78] sm:$0xff] %vm22_vm2, %v253_v3  ;;  %v251_v15 = vadd.f32 %v226_v10, %v52_v63 }
  0xd7   :  { %403 = vst.msk [vmem:[%s717_s4 + $0x8] sm:$0xf] %vm400_vm3, %v457_v5  ;;  %v455_v16 = vpack.c.bf16 %v320_v6, %v320_v6  ;;  %v323_v17 = vadd.f32 %v606_v44, %v300_v7  ;;  %v298_v18 = vmul.f32 %v599_v36, %v275_v14  ;;  %v283_v19 = vld [vmem:[#allocation2 + $0x48] sm:$0xff] }
  0xd8   :  { %260 = vst.msk [vmem:[#allocation2 + $0x28] sm:$0xff] %vm22_vm2, %v243_v9  ;;  %v463_v20 = vpack.c.bf16 %v328_v12, %v328_v12  ;;  %v331_v21 = vadd.f32 %v606_v44, %v308_v13  ;;  %v306_v22 = vmul.f32 %v599_v36, %v283_v19  ;;  %v280_v23 = vld [vmem:[#allocation2 + $0x30] sm:$0xff]  ;;  %268 = vst.msk [vmem:[#allocation2 + $0x68] sm:$0xff] %vm22_vm2, %v251_v15 }
  0xd9   :  { %411 = vst.msk [vmem:[%s717_s4 + $0x28] sm:$0xf] %vm400_vm3, %v465_v11  ;;  %401 = vst.msk [vmem:[%s717_s4] sm:$0xf] %vm400_vm3, %v455_v16  ;;  %v458_v24 = vpack.c.bf16 %v323_v17, %v323_v17  ;;  %v321_v25 = vadd.f32 %v606_v44, %v298_v18  ;;  %v303_v26 = vmul.f32 %v599_v36, %v280_v23  ;;  %v288_v27 = vld [vmem:[#allocation2 + $0x70] sm:$0xff] }
  0xda   :  { %409 = vst.msk [vmem:[%s717_s4 + $0x20] sm:$0xf] %vm400_vm3, %v463_v20  ;;  %v466_v28 = vpack.c.bf16 %v331_v21, %v331_v21  ;;  %v329_v29 = vadd.f32 %v606_v44, %v306_v22  ;;  %v311_v30 = vmul.f32 %v599_v36, %v288_v27  ;;  %v278_v31 = vld [vmem:[#allocation2 + $0x20] sm:$0xff] }
  0xdb   :  { %404 = vst.msk [vmem:[%s717_s4 + $0xc] sm:$0xf] %vm400_vm3, %v458_v24  ;;  %v456_v32 = vpack.c.bf16 %v321_v25, %v321_v25  ;;  %v326_v33 = vadd.f32 %v606_v44, %v303_v26  ;;  %v301_v34 = vmul.f32 %v599_v36, %v278_v31  ;;  %v286_v35 = vld [vmem:[#allocation2 + $0x60] sm:$0xff] }
  0xdc   :  { %412 = vst.msk [vmem:[%s717_s4 + $0x2c] sm:$0xf] %vm400_vm3, %v466_v28  ;;  %v464_v37 = vpack.c.bf16 %v329_v29, %v329_v29  ;;  %v334_v38 = vadd.f32 %v606_v44, %v311_v30  ;;  %v309_v39 = vmul.f32 %v599_v36, %v286_v35  ;;  %v281_v40 = vld [vmem:[#allocation2 + $0x38] sm:$0xff] }
  0xdd   :  { %402 = vst.msk [vmem:[%s717_s4 + $0x4] sm:$0xf] %vm400_vm3, %v456_v32  ;;  %v461_v41 = vpack.c.bf16 %v326_v33, %v326_v33  ;;  %v324_v42 = vadd.f32 %v606_v44, %v301_v34  ;;  %v304_v43 = vmul.f32 %v599_v36, %v281_v40  ;;  %v289_v45 = vld [vmem:[#allocation2 + $0x78] sm:$0xff] }
  0xde   :  { %410 = vst.msk [vmem:[%s717_s4 + $0x24] sm:$0xf] %vm400_vm3, %v464_v37  ;;  %v469_v46 = vpack.c.bf16 %v334_v38, %v334_v38  ;;  %v332_v47 = vadd.f32 %v606_v44, %v309_v39  ;;  %v312_v48 = vmul.f32 %v599_v36, %v289_v45 }
  0xdf   :  { %v279_v49 = vld [vmem:[#allocation2 + $0x28] sm:$0xff]  ;;  %407 = vst.msk [vmem:[%s717_s4 + $0x18] sm:$0xf] %vm400_vm3, %v461_v41  ;;  %v459_v50 = vpack.c.bf16 %v324_v42, %v324_v42  ;;  %v327_v51 = vadd.f32 %v606_v44, %v304_v43 }
  0xe0   :  { %v302_v52 = vmul.f32 %v599_v36, %v279_v49  ;;  %v287_v53 = vld [vmem:[#allocation2 + $0x68] sm:$0xff]  ;;  %415 = vst.msk [vmem:[%s717_s4 + $0x38] sm:$0xf] %vm400_vm3, %v469_v46  ;;  %v467_v54 = vpack.c.bf16 %v332_v47, %v332_v47  ;;  %v335_v55 = vadd.f32 %v606_v44, %v312_v48 }
  0xe1   :  { %v310_v56 = vmul.f32 %v599_v36, %v287_v53  ;;  %405 = vst.msk [vmem:[%s717_s4 + $0x10] sm:$0xf] %vm400_vm3, %v459_v50  ;;  %v462_v57 = vpack.c.bf16 %v327_v51, %v327_v51 }
  0xe2   :  { %v325_v58 = vadd.f32 %v606_v44, %v302_v52  ;;  %413 = vst.msk [vmem:[%s717_s4 + $0x30] sm:$0xf] %vm400_vm3, %v467_v54  ;;  %v470_v59 = vpack.c.bf16 %v335_v55, %v335_v55 }
  0xe3   :  { %v333_v60 = vadd.f32 %v606_v44, %v310_v56  ;;  %408 = vst.msk [vmem:[%s717_s4 + $0x1c] sm:$0xf] %vm400_vm3, %v462_v57 }
  0xe4   :  { %v460_v36 = vpack.c.bf16 %v325_v58, %v325_v58  ;;  %416 = vst.msk [vmem:[%s717_s4 + $0x3c] sm:$0xf] %vm400_vm3, %v470_v59 }
  0xe5   :  { %v468_v61 = vpack.c.bf16 %v333_v60, %v333_v60 }
  0xe6   :  { %406 = vst.msk [vmem:[%s717_s4 + $0x14] sm:$0xf] %vm400_vm3, %v460_v36 }
  0xe7   :  { %414 = vst.msk [vmem:[%s717_s4 + $0x34] sm:$0xf] %vm400_vm3, %v468_v61 }

// kernel: a_call__.7
= control target key start
LH: loop header
LB: loop body
LE: loop exit
PB: predicated region body
PF: predicated region fallthrough
CT: control target
= control target key end

     0   :  { %vm473_vm0 = vcmask 1043456   ;;  %vm376_vm1 = vcmask 64512   ;;  %vm22_vm2 = vcmask 130048   ;;  %v1825_v1 = vmov 0.0   ;;  %s2676_s1 = inlined_call_operand.vmem [shape: bf16[8,16], index: 1, kind: input, shape index: {}]   ;;  %s2677_s0 = inlined_call_operand.vmem [shape: bf16[512,8], index: 0, kind: input, shape index: {}]   ;;  %s2678_s2 = inlined_call_operand.vmem [shape: f32[1,16], index: 2, kind: input, shape index: {}]   ;;  %s2679_s3 = inlined_call_operand.vmem [shape: f32[1,16], index: 3, kind: input, shape index: {}]   ;;  %s2680_s4 = inlined_call_operand.vmem [shape: bf16[512,16], index: 4, kind: output, shape index: {}]  }
   0x1   :  { %v1854_v0 = vld [vmem:[%s2676_s1] sm:$0xf]  ;;  %25 = vst.msk [vmem:[#allocation2 + $0x10] sm:$0xff] %vm22_vm2, %v1825_v1  ;;  %23 = vst.msk [vmem:[#allocation2] sm:$0xff] %vm22_vm2, %v1825_v1  ;;  %v1793_v5 = vld [vmem:[%s2677_s0 + $0x8] sm:$0xff]   ;;  %vm1424_vm3 = vcmask 125952  }
   0x2   :  { %24 = vst.msk [vmem:[#allocation2 + $0x8] sm:$0xff] %vm22_vm2, %v1825_v1  ;;  %26 = vst.msk [vmem:[#allocation2 + $0x18] sm:$0xff] %vm22_vm2, %v1825_v1  ;;  %1788 = vmatprep.subr.msk.bf16.mxu0 %vm473_vm0, %v1854_v0  ;;  %1789 = vmatprep.subr.msk.bf16.mxu1 %vm473_vm0, %v1854_v0  ;;  %v475_v2 = vsel %vm473_vm0, %v1854_v0, 0  ;;  %v1791_v3 = vld [vmem:[%s2677_s0] sm:$0xff]   ;;  %v1794_v6 = vld [vmem:[%s2677_s0 + $0x88] sm:$0xff]  }
   0x3   :  { %27 = vst.msk [vmem:[#allocation2 + $0x20] sm:$0xff] %vm22_vm2, %v1825_v1  ;;  %28 = vst.msk [vmem:[#allocation2 + $0x28] sm:$0xff] %vm22_vm2, %v1825_v1  ;;  %1721 = vmatpush3.bf16.msra.mxu0 %v475_v2  ;;  %1787 = vmatpush3.bf16.msra.mxu1 %v475_v2  ;;  %v1792_v4 = vld [vmem:[%s2677_s0 + $0x80] sm:$0xff]   ;;  %v1795_v7 = vld [vmem:[%s2677_s0 + $0x10] sm:$0xff]  }
   0x4   :  { %29 = vst.msk [vmem:[#allocation2 + $0x30] sm:$0xff] %vm22_vm2, %v1825_v1  ;;  %30 = vst.msk [vmem:[#allocation2 + $0x38] sm:$0xff] %vm22_vm2, %v1825_v1  ;;  %1722 = vmatprep.mubr.msk.bf16.mxu0 %vm376_vm1, %v1791_v3  ;;  %1754 = vmatprep.mubr.msk.bf16.mxu1 %vm376_vm1, %v1792_v4  ;;  %v1796_v8 = vld [vmem:[%s2677_s0 + $0x90] sm:$0xff]   ;;  %v1797_v9 = vld [vmem:[%s2677_s0 + $0x18] sm:$0xff]  }
   0x5   :  { %31 = vst.msk [vmem:[#allocation2 + $0x40] sm:$0xff] %vm22_vm2, %v1825_v1  ;;  %32 = vst.msk [vmem:[#allocation2 + $0x48] sm:$0xff] %vm22_vm2, %v1825_v1  ;;  %v1798_v10 = vld [vmem:[%s2677_s0 + $0x98] sm:$0xff]   ;;  %v1799_v11 = vld [vmem:[%s2677_s0 + $0x20] sm:$0xff]  }
   0x6   :  { %33 = vst.msk [vmem:[#allocation2 + $0x50] sm:$0xff] %vm22_vm2, %v1825_v1  ;;  %34 = vst.msk [vmem:[#allocation2 + $0x58] sm:$0xff] %vm22_vm2, %v1825_v1  ;;  %1723 = vmatmul.mubr.msk.bf16.vlgmr.msra.gmra.mxu0 %vm376_vm1, %v1793_v5  ;;  %1755 = vmatmul.mubr.msk.bf16.vlgmr.msra.gmra.mxu1 %vm376_vm1, %v1794_v6  ;;  %v1800_v12 = vld [vmem:[%s2677_s0 + $0xa0] sm:$0xff]   ;;  %v1801_v13 = vld [vmem:[%s2677_s0 + $0x28] sm:$0xff]  }
   0x7   :  { %35 = vst.msk [vmem:[#allocation2 + $0x60] sm:$0xff] %vm22_vm2, %v1825_v1  ;;  %36 = vst.msk [vmem:[#allocation2 + $0x68] sm:$0xff] %vm22_vm2, %v1825_v1  ;;  %1726 = vmatprep.mubr.msk.bf16.mxu0 %vm376_vm1, %v1795_v7  ;;  %1758 = vmatprep.mubr.msk.bf16.mxu1 %vm376_vm1, %v1796_v8  ;;  %v1802_v14 = vld [vmem:[%s2677_s0 + $0xa8] sm:$0xff]   ;;  %v1803_v15 = vld [vmem:[%s2677_s0 + $0x30] sm:$0xff]  }
   0x8   :  { %37 = vst.msk [vmem:[#allocation2 + $0x70] sm:$0xff] %vm22_vm2, %v1825_v1  ;;  %38 = vst.msk [vmem:[#allocation2 + $0x78] sm:$0xff] %vm22_vm2, %v1825_v1  ;;  %v1804_v16 = vld [vmem:[%s2677_s0 + $0xb0] sm:$0xff]   ;;  %v1805_v17 = vld [vmem:[%s2677_s0 + $0x38] sm:$0xff]  }
   0x9   :  { %39 = vst.msk [vmem:[#allocation2 + $0x80] sm:$0xff] %vm22_vm2, %v1825_v1  ;;  %40 = vst.msk [vmem:[#allocation2 + $0x88] sm:$0xff] %vm22_vm2, %v1825_v1  ;;  %v1806_v18 = vld [vmem:[%s2677_s0 + $0xb8] sm:$0xff]   ;;  %v1807_v19 = vld [vmem:[%s2677_s0 + $0x40] sm:$0xff]  }
   0xa   :  { %41 = vst.msk [vmem:[#allocation2 + $0x90] sm:$0xff] %vm22_vm2, %v1825_v1  ;;  %42 = vst.msk [vmem:[#allocation2 + $0x98] sm:$0xff] %vm22_vm2, %v1825_v1  ;;  %v1808_v20 = vld [vmem:[%s2677_s0 + $0xc0] sm:$0xff]   ;;  %v1809_v21 = vld [vmem:[%s2677_s0 + $0x48] sm:$0xff]  }
   0xb   :  { %43 = vst.msk [vmem:[#allocation2 + $0xa0] sm:$0xff] %vm22_vm2, %v1825_v1  ;;  %44 = vst.msk [vmem:[#allocation2 + $0xa8] sm:$0xff] %vm22_vm2, %v1825_v1  ;;  %v1810_v22 = vld [vmem:[%s2677_s0 + $0xc8] sm:$0xff]   ;;  %v1811_v23 = vld [vmem:[%s2677_s0 + $0x50] sm:$0xff]  }
   0xc   :  { %45 = vst.msk [vmem:[#allocation2 + $0xb0] sm:$0xff] %vm22_vm2, %v1825_v1  ;;  %46 = vst.msk [vmem:[#allocation2 + $0xb8] sm:$0xff] %vm22_vm2, %v1825_v1  ;;  %v1812_v24 = vld [vmem:[%s2677_s0 + $0xd0] sm:$0xff]   ;;  %v1813_v25 = vld [vmem:[%s2677_s0 + $0x58] sm:$0xff]  }
   0xd   :  { %47 = vst.msk [vmem:[#allocation2 + $0xc0] sm:$0xff] %vm22_vm2, %v1825_v1  ;;  %48 = vst.msk [vmem:[#allocation2 + $0xc8] sm:$0xff] %vm22_vm2, %v1825_v1  ;;  %v1814_v26 = vld [vmem:[%s2677_s0 + $0xd8] sm:$0xff]   ;;  %v1815_v27 = vld [vmem:[%s2677_s0 + $0x60] sm:$0xff]  }
   0xe   :  { %49 = vst.msk [vmem:[#allocation2 + $0xd0] sm:$0xff] %vm22_vm2, %v1825_v1  ;;  %50 = vst.msk [vmem:[#allocation2 + $0xd8] sm:$0xff] %vm22_vm2, %v1825_v1  ;;  %1727 = vmatmul.mubr.msk.bf16.gmra.mxu0 %vm376_vm1, %v1797_v9  ;;  %1759 = vmatmul.mubr.msk.bf16.gmra.mxu1 %vm376_vm1, %v1798_v10  ;;  %v1816_v28 = vld [vmem:[%s2677_s0 + $0xe0] sm:$0xff]   ;;  %v1817_v29 = vld [vmem:[%s2677_s0 + $0x68] sm:$0xff]  }
   0xf   :  { %51 = vst.msk [vmem:[#allocation2 + $0xe0] sm:$0xff] %vm22_vm2, %v1825_v1  ;;  %52 = vst.msk [vmem:[#allocation2 + $0xe8] sm:$0xff] %vm22_vm2, %v1825_v1  ;;  %1730 = vmatprep.mubr.msk.bf16.mxu0 %vm376_vm1, %v1799_v11  ;;  %1762 = vmatprep.mubr.msk.bf16.mxu1 %vm376_vm1, %v1800_v12  ;;  %v1818_v30 = vld [vmem:[%s2677_s0 + $0xe8] sm:$0xff]   ;;  %v1819_v31 = vld [vmem:[%s2677_s0 + $0x70] sm:$0xff]  }
  0x10   :  { %53 = vst.msk [vmem:[#allocation2 + $0xf0] sm:$0xff] %vm22_vm2, %v1825_v1  ;;  %54 = vst.msk [vmem:[#allocation2 + $0xf8] sm:$0xff] %vm22_vm2, %v1825_v1  ;;  %v1820_v32 = vld [vmem:[%s2677_s0 + $0xf0] sm:$0xff]   ;;  %v1821_v33 = vld [vmem:[%s2677_s0 + $0x78] sm:$0xff]  }
  0x11   :  { %55 = vst.msk [vmem:[#allocation2 + $0x100] sm:$0xff] %vm22_vm2, %v1825_v1  ;;  %56 = vst.msk [vmem:[#allocation2 + $0x108] sm:$0xff] %vm22_vm2, %v1825_v1  ;;  %v1822_v34 = vld [vmem:[%s2677_s0 + $0xf8] sm:$0xff]   ;;  %v89_v35 = vld [vmem:[#allocation2 + $0x10] sm:$0xff] }
  0x12   :  { %57 = vst.msk [vmem:[#allocation2 + $0x110] sm:$0xff] %vm22_vm2, %v1825_v1  ;;  %58 = vst.msk [vmem:[#allocation2 + $0x118] sm:$0xff] %vm22_vm2, %v1825_v1  ;;  %v87_v38 = vld [vmem:[#allocation2] sm:$0xff]  ;;  %v90_v44 = vld [vmem:[#allocation2 + $0x18] sm:$0xff] }
  0x13   :  { %59 = vst.msk [vmem:[#allocation2 + $0x120] sm:$0xff] %vm22_vm2, %v1825_v1  ;;  %60 = vst.msk [vmem:[#allocation2 + $0x128] sm:$0xff] %vm22_vm2, %v1825_v1  ;;  %v88_v50 = vld [vmem:[#allocation2 + $0x8] sm:$0xff]  ;;  %v93_v56 = vld [vmem:[#allocation2 + $0x30] sm:$0xff] }
  0x14   :  { %61 = vst.msk [vmem:[#allocation2 + $0x130] sm:$0xff] %vm22_vm2, %v1825_v1  ;;  %62 = vst.msk [vmem:[#allocation2 + $0x138] sm:$0xff] %vm22_vm2, %v1825_v1  ;;  %v2126_v60 = vld [vmem:[%s2678_s2] ss:$0 sm:$0xff]  ;;  %v94_v7 = vld [vmem:[#allocation2 + $0x38] sm:$0xff] }
  0x15   :  { %63 = vst.msk [vmem:[#allocation2 + $0x140] sm:$0xff] %vm22_vm2, %v1825_v1  ;;  %64 = vst.msk [vmem:[#allocation2 + $0x148] sm:$0xff] %vm22_vm2, %v1825_v1  ;;  %v91_v63 = vld [vmem:[#allocation2 + $0x20] sm:$0xff] }
  0x16   :  { %65 = vst.msk [vmem:[#allocation2 + $0x150] sm:$0xff] %vm22_vm2, %v1825_v1  ;;  %66 = vst.msk [vmem:[#allocation2 + $0x158] sm:$0xff] %vm22_vm2, %v1825_v1  ;;  %1731 = vmatmul.mubr.msk.bf16.gmra.mxu0 %vm376_vm1, %v1801_v13  ;;  %1763 = vmatmul.mubr.msk.bf16.gmra.mxu1 %vm376_vm1, %v1802_v14  ;;  %v2133_v4 = vld [vmem:[%s2679_s3] ss:$0 sm:$0xff] }
  0x17   :  { %67 = vst.msk [vmem:[#allocation2 + $0x160] sm:$0xff] %vm22_vm2, %v1825_v1  ;;  %68 = vst.msk [vmem:[#allocation2 + $0x168] sm:$0xff] %vm22_vm2, %v1825_v1  ;;  %1734 = vmatprep.mubr.msk.bf16.mxu0 %vm376_vm1, %v1803_v15  ;;  %1766 = vmatprep.mubr.msk.bf16.mxu1 %vm376_vm1, %v1804_v16 }
  0x18   :  { %69 = vst.msk [vmem:[#allocation2 + $0x170] sm:$0xff] %vm22_vm2, %v1825_v1  ;;  %70 = vst.msk [vmem:[#allocation2 + $0x178] sm:$0xff] %vm22_vm2, %v1825_v1  ;;  %v119_v41 = vld [vmem:[#allocation2 + $0x100] sm:$0xff]  ;;  %v120_v53 = vld [vmem:[#allocation2 + $0x108] sm:$0xff] }
  0x19   :  { %71 = vst.msk [vmem:[#allocation2 + $0x180] sm:$0xff] %vm22_vm2, %v1825_v1  ;;  %72 = vst.msk [vmem:[#allocation2 + $0x188] sm:$0xff] %vm22_vm2, %v1825_v1  ;;  %v121_v36 = vld [vmem:[#allocation2 + $0x110] sm:$0xff]  ;;  %v122_v47 = vld [vmem:[#allocation2 + $0x118] sm:$0xff] }
  0x1a   :  { %73 = vst.msk [vmem:[#allocation2 + $0x190] sm:$0xff] %vm22_vm2, %v1825_v1  ;;  %74 = vst.msk [vmem:[#allocation2 + $0x198] sm:$0xff] %vm22_vm2, %v1825_v1  ;;  %v123_v2 = vld [vmem:[#allocation2 + $0x120] sm:$0xff] }
  0x1b   :  { %75 = vst.msk [vmem:[#allocation2 + $0x1a0] sm:$0xff] %vm22_vm2, %v1825_v1  ;;  %76 = vst.msk [vmem:[#allocation2 + $0x1a8] sm:$0xff] %vm22_vm2, %v1825_v1  ;;  %v125_v59 = vld [vmem:[#allocation2 + $0x130] sm:$0xff]  ;;  %v126_v12 = vld [vmem:[#allocation2 + $0x138] sm:$0xff] }
  0x1c   :  { %77 = vst.msk [vmem:[#allocation2 + $0x1b0] sm:$0xff] %vm22_vm2, %v1825_v1  ;;  %78 = vst.msk [vmem:[#allocation2 + $0x1b8] sm:$0xff] %vm22_vm2, %v1825_v1 }
  0x1d   :  { %79 = vst.msk [vmem:[#allocation2 + $0x1c0] sm:$0xff] %vm22_vm2, %v1825_v1  ;;  %80 = vst.msk [vmem:[#allocation2 + $0x1c8] sm:$0xff] %vm22_vm2, %v1825_v1 }
  0x1e   :  { %81 = vst.msk [vmem:[#allocation2 + $0x1d0] sm:$0xff] %vm22_vm2, %v1825_v1  ;;  %82 = vst.msk [vmem:[#allocation2 + $0x1d8] sm:$0xff] %vm22_vm2, %v1825_v1  ;;  %1735 = vmatmul.mubr.msk.bf16.gmra.mxu0 %vm376_vm1, %v1805_v17  ;;  %1767 = vmatmul.mubr.msk.bf16.gmra.mxu1 %vm376_vm1, %v1806_v18  ;;  %v92_v17 = vld [vmem:[#allocation2 + $0x28] sm:$0xff] }
  0x1f   :  { %83 = vst.msk [vmem:[#allocation2 + $0x1e0] sm:$0xff] %vm22_vm2, %v1825_v1  ;;  %84 = vst.msk [vmem:[#allocation2 + $0x1e8] sm:$0xff] %vm22_vm2, %v1825_v1  ;;  %1738 = vmatprep.mubr.msk.bf16.mxu0 %vm376_vm1, %v1807_v19  ;;  %1770 = vmatprep.mubr.msk.bf16.mxu1 %vm376_vm1, %v1808_v20 }
  0x20   :  { %85 = vst.msk [vmem:[#allocation2 + $0x1f0] sm:$0xff] %vm22_vm2, %v1825_v1  ;;  %86 = vst.msk [vmem:[#allocation2 + $0x1f8] sm:$0xff] %vm22_vm2, %v1825_v1 }
  0x26   :  { %1739 = vmatmul.mubr.msk.bf16.gmra.mxu0 %vm376_vm1, %v1809_v21  ;;  %1771 = vmatmul.mubr.msk.bf16.gmra.mxu1 %vm376_vm1, %v1810_v22 }
  0x27   :  { %1742 = vmatprep.mubr.msk.bf16.mxu0 %vm376_vm1, %v1811_v23  ;;  %1774 = vmatprep.mubr.msk.bf16.mxu1 %vm376_vm1, %v1812_v24  ;;  %v124_v23 = vld [vmem:[#allocation2 + $0x128] sm:$0xff] }
  0x2e   :  { %1743 = vmatmul.mubr.msk.bf16.gmra.mxu0 %vm376_vm1, %v1813_v25  ;;  %1775 = vmatmul.mubr.msk.bf16.gmra.mxu1 %vm376_vm1, %v1814_v26 }
  0x2f   :  { %1746 = vmatprep.mubr.msk.bf16.mxu0 %vm376_vm1, %v1815_v27  ;;  %1778 = vmatprep.mubr.msk.bf16.mxu1 %vm376_vm1, %v1816_v28 }
  0x36   :  { %1747 = vmatmul.mubr.msk.bf16.gmra.mxu0 %vm376_vm1, %v1817_v29  ;;  %1779 = vmatmul.mubr.msk.bf16.gmra.mxu1 %vm376_vm1, %v1818_v30 }
  0x37   :  { %1750 = vmatprep.mubr.msk.bf16.mxu0 %vm376_vm1, %v1819_v31  ;;  %1782 = vmatprep.mubr.msk.bf16.mxu1 %vm376_vm1, %v1820_v32 }
  0x3e   :  { %1751 = vmatmul.mubr.msk.bf16.gmra.mxu0 %vm376_vm1, %v1821_v33  ;;  %1783 = vmatmul.mubr.msk.bf16.gmra.mxu1 %vm376_vm1, %v1822_v34 }
  0xc6   :  { %v1724_v37 = vpop.f32.mrf.mxu0  ;;  %v1756_v40 = vpop.f32.mrf.mxu1 }
  0xc7   :  { %v768_v39 = vadd.f32 %v1724_v37, %v89_v35  ;;  %v800_v42 = vadd.f32 %v1756_v40, %v121_v36 }
  0xc8   :  { %v511_v43 = vpop.f32.mrf.mxu0  ;;  %v639_v46 = vpop.f32.mrf.mxu1 }
  0xc9   :  { %833 = vst.msk [vmem:[#allocation2 + $0x10] sm:$0xff] %vm22_vm2, %v768_v39  ;;  %v766_v45 = vadd.f32 %v511_v43, %v87_v38  ;;  %865 = vst.msk [vmem:[#allocation2 + $0x110] sm:$0xff] %vm22_vm2, %v800_v42  ;;  %v798_v48 = vadd.f32 %v639_v46, %v119_v41 }
  0xca   :  { %v1725_v49 = vpop.f32.mrf.mxu0  ;;  %v1757_v52 = vpop.f32.mrf.mxu1 }
  0xcb   :  { %831 = vst.msk [vmem:[#allocation2] sm:$0xff] %vm22_vm2, %v766_v45  ;;  %v769_v51 = vadd.f32 %v1725_v49, %v90_v44  ;;  %863 = vst.msk [vmem:[#allocation2 + $0x100] sm:$0xff] %vm22_vm2, %v798_v48  ;;  %v801_v54 = vadd.f32 %v1757_v52, %v122_v47 }
  0xcc   :  { %v514_v55 = vpop.f32.mrf.mxu0  ;;  %v642_v58 = vpop.f32.mrf.mxu1 }
  0xcd   :  { %834 = vst.msk [vmem:[#allocation2 + $0x18] sm:$0xff] %vm22_vm2, %v769_v51  ;;  %v767_v57 = vadd.f32 %v514_v55, %v88_v50  ;;  %866 = vst.msk [vmem:[#allocation2 + $0x118] sm:$0xff] %vm22_vm2, %v801_v54  ;;  %v799_v61 = vadd.f32 %v642_v58, %v120_v53 }
  0xce   :  { %v1728_v62 = vpop.f32.mrf.mxu0  ;;  %v1760_v1 = vpop.f32.mrf.mxu1 }
  0xcf   :  { %832 = vst.msk [vmem:[#allocation2 + $0x8] sm:$0xff] %vm22_vm2, %v767_v57  ;;  %v772_v0 = vadd.f32 %v1728_v62, %v93_v56  ;;  %864 = vst.msk [vmem:[#allocation2 + $0x108] sm:$0xff] %vm22_vm2, %v799_v61  ;;  %v804_v5 = vadd.f32 %v1760_v1, %v125_v59 }
  0xd0   :  { %v900_v3 = vld [vmem:[#allocation2 + $0x10] sm:$0xff]  ;;  %v527_v6 = vpop.f32.mrf.mxu0  ;;  %v655_v11 = vpop.f32.mrf.mxu1 }
  0xd1   :  { %v971_v8 = vmul.f32 %v2126_v60, %v900_v3  ;;  %v932_v9 = vld [vmem:[#allocation2 + $0x110] sm:$0xff]  ;;  %837 = vst.msk [vmem:[#allocation2 + $0x30] sm:$0xff] %vm22_vm2, %v772_v0  ;;  %v770_v10 = vadd.f32 %v527_v6, %v91_v63  ;;  %869 = vst.msk [vmem:[#allocation2 + $0x130] sm:$0xff] %vm22_vm2, %v804_v5  ;;  %v802_v15 = vadd.f32 %v655_v11, %v123_v2 }
  0xd2   :  { %v1003_v13 = vmul.f32 %v2126_v60, %v932_v9  ;;  %v898_v14 = vld [vmem:[#allocation2] sm:$0xff]  ;;  %v1729_v16 = vpop.f32.mrf.mxu0  ;;  %v1761_v22 = vpop.f32.mrf.mxu1 }
  0xd3   :  { %v1042_v18 = vadd.f32 %v2133_v4, %v971_v8  ;;  %v969_v19 = vmul.f32 %v2126_v60, %v898_v14  ;;  %v930_v20 = vld [vmem:[#allocation2 + $0x100] sm:$0xff]  ;;  %835 = vst.msk [vmem:[#allocation2 + $0x20] sm:$0xff] %vm22_vm2, %v770_v10  ;;  %v773_v21 = vadd.f32 %v1729_v16, %v94_v7  ;;  %867 = vst.msk [vmem:[#allocation2 + $0x120] sm:$0xff] %vm22_vm2, %v802_v15 }
  0xd4   :  { %v1074_v24 = vadd.f32 %v2133_v4, %v1003_v13  ;;  %v1001_v25 = vmul.f32 %v2126_v60, %v930_v20  ;;  %v901_v26 = vld [vmem:[#allocation2 + $0x18] sm:$0xff]  ;;  %v805_v27 = vadd.f32 %v1761_v22, %v126_v12  ;;  %v530_v28 = vpop.f32.mrf.mxu0  ;;  %v658_v34 = vpop.f32.mrf.mxu1 }
  0xd5   :  { %v1106_v29 = vmax.f32 %v1042_v18, 0.0  ;;  %v1040_v30 = vadd.f32 %v2133_v4, %v969_v19  ;;  %v972_v31 = vmul.f32 %v2126_v60, %v901_v26  ;;  %v933_v32 = vld [vmem:[#allocation2 + $0x118] sm:$0xff]  ;;  %838 = vst.msk [vmem:[#allocation2 + $0x38] sm:$0xff] %vm22_vm2, %v773_v21  ;;  %v771_v33 = vadd.f32 %v530_v28, %v92_v17  ;;  %v97_v26 = vld [vmem:[#allocation2 + $0x50] sm:$0xff] }
  0xd6   :  { %v1138_v35 = vmax.f32 %v1074_v24, 0.0  ;;  %v1072_v36 = vadd.f32 %v2133_v4, %v1001_v25  ;;  %v1004_v37 = vmul.f32 %v2126_v60, %v933_v32  ;;  %v899_v38 = vld [vmem:[#allocation2 + $0x8] sm:$0xff]  ;;  %870 = vst.msk [vmem:[#allocation2 + $0x138] sm:$0xff] %vm22_vm2, %v805_v27  ;;  %v803_v39 = vadd.f32 %v658_v34, %v124_v23  ;;  %v2152_v40 = vpop.f32.mrf.mxu0  ;;  %v2157_v46 = vpop.f32.mrf.mxu1 }
  0xd7   :  { %v1625_v41 = vpack.c.bf16 %v1106_v29, %v1106_v29  ;;  %v1104_v42 = vmax.f32 %v1040_v30, 0.0  ;;  %v1043_v43 = vadd.f32 %v2133_v4, %v972_v31  ;;  %v970_v44 = vmul.f32 %v2126_v60, %v899_v38  ;;  %v931_v45 = vld [vmem:[#allocation2 + $0x108] sm:$0xff]  ;;  %836 = vst.msk [vmem:[#allocation2 + $0x28] sm:$0xff] %vm22_vm2, %v771_v33  ;;  %v129_v33 = vld [vmem:[#allocation2 + $0x150] sm:$0xff] }
  0xd8   :  { %v1657_v47 = vpack.c.bf16 %v1138_v35, %v1138_v35  ;;  %v1136_v48 = vmax.f32 %v1072_v36, 0.0  ;;  %v1075_v49 = vadd.f32 %v2133_v4, %v1004_v37  ;;  %v1002_v50 = vmul.f32 %v2126_v60, %v931_v45  ;;  %v904_v51 = vld [vmem:[#allocation2 + $0x30] sm:$0xff]  ;;  %868 = vst.msk [vmem:[#allocation2 + $0x128] sm:$0xff] %vm22_vm2, %v803_v39  ;;  %v2162_v52 = vpop.f32.mrf.mxu0  ;;  %v2170_v58 = vpop.f32.mrf.mxu1  ;;  %v95_v39 = vld [vmem:[#allocation2 + $0x40] sm:$0xff] }
  0xd9   :  { %1427 = vst.msk [vmem:[%s2680_s4 + $0x8] sm:$0xf] %vm1424_vm3, %v1625_v41  ;;  %v1623_v53 = vpack.c.bf16 %v1104_v42, %v1104_v42  ;;  %v1107_v54 = vmax.f32 %v1043_v43, 0.0  ;;  %v1041_v55 = vadd.f32 %v2133_v4, %v970_v44  ;;  %v975_v56 = vmul.f32 %v2126_v60, %v904_v51  ;;  %v936_v57 = vld [vmem:[#allocation2 + $0x130] sm:$0xff]  ;;  %v127_v41 = vld [vmem:[#allocation2 + $0x140] sm:$0xff] }
  0xda   :  { %1459 = vst.msk [vmem:[%s2680_s4 + $0x88] sm:$0xf] %vm1424_vm3, %v1657_v47  ;;  %v1655_v59 = vpack.c.bf16 %v1136_v48, %v1136_v48  ;;  %v1139_v61 = vmax.f32 %v1075_v49, 0.0  ;;  %v1073_v62 = vadd.f32 %v2133_v4, %v1002_v50  ;;  %v1007_v63 = vmul.f32 %v2126_v60, %v936_v57  ;;  %v902_v0 = vld [vmem:[#allocation2 + $0x20] sm:$0xff]  ;;  %v2178_v1 = vpop.f32.mrf.mxu0  ;;  %v2186_v8 = vpop.f32.mrf.mxu1  ;;  %v98_v48 = vld [vmem:[#allocation2 + $0x58] sm:$0xff]  ;;  %v96_v50 = vld [vmem:[#allocation2 + $0x48] sm:$0xff] }
  0xdb   :  { %1425 = vst.msk [vmem:[%s2680_s4] sm:$0xf] %vm1424_vm3, %v1623_v53  ;;  %v1626_v2 = vpack.c.bf16 %v1107_v54, %v1107_v54  ;;  %v1105_v3 = vmax.f32 %v1041_v55, 0.0  ;;  %v1046_v5 = vadd.f32 %v2133_v4, %v975_v56  ;;  %v973_v6 = vmul.f32 %v2126_v60, %v902_v0  ;;  %v934_v7 = vld [vmem:[#allocation2 + $0x120] sm:$0xff]  ;;  %v130_v49 = vld [vmem:[#allocation2 + $0x158] sm:$0xff]  ;;  %v128_v57 = vld [vmem:[#allocation2 + $0x148] sm:$0xff] }
  0xdc   :  { %1457 = vst.msk [vmem:[%s2680_s4 + $0x80] sm:$0xf] %vm1424_vm3, %v1655_v59  ;;  %v1658_v9 = vpack.c.bf16 %v1139_v61, %v1139_v61  ;;  %v1137_v10 = vmax.f32 %v1073_v62, 0.0  ;;  %v1078_v11 = vadd.f32 %v2133_v4, %v1007_v63  ;;  %v1005_v12 = vmul.f32 %v2126_v60, %v934_v7  ;;  %v905_v13 = vld [vmem:[#allocation2 + $0x38] sm:$0xff]  ;;  %v2194_v14 = vpop.f32.mrf.mxu0  ;;  %v2202_v20 = vpop.f32.mrf.mxu1  ;;  %v101_v59 = vld [vmem:[#allocation2 + $0x70] sm:$0xff] }
  0xdd   :  { %1428 = vst.msk [vmem:[%s2680_s4 + $0xc] sm:$0xf] %vm1424_vm3, %v1626_v2  ;;  %v1624_v15 = vpack.c.bf16 %v1105_v3, %v1105_v3  ;;  %v1110_v16 = vmax.f32 %v1046_v5, 0.0  ;;  %v1044_v17 = vadd.f32 %v2133_v4, %v973_v6  ;;  %v976_v18 = vmul.f32 %v2126_v60, %v905_v13  ;;  %v937_v19 = vld [vmem:[#allocation2 + $0x138] sm:$0xff]  ;;  %v133_v61 = vld [vmem:[#allocation2 + $0x170] sm:$0xff]  ;;  %v99_v3 = vld [vmem:[#allocation2 + $0x60] sm:$0xff] }
  0xde   :  { %1460 = vst.msk [vmem:[%s2680_s4 + $0x8c] sm:$0xf] %vm1424_vm3, %v1658_v9  ;;  %v1656_v21 = vpack.c.bf16 %v1137_v10, %v1137_v10  ;;  %v1142_v22 = vmax.f32 %v1078_v11, 0.0  ;;  %v1076_v23 = vadd.f32 %v2133_v4, %v1005_v12  ;;  %v1008_v24 = vmul.f32 %v2126_v60, %v937_v19  ;;  %v903_v25 = vld [vmem:[#allocation2 + $0x28] sm:$0xff]  ;;  %v1736_v27 = vpop.f32.mrf.mxu0  ;;  %v1768_v34 = vpop.f32.mrf.mxu1  ;;  %v131_v5 = vld [vmem:[#allocation2 + $0x160] sm:$0xff]  ;;  %v137_v19 = vld [vmem:[#allocation2 + $0x190] sm:$0xff] }
  0xdf   :  { %1426 = vst.msk [vmem:[%s2680_s4 + $0x4] sm:$0xf] %vm1424_vm3, %v1624_v15  ;;  %v1629_v28 = vpack.c.bf16 %v1110_v16, %v1110_v16  ;;  %v1108_v29 = vmax.f32 %v1044_v17, 0.0  ;;  %v1047_v30 = vadd.f32 %v2133_v4, %v976_v18  ;;  %v974_v31 = vmul.f32 %v2126_v60, %v903_v25  ;;  %v935_v32 = vld [vmem:[#allocation2 + $0x128] sm:$0xff]  ;;  %v105_v18 = vld [vmem:[#allocation2 + $0x90] sm:$0xff]  ;;  %v103_v25 = vld [vmem:[#allocation2 + $0x80] sm:$0xff] }
  0xe0   :  { %1458 = vst.msk [vmem:[%s2680_s4 + $0x84] sm:$0xf] %vm1424_vm3, %v1656_v21  ;;  %v1661_v35 = vpack.c.bf16 %v1142_v22, %v1142_v22  ;;  %v1140_v36 = vmax.f32 %v1076_v23, 0.0  ;;  %v1079_v37 = vadd.f32 %v2133_v4, %v1008_v24  ;;  %v1006_v38 = vmul.f32 %v2126_v60, %v935_v32  ;;  %v559_v42 = vpop.f32.mrf.mxu0  ;;  %v687_v51 = vpop.f32.mrf.mxu1  ;;  %v100_v12 = vld [vmem:[#allocation2 + $0x68] sm:$0xff] }
  0xe1   :  { %1431 = vst.msk [vmem:[%s2680_s4 + $0x18] sm:$0xf] %vm1424_vm3, %v1629_v28  ;;  %v1627_v43 = vpack.c.bf16 %v1108_v29, %v1108_v29  ;;  %v1111_v44 = vmax.f32 %v1047_v30, 0.0  ;;  %v1045_v45 = vadd.f32 %v2133_v4, %v974_v31  ;;  %v776_v47 = vadd.f32 %v2152_v40, %v97_v26  ;;  %v132_v13 = vld [vmem:[#allocation2 + $0x168] sm:$0xff]  ;;  %v135_v30 = vld [vmem:[#allocation2 + $0x180] sm:$0xff] }
  0xe2   :  { %1463 = vst.msk [vmem:[%s2680_s4 + $0x98] sm:$0xf] %vm1424_vm3, %v1661_v35  ;;  %v1659_v53 = vpack.c.bf16 %v1140_v36, %v1140_v36  ;;  %v1143_v54 = vmax.f32 %v1079_v37, 0.0  ;;  %v1077_v55 = vadd.f32 %v2133_v4, %v1006_v38  ;;  %v808_v56 = vadd.f32 %v2157_v46, %v129_v33  ;;  %v1737_v62 = vpop.f32.mrf.mxu0  ;;  %v102_v46 = vld [vmem:[#allocation2 + $0x78] sm:$0xff]  ;;  %v1769_v6 = vpop.f32.mrf.mxu1 }
  0xe3   :  { %1429 = vst.msk [vmem:[%s2680_s4 + $0x10] sm:$0xf] %vm1424_vm3, %v1627_v43  ;;  %v1630_v40 = vpack.c.bf16 %v1111_v44, %v1111_v44  ;;  %v1109_v63 = vmax.f32 %v1045_v45, 0.0  ;;  %v774_v0 = vadd.f32 %v2162_v52, %v95_v39  ;;  %v806_v2 = vadd.f32 %v2170_v58, %v127_v41  ;;  %v134_v52 = vld [vmem:[#allocation2 + $0x178] sm:$0xff] }
  0xe4   :  { %841 = vst.msk [vmem:[#allocation2 + $0x50] sm:$0xff] %vm22_vm2, %v776_v47  ;;  %v1662_v7 = vpack.c.bf16 %v1143_v54, %v1143_v54  ;;  %v1141_v9 = vmax.f32 %v1077_v55, 0.0  ;;  %873 = vst.msk [vmem:[#allocation2 + $0x150] sm:$0xff] %vm22_vm2, %v808_v56  ;;  %v777_v10 = vadd.f32 %v2178_v1, %v98_v48  ;;  %v809_v11 = vadd.f32 %v2186_v8, %v130_v49  ;;  %v562_v58 = vpop.f32.mrf.mxu0  ;;  %v690_v8 = vpop.f32.mrf.mxu1  ;;  %v138_v37 = vld [vmem:[#allocation2 + $0x198] sm:$0xff]  ;;  %v136_v48 = vld [vmem:[#allocation2 + $0x188] sm:$0xff] }
  0xe5   :  { %1461 = vst.msk [vmem:[%s2680_s4 + $0x90] sm:$0xf] %vm1424_vm3, %v1659_v53  ;;  %1432 = vst.msk [vmem:[%s2680_s4 + $0x1c] sm:$0xf] %vm1424_vm3, %v1630_v40  ;;  %v1628_v15 = vpack.c.bf16 %v1109_v63, %v1109_v63  ;;  %v775_v16 = vadd.f32 %v2194_v14, %v96_v50  ;;  %v807_v1 = vadd.f32 %v2202_v20, %v128_v57 }
  0xe6   :  { %839 = vst.msk [vmem:[#allocation2 + $0x40] sm:$0xff] %vm22_vm2, %v774_v0  ;;  %871 = vst.msk [vmem:[#allocation2 + $0x140] sm:$0xff] %vm22_vm2, %v806_v2  ;;  %v780_v17 = vadd.f32 %v1736_v27, %v101_v59  ;;  %v1660_v21 = vpack.c.bf16 %v1141_v9, %v1141_v9  ;;  %v812_v22 = vadd.f32 %v1768_v34, %v133_v61  ;;  %v1740_v14 = vpop.f32.mrf.mxu0  ;;  %v1772_v29 = vpop.f32.mrf.mxu1  ;;  %v106_v34 = vld [vmem:[#allocation2 + $0x98] sm:$0xff] }
  0xe7   :  { %1464 = vst.msk [vmem:[%s2680_s4 + $0x9c] sm:$0xf] %vm1424_vm3, %v1662_v7  ;;  %v778_v23 = vadd.f32 %v559_v42, %v99_v3  ;;  %v810_v24 = vadd.f32 %v687_v51, %v131_v5  ;;  %1430 = vst.msk [vmem:[%s2680_s4 + $0x14] sm:$0xf] %vm1424_vm3, %v1628_v15  ;;  %v781_v20 = vadd.f32 %v1737_v62, %v102_v46  ;;  %v104_v42 = vld [vmem:[#allocation2 + $0x88] sm:$0xff] }
  0xe8   :  { %842 = vst.msk [vmem:[#allocation2 + $0x58] sm:$0xff] %vm22_vm2, %v777_v10  ;;  %874 = vst.msk [vmem:[#allocation2 + $0x158] sm:$0xff] %vm22_vm2, %v809_v11  ;;  %v813_v26 = vadd.f32 %v1769_v6, %v134_v52  ;;  %v779_v27 = vadd.f32 %v562_v58, %v100_v12  ;;  %v811_v28 = vadd.f32 %v690_v8, %v132_v13  ;;  %v575_v33 = vpop.f32.mrf.mxu0  ;;  %v703_v36 = vpop.f32.mrf.mxu1 }
  0xe9   :  { %840 = vst.msk [vmem:[#allocation2 + $0x48] sm:$0xff] %vm22_vm2, %v775_v16  ;;  %872 = vst.msk [vmem:[#allocation2 + $0x148] sm:$0xff] %vm22_vm2, %v807_v1  ;;  %v784_v31 = vadd.f32 %v1740_v14, %v105_v18  ;;  %v816_v32 = vadd.f32 %v1772_v29, %v137_v19  ;;  %v782_v35 = vadd.f32 %v575_v33, %v103_v25 }
  0xea   :  { %845 = vst.msk [vmem:[#allocation2 + $0x70] sm:$0xff] %vm22_vm2, %v780_v17  ;;  %877 = vst.msk [vmem:[#allocation2 + $0x170] sm:$0xff] %vm22_vm2, %v812_v22  ;;  %v814_v39 = vadd.f32 %v703_v36, %v135_v30  ;;  %v1741_v41 = vpop.f32.mrf.mxu0  ;;  %v1773_v47 = vpop.f32.mrf.mxu1 }
  0xeb   :  { %1462 = vst.msk [vmem:[%s2680_s4 + $0x94] sm:$0xf] %vm1424_vm3, %v1660_v21  ;;  %v908_v38 = vld [vmem:[#allocation2 + $0x50] sm:$0xff]  ;;  %v785_v45 = vadd.f32 %v1741_v41, %v106_v34  ;;  %v817_v53 = vadd.f32 %v1773_v47, %v138_v37 }
  0xec   :  { %843 = vst.msk [vmem:[#allocation2 + $0x60] sm:$0xff] %vm22_vm2, %v778_v23  ;;  %875 = vst.msk [vmem:[#allocation2 + $0x160] sm:$0xff] %vm22_vm2, %v810_v24  ;;  %v979_v43 = vmul.f32 %v2126_v60, %v908_v38  ;;  %v940_v44 = vld [vmem:[#allocation2 + $0x150] sm:$0xff]  ;;  %v578_v54 = vpop.f32.mrf.mxu0  ;;  %v706_v40 = vpop.f32.mrf.mxu1 }
  0xed   :  { %846 = vst.msk [vmem:[#allocation2 + $0x78] sm:$0xff] %vm22_vm2, %v781_v20  ;;  %878 = vst.msk [vmem:[#allocation2 + $0x178] sm:$0xff] %vm22_vm2, %v813_v26  ;;  %v1011_v49 = vmul.f32 %v2126_v60, %v940_v44  ;;  %v906_v50 = vld [vmem:[#allocation2 + $0x40] sm:$0xff]  ;;  %v783_v62 = vadd.f32 %v578_v54, %v104_v42  ;;  %v815_v46 = vadd.f32 %v706_v40, %v136_v48 }
  0xee   :  { %844 = vst.msk [vmem:[#allocation2 + $0x68] sm:$0xff] %vm22_vm2, %v779_v27  ;;  %876 = vst.msk [vmem:[#allocation2 + $0x168] sm:$0xff] %vm22_vm2, %v811_v28  ;;  %v938_v51 = vld [vmem:[#allocation2 + $0x140] sm:$0xff]  ;;  %v1050_v55 = vadd.f32 %v2133_v4, %v979_v43  ;;  %v977_v56 = vmul.f32 %v2126_v60, %v906_v50  ;;  %v2294_v6 = vpop.f32.mrf.mxu0  ;;  %v2300_v52 = vpop.f32.mrf.mxu1 }
  0xef   :  { %849 = vst.msk [vmem:[#allocation2 + $0x90] sm:$0xff] %vm22_vm2, %v784_v31  ;;  %881 = vst.msk [vmem:[#allocation2 + $0x190] sm:$0xff] %vm22_vm2, %v816_v32  ;;  %v1009_v57 = vmul.f32 %v2126_v60, %v938_v51  ;;  %v909_v59 = vld [vmem:[#allocation2 + $0x58] sm:$0xff]  ;;  %v1082_v63 = vadd.f32 %v2133_v4, %v1011_v49 }
  0xf0   :  { %847 = vst.msk [vmem:[#allocation2 + $0x80] sm:$0xff] %vm22_vm2, %v782_v35  ;;  %879 = vst.msk [vmem:[#allocation2 + $0x180] sm:$0xff] %vm22_vm2, %v814_v39  ;;  %v941_v61 = vld [vmem:[#allocation2 + $0x158] sm:$0xff]  ;;  %v980_v0 = vmul.f32 %v2126_v60, %v909_v59  ;;  %v907_v3 = vld [vmem:[#allocation2 + $0x48] sm:$0xff]  ;;  %v1114_v7 = vmax.f32 %v1050_v55, 0.0  ;;  %v1048_v9 = vadd.f32 %v2133_v4, %v977_v56  ;;  %v2306_v1 = vpop.f32.mrf.mxu0  ;;  %v2309_v22 = vpop.f32.mrf.mxu1 }
  0xf1   :  { %850 = vst.msk [vmem:[#allocation2 + $0x98] sm:$0xff] %vm22_vm2, %v785_v45  ;;  %v1012_v2 = vmul.f32 %v2126_v60, %v941_v61  ;;  %v939_v5 = vld [vmem:[#allocation2 + $0x148] sm:$0xff]  ;;  %882 = vst.msk [vmem:[#allocation2 + $0x198] sm:$0xff] %vm22_vm2, %v817_v53  ;;  %v1080_v10 = vadd.f32 %v2133_v4, %v1009_v57  ;;  %v978_v11 = vmul.f32 %v2126_v60, %v907_v3  ;;  %v1146_v12 = vmax.f32 %v1082_v63, 0.0  ;;  %v912_v16 = vld [vmem:[#allocation2 + $0x70] sm:$0xff] }
  0xf2   :  { %848 = vst.msk [vmem:[#allocation2 + $0x88] sm:$0xff] %vm22_vm2, %v783_v62  ;;  %v1051_v58 = vadd.f32 %v2133_v4, %v980_v0  ;;  %v1010_v15 = vmul.f32 %v2126_v60, %v939_v5  ;;  %880 = vst.msk [vmem:[#allocation2 + $0x188] sm:$0xff] %vm22_vm2, %v815_v46  ;;  %v1633_v17 = vpack.c.bf16 %v1114_v7, %v1114_v7  ;;  %v1112_v8 = vmax.f32 %v1048_v9, 0.0  ;;  %v944_v21 = vld [vmem:[#allocation2 + $0x170] sm:$0xff]  ;;  %v2312_v27 = vpop.f32.mrf.mxu0  ;;  %v2319_v34 = vpop.f32.mrf.mxu1 }
  0xf3   :  { %v1083_v13 = vadd.f32 %v2133_v4, %v1012_v2  ;;  %v1144_v18 = vmax.f32 %v1080_v10, 0.0  ;;  %v1049_v19 = vadd.f32 %v2133_v4, %v978_v11  ;;  %v1665_v23 = vpack.c.bf16 %v1146_v12, %v1146_v12  ;;  %v910_v20 = vld [vmem:[#allocation2 + $0x60] sm:$0xff] }
  0xf4   :  { %v1115_v24 = vmax.f32 %v1051_v58, 0.0  ;;  %v1081_v25 = vadd.f32 %v2133_v4, %v1010_v15  ;;  %v942_v26 = vld [vmem:[#allocation2 + $0x160] sm:$0xff]  ;;  %1435 = vst.msk [vmem:[%s2680_s4 + $0x28] sm:$0xf] %vm1424_vm3, %v1633_v17  ;;  %v1631_v28 = vpack.c.bf16 %v1112_v8, %v1112_v8  ;;  %v983_v31 = vmul.f32 %v2126_v60, %v912_v16  ;;  %v913_v32 = vld [vmem:[#allocation2 + $0x78] sm:$0xff]  ;;  %v2326_v41 = vpop.f32.mrf.mxu0  ;;  %v2339_v48 = vpop.f32.mrf.mxu1 }
  0xf5   :  { %v1147_v14 = vmax.f32 %v1083_v13, 0.0  ;;  %v1663_v29 = vpack.c.bf16 %v1144_v18, %v1144_v18  ;;  %v1113_v30 = vmax.f32 %v1049_v19, 0.0  ;;  %v945_v33 = vld [vmem:[#allocation2 + $0x178] sm:$0xff]  ;;  %1467 = vst.msk [vmem:[%s2680_s4 + $0xa8] sm:$0xf] %vm1424_vm3, %v1665_v23  ;;  %v1015_v38 = vmul.f32 %v2126_v60, %v944_v21  ;;  %v911_v39 = vld [vmem:[#allocation2 + $0x68] sm:$0xff] }
  0xf6   :  { %v1634_v35 = vpack.c.bf16 %v1115_v24, %v1115_v24  ;;  %v1145_v37 = vmax.f32 %v1081_v25, 0.0  ;;  %1433 = vst.msk [vmem:[%s2680_s4 + $0x20] sm:$0xf] %vm1424_vm3, %v1631_v28  ;;  %v1054_v43 = vadd.f32 %v2133_v4, %v983_v31  ;;  %v981_v44 = vmul.f32 %v2126_v60, %v910_v20  ;;  %v943_v47 = vld [vmem:[#allocation2 + $0x168] sm:$0xff]  ;;  %v2352_v54 = vpop.f32.mrf.mxu0  ;;  %v2361_v61 = vpop.f32.mrf.mxu1  ;;  %v916_v2 = vld [vmem:[#allocation2 + $0x90] sm:$0xff] }
  0xf7   :  { %v1666_v36 = vpack.c.bf16 %v1147_v14, %v1147_v14  ;;  %1465 = vst.msk [vmem:[%s2680_s4 + $0xa0] sm:$0xf] %vm1424_vm3, %v1663_v29  ;;  %v1632_v42 = vpack.c.bf16 %v1113_v30, %v1113_v30  ;;  %v1013_v45 = vmul.f32 %v2126_v60, %v942_v26  ;;  %v1086_v50 = vadd.f32 %v2133_v4, %v1015_v38  ;;  %v948_v10 = vld [vmem:[#allocation2 + $0x190] sm:$0xff]  ;;  %v914_v16 = vld [vmem:[#allocation2 + $0x80] sm:$0xff] }
  0xf8   :  { %1436 = vst.msk [vmem:[%s2680_s4 + $0x2c] sm:$0xf] %vm1424_vm3, %v1634_v35  ;;  %v1664_v49 = vpack.c.bf16 %v1145_v37, %v1145_v37  ;;  %v984_v51 = vmul.f32 %v2126_v60, %v913_v32  ;;  %v1016_v53 = vmul.f32 %v2126_v60, %v945_v33  ;;  %v1118_v55 = vmax.f32 %v1054_v43, 0.0  ;;  %v2370_v3 = vpop.f32.mrf.mxu0  ;;  %v2373_v11 = vpop.f32.mrf.mxu1  ;;  %v946_v17 = vld [vmem:[#allocation2 + $0x180] sm:$0xff]  ;;  %v917_v24 = vld [vmem:[#allocation2 + $0x98] sm:$0xff] }
  0xf9   :  { %1468 = vst.msk [vmem:[%s2680_s4 + $0xac] sm:$0xf] %vm1424_vm3, %v1666_v36  ;;  %1434 = vst.msk [vmem:[%s2680_s4 + $0x24] sm:$0xf] %vm1424_vm3, %v1632_v42  ;;  %v1052_v56 = vadd.f32 %v2133_v4, %v981_v44  ;;  %v1084_v57 = vadd.f32 %v2133_v4, %v1013_v45  ;;  %v982_v59 = vmul.f32 %v2126_v60, %v911_v39  ;;  %v1150_v62 = vmax.f32 %v1086_v50, 0.0  ;;  %v949_v14 = vld [vmem:[#allocation2 + $0x198] sm:$0xff] }
  0xfa   :  { %1466 = vst.msk [vmem:[%s2680_s4 + $0xa4] sm:$0xf] %vm1424_vm3, %v1664_v49  ;;  %v1055_v40 = vadd.f32 %v2133_v4, %v984_v51  ;;  %v1087_v63 = vadd.f32 %v2133_v4, %v1016_v53  ;;  %v1014_v0 = vmul.f32 %v2126_v60, %v943_v47  ;;  %v1637_v5 = vpack.c.bf16 %v1118_v55, %v1118_v55  ;;  %v2376_v8 = vpop.f32.mrf.mxu0  ;;  %v2383_v25 = vpop.f32.mrf.mxu1  ;;  %v915_v30 = vld [vmem:[#allocation2 + $0x88] sm:$0xff] }
  0xfb   :  { %v1116_v46 = vmax.f32 %v1052_v56, 0.0  ;;  %v1148_v7 = vmax.f32 %v1084_v57, 0.0  ;;  %v1053_v9 = vadd.f32 %v2133_v4, %v982_v59  ;;  %v1669_v12 = vpack.c.bf16 %v1150_v62, %v1150_v62  ;;  %v947_v37 = vld [vmem:[#allocation2 + $0x188] sm:$0xff]  ;;  %v109_v62 = vld [vmem:[#allocation2 + $0xb0] sm:$0xff] }
  0xfc   :  { %v1119_v58 = vmax.f32 %v1055_v40, 0.0  ;;  %v1151_v13 = vmax.f32 %v1087_v63, 0.0  ;;  %v1085_v15 = vadd.f32 %v2133_v4, %v1014_v0  ;;  %1439 = vst.msk [vmem:[%s2680_s4 + $0x38] sm:$0xf] %vm1424_vm3, %v1637_v5  ;;  %v987_v23 = vmul.f32 %v2126_v60, %v916_v2  ;;  %v2390_v31 = vpop.f32.mrf.mxu0  ;;  %v2403_v38 = vpop.f32.mrf.mxu1  ;;  %v141_v40 = vld [vmem:[#allocation2 + $0x1b0] sm:$0xff]  ;;  %v107_v63 = vld [vmem:[#allocation2 + $0xa0] sm:$0xff] }
  0xfd   :  { %v1635_v18 = vpack.c.bf16 %v1116_v46, %v1116_v46  ;;  %v1667_v19 = vpack.c.bf16 %v1148_v7, %v1148_v7  ;;  %v1117_v21 = vmax.f32 %v1053_v9, 0.0  ;;  %1471 = vst.msk [vmem:[%s2680_s4 + $0xb8] sm:$0xf] %vm1424_vm3, %v1669_v12  ;;  %v1019_v29 = vmul.f32 %v2126_v60, %v948_v10  ;;  %v139_v9 = vld [vmem:[#allocation2 + $0x1a0] sm:$0xff]  ;;  %v110_v10 = vld [vmem:[#allocation2 + $0xb8] sm:$0xff] }
  0xfe   :  { %v1638_v20 = vpack.c.bf16 %v1119_v58, %v1119_v58  ;;  %v1670_v26 = vpack.c.bf16 %v1151_v13, %v1151_v13  ;;  %v1149_v28 = vmax.f32 %v1085_v15, 0.0  ;;  %v1058_v33 = vadd.f32 %v2133_v4, %v987_v23  ;;  %v2416_v45 = vpop.f32.mrf.mxu0  ;;  %v2425_v53 = vpop.f32.mrf.mxu1  ;;  %v142_v12 = vld [vmem:[#allocation2 + $0x1b8] sm:$0xff] }
  0xff   :  { %1437 = vst.msk [vmem:[%s2680_s4 + $0x30] sm:$0xf] %vm1424_vm3, %v1635_v18  ;;  %1469 = vst.msk [vmem:[%s2680_s4 + $0xb0] sm:$0xf] %vm1424_vm3, %v1667_v19  ;;  %v1636_v32 = vpack.c.bf16 %v1117_v21, %v1117_v21  ;;  %v985_v35 = vmul.f32 %v2126_v60, %v914_v16  ;;  %v1017_v36 = vmul.f32 %v2126_v60, %v946_v17  ;;  %v108_v18 = vld [vmem:[#allocation2 + $0xa8] sm:$0xff]  ;;  %v113_v21 = vld [vmem:[#allocation2 + $0xd0] sm:$0xff] }
 0x100   :  { %1440 = vst.msk [vmem:[%s2680_s4 + $0x3c] sm:$0xf] %vm1424_vm3, %v1638_v20  ;;  %1472 = vst.msk [vmem:[%s2680_s4 + $0xbc] sm:$0xf] %vm1424_vm3, %v1670_v26  ;;  %v1668_v39 = vpack.c.bf16 %v1149_v28, %v1149_v28  ;;  %v1090_v42 = vadd.f32 %v2133_v4, %v1019_v29  ;;  %v988_v43 = vmul.f32 %v2126_v60, %v917_v24  ;;  %v1122_v47 = vmax.f32 %v1058_v33, 0.0  ;;  %v2434_v0 = vpop.f32.mrf.mxu0  ;;  %v2437_v58 = vpop.f32.mrf.mxu1  ;;  %v140_v19 = vld [vmem:[#allocation2 + $0x1a8] sm:$0xff] }
 0x101   :  { %v1020_v44 = vmul.f32 %v2126_v60, %v949_v14  ;;  %1438 = vst.msk [vmem:[%s2680_s4 + $0x34] sm:$0xf] %vm1424_vm3, %v1636_v32  ;;  %v1056_v49 = vadd.f32 %v2133_v4, %v985_v35  ;;  %v1088_v50 = vadd.f32 %v2133_v4, %v1017_v36  ;;  %v986_v51 = vmul.f32 %v2126_v60, %v915_v30  ;;  %v145_v26 = vld [vmem:[#allocation2 + $0x1d0] sm:$0xff]  ;;  %v111_v28 = vld [vmem:[#allocation2 + $0xc0] sm:$0xff] }
 0x102   :  { %1470 = vst.msk [vmem:[%s2680_s4 + $0xb4] sm:$0xf] %vm1424_vm3, %v1668_v39  ;;  %v1154_v55 = vmax.f32 %v1090_v42, 0.0  ;;  %v1059_v56 = vadd.f32 %v2133_v4, %v988_v43  ;;  %v1018_v59 = vmul.f32 %v2126_v60, %v947_v37  ;;  %v1641_v2 = vpack.c.bf16 %v1122_v47, %v1122_v47  ;;  %v143_v29 = vld [vmem:[#allocation2 + $0x1c0] sm:$0xff]  ;;  %v2445_v30 = vpop.f32.mrf.mxu0  ;;  %v2447_v32 = vpop.f32.mrf.mxu1  ;;  %v114_v39 = vld [vmem:[#allocation2 + $0xd8] sm:$0xff] }
 0x103   :  { %v1091_v57 = vadd.f32 %v2133_v4, %v1020_v44  ;;  %v1120_v5 = vmax.f32 %v1056_v49, 0.0  ;;  %v1152_v46 = vmax.f32 %v1088_v50, 0.0  ;;  %v1057_v7 = vadd.f32 %v2133_v4, %v986_v51  ;;  %v146_v42 = vld [vmem:[#allocation2 + $0x1d8] sm:$0xff]  ;;  %v144_v49 = vld [vmem:[#allocation2 + $0x1c8] sm:$0xff]  ;;  %v117_v50 = vld [vmem:[#allocation2 + $0xf0] sm:$0xff] }
 0x104   :  { %v1673_v13 = vpack.c.bf16 %v1154_v55, %v1154_v55  ;;  %v1123_v15 = vmax.f32 %v1059_v56, 0.0  ;;  %v1089_v17 = vadd.f32 %v2133_v4, %v1018_v59  ;;  %1443 = vst.msk [vmem:[%s2680_s4 + $0x48] sm:$0xf] %vm1424_vm3, %v1641_v2  ;;  %v788_v20 = vadd.f32 %v2294_v6, %v109_v62  ;;  %v112_v6 = vld [vmem:[#allocation2 + $0xc8] sm:$0xff]  ;;  %v149_v51 = vld [vmem:[#allocation2 + $0x1f0] sm:$0xff]  ;;  %v115_v56 = vld [vmem:[#allocation2 + $0xe0] sm:$0xff]  ;;  %v626_v2 = vpop.f32.mrf.mxu0 }
 0x105   :  { %v1155_v16 = vmax.f32 %v1091_v57, 0.0  ;;  %v1639_v23 = vpack.c.bf16 %v1120_v5, %v1120_v5  ;;  %v1671_v24 = vpack.c.bf16 %v1152_v46, %v1152_v46  ;;  %v1121_v14 = vmax.f32 %v1057_v7, 0.0  ;;  %v147_v57 = vld [vmem:[#allocation2 + $0x1e0] sm:$0xff]  ;;  %v118_v59 = vld [vmem:[#allocation2 + $0xf8] sm:$0xff]  ;;  %v148_v5 = vld [vmem:[#allocation2 + $0x1e8] sm:$0xff]  ;;  %v754_v46 = vpop.f32.mrf.mxu1 }
 0x106   :  { %1475 = vst.msk [vmem:[%s2680_s4 + $0xc8] sm:$0xf] %vm1424_vm3, %v1673_v13  ;;  %v1642_v33 = vpack.c.bf16 %v1123_v15, %v1123_v15  ;;  %v1153_v36 = vmax.f32 %v1089_v17, 0.0  ;;  %v820_v37 = vadd.f32 %v2300_v52, %v141_v40  ;;  %v786_v44 = vadd.f32 %v2306_v1, %v107_v63  ;;  %v150_v40 = vld [vmem:[#allocation2 + $0x1f8] sm:$0xff]  ;;  %v116_v63 = vld [vmem:[#allocation2 + $0xe8] sm:$0xff] }
 0x107   :  { %v1674_v35 = vpack.c.bf16 %v1155_v16, %v1155_v16  ;;  %1441 = vst.msk [vmem:[%s2680_s4 + $0x40] sm:$0xf] %vm1424_vm3, %v1639_v23  ;;  %1473 = vst.msk [vmem:[%s2680_s4 + $0xc0] sm:$0xf] %vm1424_vm3, %v1671_v24  ;;  %v1640_v43 = vpack.c.bf16 %v1121_v14, %v1121_v14  ;;  %v818_v52 = vadd.f32 %v2309_v22, %v139_v9 }
 0x108   :  { %853 = vst.msk [vmem:[#allocation2 + $0xb0] sm:$0xff] %vm22_vm2, %v788_v20  ;;  %v789_v47 = vadd.f32 %v2312_v27, %v110_v10  ;;  %v1672_v55 = vpack.c.bf16 %v1153_v36, %v1153_v36  ;;  %885 = vst.msk [vmem:[#allocation2 + $0x1b0] sm:$0xff] %vm22_vm2, %v820_v37  ;;  %v821_v1 = vadd.f32 %v2319_v34, %v142_v12 }
 0x109   :  { %1444 = vst.msk [vmem:[%s2680_s4 + $0x4c] sm:$0xf] %vm1424_vm3, %v1642_v33  ;;  %1476 = vst.msk [vmem:[%s2680_s4 + $0xcc] sm:$0xf] %vm1424_vm3, %v1674_v35  ;;  %v787_v22 = vadd.f32 %v2326_v41, %v108_v18  ;;  %v819_v27 = vadd.f32 %v2339_v48, %v140_v19  ;;  %v792_v34 = vadd.f32 %v2352_v54, %v113_v21 }
 0x10a   :  { %1442 = vst.msk [vmem:[%s2680_s4 + $0x44] sm:$0xf] %vm1424_vm3, %v1640_v43  ;;  %v824_v41 = vadd.f32 %v2361_v61, %v145_v26  ;;  %v790_v48 = vadd.f32 %v2370_v3, %v111_v28  ;;  %v822_v62 = vadd.f32 %v2373_v11, %v143_v29  ;;  %1474 = vst.msk [vmem:[%s2680_s4 + $0xc4] sm:$0xf] %vm1424_vm3, %v1672_v55 }
 0x10b   :  { %851 = vst.msk [vmem:[#allocation2 + $0xa0] sm:$0xff] %vm22_vm2, %v786_v44  ;;  %883 = vst.msk [vmem:[#allocation2 + $0x1a0] sm:$0xff] %vm22_vm2, %v818_v52  ;;  %v793_v54 = vadd.f32 %v2376_v8, %v114_v39  ;;  %v825_v61 = vadd.f32 %v2383_v25, %v146_v42  ;;  %v791_v3 = vadd.f32 %v2390_v31, %v112_v6 }
 0x10c   :  { %854 = vst.msk [vmem:[#allocation2 + $0xb8] sm:$0xff] %vm22_vm2, %v789_v47  ;;  %886 = vst.msk [vmem:[#allocation2 + $0x1b8] sm:$0xff] %vm22_vm2, %v821_v1  ;;  %v823_v11 = vadd.f32 %v2403_v38, %v144_v49  ;;  %v796_v7 = vadd.f32 %v2416_v45, %v117_v50  ;;  %v828_v9 = vadd.f32 %v2425_v53, %v149_v51 }
 0x10d   :  { %852 = vst.msk [vmem:[#allocation2 + $0xa8] sm:$0xff] %vm22_vm2, %v787_v22  ;;  %884 = vst.msk [vmem:[#allocation2 + $0x1a8] sm:$0xff] %vm22_vm2, %v819_v27  ;;  %v794_v8 = vadd.f32 %v2434_v0, %v115_v56  ;;  %v826_v25 = vadd.f32 %v2437_v58, %v147_v57  ;;  %v797_v31 = vadd.f32 %v2445_v30, %v118_v59  ;;  %v2545_v59 = vld [vmem:[%s2678_s2] ss:$0 sm:$0xff] }
 0x10e   :  { %857 = vst.msk [vmem:[#allocation2 + $0xd0] sm:$0xff] %vm22_vm2, %v792_v34  ;;  %889 = vst.msk [vmem:[#allocation2 + $0x1d0] sm:$0xff] %vm22_vm2, %v824_v41  ;;  %v829_v38 = vadd.f32 %v2447_v32, %v150_v40  ;;  %v795_v10 = vadd.f32 %v626_v2, %v116_v63  ;;  %v827_v45 = vadd.f32 %v754_v46, %v148_v5  ;;  %v2568_v46 = vld [vmem:[%s2679_s3] ss:$0 sm:$0xff] }
 0x10f   :  { %855 = vst.msk [vmem:[#allocation2 + $0xc0] sm:$0xff] %vm22_vm2, %v790_v48  ;;  %887 = vst.msk [vmem:[#allocation2 + $0x1c0] sm:$0xff] %vm22_vm2, %v822_v62  ;;  %v920_v53 = vld [vmem:[#allocation2 + $0xb0] sm:$0xff] }
 0x110   :  { %858 = vst.msk [vmem:[#allocation2 + $0xd8] sm:$0xff] %vm22_vm2, %v793_v54  ;;  %890 = vst.msk [vmem:[#allocation2 + $0x1d8] sm:$0xff] %vm22_vm2, %v825_v61  ;;  %v991_v0 = vmul.f32 %v2126_v60, %v920_v53  ;;  %v952_v12 = vld [vmem:[#allocation2 + $0x1b0] sm:$0xff] }
 0x111   :  { %856 = vst.msk [vmem:[#allocation2 + $0xc8] sm:$0xff] %vm22_vm2, %v791_v3  ;;  %888 = vst.msk [vmem:[#allocation2 + $0x1c8] sm:$0xff] %vm22_vm2, %v823_v11  ;;  %v1023_v58 = vmul.f32 %v2126_v60, %v952_v12 }
 0x112   :  { %861 = vst.msk [vmem:[#allocation2 + $0xf0] sm:$0xff] %vm22_vm2, %v796_v7  ;;  %893 = vst.msk [vmem:[#allocation2 + $0x1f0] sm:$0xff] %vm22_vm2, %v828_v9  ;;  %v918_v13 = vld [vmem:[#allocation2 + $0xa0] sm:$0xff]  ;;  %v1062_v17 = vadd.f32 %v2133_v4, %v991_v0 }
 0x113   :  { %859 = vst.msk [vmem:[#allocation2 + $0xe0] sm:$0xff] %vm22_vm2, %v794_v8  ;;  %891 = vst.msk [vmem:[#allocation2 + $0x1e0] sm:$0xff] %vm22_vm2, %v826_v25  ;;  %v950_v15 = vld [vmem:[#allocation2 + $0x1a0] sm:$0xff]  ;;  %v921_v16 = vld [vmem:[#allocation2 + $0xb8] sm:$0xff]  ;;  %v989_v18 = vmul.f32 %v2126_v60, %v918_v13  ;;  %v1094_v20 = vadd.f32 %v2133_v4, %v1023_v58 }
 0x114   :  { %862 = vst.msk [vmem:[#allocation2 + $0xf8] sm:$0xff] %vm22_vm2, %v797_v31  ;;  %894 = vst.msk [vmem:[#allocation2 + $0x1f8] sm:$0xff] %vm22_vm2, %v829_v38  ;;  %v1021_v19 = vmul.f32 %v2126_v60, %v950_v15  ;;  %v992_v21 = vmul.f32 %v2126_v60, %v921_v16  ;;  %v953_v23 = vld [vmem:[#allocation2 + $0x1b8] sm:$0xff]  ;;  %v919_v24 = vld [vmem:[#allocation2 + $0xa8] sm:$0xff]  ;;  %v1126_v30 = vmax.f32 %v1062_v17, 0.0 }
 0x115   :  { %860 = vst.msk [vmem:[#allocation2 + $0xe8] sm:$0xff] %vm22_vm2, %v795_v10  ;;  %892 = vst.msk [vmem:[#allocation2 + $0x1e8] sm:$0xff] %vm22_vm2, %v827_v45  ;;  %v951_v14 = vld [vmem:[#allocation2 + $0x1a8] sm:$0xff]  ;;  %v1024_v26 = vmul.f32 %v2126_v60, %v953_v23  ;;  %v990_v28 = vmul.f32 %v2126_v60, %v919_v24  ;;  %v1060_v32 = vadd.f32 %v2133_v4, %v989_v18  ;;  %v1158_v36 = vmax.f32 %v1094_v20, 0.0  ;;  %v924_v6 = vld [vmem:[#allocation2 + $0xd0] sm:$0xff] }
 0x116   :  { %v1022_v29 = vmul.f32 %v2126_v60, %v951_v14  ;;  %v1092_v33 = vadd.f32 %v2133_v4, %v1021_v19  ;;  %v1063_v35 = vadd.f32 %v2133_v4, %v992_v21  ;;  %v1645_v43 = vpack.c.bf16 %v1126_v30, %v1126_v30  ;;  %v956_v60 = vld [vmem:[#allocation2 + $0x1d0] sm:$0xff]  ;;  %v922_v1 = vld [vmem:[#allocation2 + $0xc0] sm:$0xff] }
 0x117   :  { %v1095_v37 = vadd.f32 %v2133_v4, %v1024_v26  ;;  %v1061_v39 = vadd.f32 %v2133_v4, %v990_v28  ;;  %v1124_v44 = vmax.f32 %v1060_v32, 0.0  ;;  %v1677_v49 = vpack.c.bf16 %v1158_v36, %v1158_v36  ;;  %v954_v22 = vld [vmem:[#allocation2 + $0x1c0] sm:$0xff]  ;;  %v925_v27 = vld [vmem:[#allocation2 + $0xd8] sm:$0xff] }
 0x118   :  { %v1093_v42 = vadd.f32 %v2133_v4, %v1022_v29  ;;  %v1156_v52 = vmax.f32 %v1092_v33, 0.0  ;;  %v1127_v47 = vmax.f32 %v1063_v35, 0.0  ;;  %1447 = vst.msk [vmem:[%s2680_s4 + $0x58] sm:$0xf] %vm1424_vm3, %v1645_v43  ;;  %v995_v34 = vmul.f32 %v2545_v59, %v924_v6  ;;  %v957_v41 = vld [vmem:[#allocation2 + $0x1d8] sm:$0xff]  ;;  %v923_v48 = vld [vmem:[#allocation2 + $0xc8] sm:$0xff] }
 0x119   :  { %v1159_v50 = vmax.f32 %v1095_v37, 0.0  ;;  %v1125_v51 = vmax.f32 %v1061_v39, 0.0  ;;  %v1643_v56 = vpack.c.bf16 %v1124_v44, %v1124_v44  ;;  %v955_v62 = vld [vmem:[#allocation2 + $0x1c8] sm:$0xff]  ;;  %1479 = vst.msk [vmem:[%s2680_s4 + $0xd8] sm:$0xf] %vm1424_vm3, %v1677_v49  ;;  %v1027_v5 = vmul.f32 %v2545_v59, %v956_v60  ;;  %v928_v13 = vld [vmem:[#allocation2 + $0xf0] sm:$0xff] }
 0x11a   :  { %v1157_v55 = vmax.f32 %v1093_v42, 0.0  ;;  %v1675_v4 = vpack.c.bf16 %v1156_v52, %v1156_v52  ;;  %v1646_v57 = vpack.c.bf16 %v1127_v47, %v1127_v47  ;;  %v1066_v54 = vadd.f32 %v2568_v46, %v995_v34  ;;  %v960_v19 = vld [vmem:[#allocation2 + $0x1f0] sm:$0xff]  ;;  %v926_v20 = vld [vmem:[#allocation2 + $0xe0] sm:$0xff] }
 0x11b   :  { %v1678_v40 = vpack.c.bf16 %v1159_v50, %v1159_v50  ;;  %v1644_v63 = vpack.c.bf16 %v1125_v51, %v1125_v51  ;;  %1445 = vst.msk [vmem:[%s2680_s4 + $0x50] sm:$0xf] %vm1424_vm3, %v1643_v56  ;;  %v993_v61 = vmul.f32 %v2545_v59, %v922_v1  ;;  %v1025_v3 = vmul.f32 %v2545_v59, %v954_v22  ;;  %v958_v26 = vld [vmem:[#allocation2 + $0x1e0] sm:$0xff]  ;;  %v929_v28 = vld [vmem:[#allocation2 + $0xf8] sm:$0xff] }
 0x11c   :  { %v1676_v2 = vpack.c.bf16 %v1157_v55, %v1157_v55  ;;  %1477 = vst.msk [vmem:[%s2680_s4 + $0xd0] sm:$0xf] %vm1424_vm3, %v1675_v4  ;;  %1448 = vst.msk [vmem:[%s2680_s4 + $0x5c] sm:$0xf] %vm1424_vm3, %v1646_v57  ;;  %v996_v11 = vmul.f32 %v2545_v59, %v925_v27  ;;  %v1098_v7 = vadd.f32 %v2568_v46, %v1027_v5  ;;  %v1130_v31 = vmax.f32 %v1066_v54, 0.0  ;;  %v961_v35 = vld [vmem:[#allocation2 + $0x1f8] sm:$0xff] }
 0x11d   :  { %1480 = vst.msk [vmem:[%s2680_s4 + $0xdc] sm:$0xf] %vm1424_vm3, %v1678_v40  ;;  %1446 = vst.msk [vmem:[%s2680_s4 + $0x54] sm:$0xf] %vm1424_vm3, %v1644_v63  ;;  %v1028_v9 = vmul.f32 %v2545_v59, %v957_v41  ;;  %v994_v8 = vmul.f32 %v2545_v59, %v923_v48  ;;  %v1026_v25 = vmul.f32 %v2545_v59, %v955_v62  ;;  %v927_v36 = vld [vmem:[#allocation2 + $0xe8] sm:$0xff] }
 0x11e   :  { %1478 = vst.msk [vmem:[%s2680_s4 + $0xd4] sm:$0xf] %vm1424_vm3, %v1676_v2  ;;  %v1064_v38 = vadd.f32 %v2568_v46, %v993_v61  ;;  %v1096_v10 = vadd.f32 %v2568_v46, %v1025_v3  ;;  %v1067_v45 = vadd.f32 %v2568_v46, %v996_v11  ;;  %v1162_v53 = vmax.f32 %v1098_v7, 0.0  ;;  %v959_v37 = vld [vmem:[#allocation2 + $0x1e8] sm:$0xff] }
 0x11f   :  { %v1099_v0 = vadd.f32 %v2568_v46, %v1028_v9  ;;  %v1065_v12 = vadd.f32 %v2568_v46, %v994_v8  ;;  %v1097_v58 = vadd.f32 %v2568_v46, %v1026_v25  ;;  %v1649_v15 = vpack.c.bf16 %v1130_v31, %v1130_v31 }
 0x120   :  { %v1128_v16 = vmax.f32 %v1064_v38, 0.0  ;;  %v1160_v17 = vmax.f32 %v1096_v10, 0.0  ;;  %v1131_v18 = vmax.f32 %v1067_v45, 0.0  ;;  %v1681_v21 = vpack.c.bf16 %v1162_v53, %v1162_v53 }
 0x121   :  { %v1163_v23 = vmax.f32 %v1099_v0, 0.0  ;;  %v1129_v24 = vmax.f32 %v1065_v12, 0.0  ;;  %v1161_v14 = vmax.f32 %v1097_v58, 0.0  ;;  %1451 = vst.msk [vmem:[%s2680_s4 + $0x68] sm:$0xf] %vm1424_vm3, %v1649_v15  ;;  %v999_v33 = vmul.f32 %v2545_v59, %v928_v13 }
 0x122   :  { %v1647_v29 = vpack.c.bf16 %v1128_v16, %v1128_v16  ;;  %v1679_v30 = vpack.c.bf16 %v1160_v17, %v1160_v17  ;;  %v1650_v32 = vpack.c.bf16 %v1131_v18, %v1131_v18  ;;  %1483 = vst.msk [vmem:[%s2680_s4 + $0xe8] sm:$0xf] %vm1424_vm3, %v1681_v21  ;;  %v1031_v43 = vmul.f32 %v2545_v59, %v960_v19 }
 0x123   :  { %v1682_v39 = vpack.c.bf16 %v1163_v23, %v1163_v23  ;;  %v1648_v42 = vpack.c.bf16 %v1129_v24, %v1129_v24  ;;  %v1680_v6 = vpack.c.bf16 %v1161_v14, %v1161_v14  ;;  %v1070_v44 = vadd.f32 %v2568_v46, %v999_v33 }
 0x124   :  { %1449 = vst.msk [vmem:[%s2680_s4 + $0x60] sm:$0xf] %vm1424_vm3, %v1647_v29  ;;  %1481 = vst.msk [vmem:[%s2680_s4 + $0xe0] sm:$0xf] %vm1424_vm3, %v1679_v30  ;;  %v997_v52 = vmul.f32 %v2545_v59, %v926_v20  ;;  %v1029_v47 = vmul.f32 %v2545_v59, %v958_v26  ;;  %v1000_v60 = vmul.f32 %v2545_v59, %v929_v28 }
 0x125   :  { %1452 = vst.msk [vmem:[%s2680_s4 + $0x6c] sm:$0xf] %vm1424_vm3, %v1650_v32  ;;  %1484 = vst.msk [vmem:[%s2680_s4 + $0xec] sm:$0xf] %vm1424_vm3, %v1682_v39  ;;  %v1102_v49 = vadd.f32 %v2568_v46, %v1031_v43  ;;  %v1032_v50 = vmul.f32 %v2545_v59, %v961_v35  ;;  %v998_v51 = vmul.f32 %v2545_v59, %v927_v36  ;;  %v1134_v1 = vmax.f32 %v1070_v44, 0.0 }
 0x126   :  { %1450 = vst.msk [vmem:[%s2680_s4 + $0x64] sm:$0xf] %vm1424_vm3, %v1648_v42  ;;  %1482 = vst.msk [vmem:[%s2680_s4 + $0xe4] sm:$0xf] %vm1424_vm3, %v1680_v6  ;;  %v1030_v55 = vmul.f32 %v2545_v59, %v959_v37  ;;  %v1068_v22 = vadd.f32 %v2568_v46, %v997_v52  ;;  %v1100_v27 = vadd.f32 %v2568_v46, %v1029_v47 }
 0x127   :  { %v1071_v56 = vadd.f32 %v2568_v46, %v1000_v60  ;;  %v1166_v4 = vmax.f32 %v1102_v49, 0.0  ;;  %v1103_v57 = vadd.f32 %v2568_v46, %v1032_v50  ;;  %v1069_v34 = vadd.f32 %v2568_v46, %v998_v51 }
 0x128   :  { %v1101_v41 = vadd.f32 %v2568_v46, %v1030_v55  ;;  %v1653_v48 = vpack.c.bf16 %v1134_v1, %v1134_v1  ;;  %v1132_v62 = vmax.f32 %v1068_v22, 0.0  ;;  %v1164_v40 = vmax.f32 %v1100_v27, 0.0 }
 0x129   :  { %v1135_v63 = vmax.f32 %v1071_v56, 0.0  ;;  %v1685_v2 = vpack.c.bf16 %v1166_v4, %v1166_v4  ;;  %v1167_v59 = vmax.f32 %v1103_v57, 0.0  ;;  %v1133_v5 = vmax.f32 %v1069_v34, 0.0 }
 0x12a   :  { %v1165_v54 = vmax.f32 %v1101_v41, 0.0  ;;  %1455 = vst.msk [vmem:[%s2680_s4 + $0x78] sm:$0xf] %vm1424_vm3, %v1653_v48  ;;  %v1651_v61 = vpack.c.bf16 %v1132_v62, %v1132_v62  ;;  %v1683_v3 = vpack.c.bf16 %v1164_v40, %v1164_v40 }
 0x12b   :  { %v1654_v11 = vpack.c.bf16 %v1135_v63, %v1135_v63  ;;  %1487 = vst.msk [vmem:[%s2680_s4 + $0xf8] sm:$0xf] %vm1424_vm3, %v1685_v2  ;;  %v1686_v46 = vpack.c.bf16 %v1167_v59, %v1167_v59  ;;  %v1652_v7 = vpack.c.bf16 %v1133_v5, %v1133_v5 }
 0x12c   :  { %v1684_v9 = vpack.c.bf16 %v1165_v54, %v1165_v54  ;;  %1453 = vst.msk [vmem:[%s2680_s4 + $0x70] sm:$0xf] %vm1424_vm3, %v1651_v61  ;;  %1485 = vst.msk [vmem:[%s2680_s4 + $0xf0] sm:$0xf] %vm1424_vm3, %v1683_v3 }
 0x12d   :  { %1456 = vst.msk [vmem:[%s2680_s4 + $0x7c] sm:$0xf] %vm1424_vm3, %v1654_v11  ;;  %1488 = vst.msk [vmem:[%s2680_s4 + $0xfc] sm:$0xf] %vm1424_vm3, %v1686_v46 }
 0x12e   :  { %1454 = vst.msk [vmem:[%s2680_s4 + $0x74] sm:$0xf] %vm1424_vm3, %v1652_v7  ;;  %1486 = vst.msk [vmem:[%s2680_s4 + $0xf4] sm:$0xf] %vm1424_vm3, %v1684_v9 }

// kernel: a_call__.8
= control target key start
LH: loop header
LB: loop body
LE: loop exit
PB: predicated region body
PF: predicated region fallthrough
CT: control target
= control target key end

     0   :  { %s2393_s18 = smov 0   ;;  %s2395_s19 = smov 0   ;;  %s3042_s0 = inlined_call_operand.vmem [shape: bf16[4,2,9,9,16], index: 0, kind: input, shape index: {}]   ;;  %s3043_s1 = inlined_call_operand.vmem [shape: bf16[2,72,8], index: 1, kind: input, shape index: {}]   ;;  %s3044_s2 = inlined_call_operand.vmem [shape: f32[1,1,16], index: 2, kind: input, shape index: {}]   ;;  %s3045_s3 = inlined_call_operand.vmem [shape: f32[1,1,16], index: 3, kind: input, shape index: {}]   ;;  %s3046_s4 = inlined_call_operand.vmem [shape: bf16[2,64,16], index: 4, kind: output, shape index: {0}]   ;;  %s3047_s5 = inlined_call_operand.vmem [shape: f32[2,1,16], index: 5, kind: output, shape index: {1}]  }
   0x1   :  { %s2397_s20 = smov 0   ;;  %s2399_s21 = smov 0  }
   0x2   :  { %s2401_s22 = smov 0  }
   0x3 LB: > { %s25_s23 = sadd.s32 1, %s2348_s21  ;;  %p44_p1 = scmp.ne.s32.totalorder %s2340_s19, %s2336_s18  ;;  %s2352_s22 = sphi %s2401_s22, %s16_s22   ;;  %s2348_s21 = sphi %s2399_s21, %s3053_s21   ;;  %s2344_s20 = sphi %s2397_s20, %s3052_s20   ;;  %s2340_s19 = sphi %s2395_s19, %s3051_s19   ;;  %s2336_s18 = sphi %s2393_s18, %s3050_s18  }
   0x4   : > { %p26_p0 = scmp.ge.s32.totalorder %s25_s23, 2  ;;  %p45_p2 = scmp.eq.s32.totalorder %s2352_s22, 0 }
   0x5   : > { %s37_s25 = sadd.s32 1, %s2340_s19  ;;  %p2027_p5 = scmp.ge.s32.totalorder %s2352_s22, 2 }
   0x6   : > { %s3055_s23 = smov (%p26_p0, %s25_s23), 0  ;;  %p46_p3 = por %p45_p2, %p44_p1 }
   0x7   : > { %s32_s24 = ssub.s32 %s2348_s21, %s3055_s23  ;;  %226 = sbr.rel (%p2027_p5) target bundleno = 35 (0x23), region = 28 }
   0x8   : > { %p35_p4 = scmp.eq.s32.totalorder %s32_s24, 0 }
   0xa   : > { %s2428_s26 = scalar_select %p35_p4, %s2340_s19, %s37_s25  }
   0xc   : > { %229 = sbr.rel (!%p46_p3) target bundleno = 35 (0x23), region = 32  ;;  %s231_s27 = sand.u32 (%p46_p3), 1, %s2340_s19  }
   0xd   : > { %s2229_s28 = smul.u32 (%p46_p3), 72, %s2348_s21 }
   0xe   : > { %s2228_s29 = smul.u32 (%p46_p3), 288, %s231_s27 }
   0xf   : > { %s2436_s7 = scalar_lea.vmem (%p46_p3), %s3042_s0, %s2229_s28 }
  0x10   : > { %v254_v0 = vld [vmem:[%s2436_s7] sm:$0xff] (%p46_p3)   ;;  %v258_v1 = vld [vmem:[%s2436_s7 + $0x8] sm:$0xff] (%p46_p3)   ;;  %v262_v2 = vld [vmem:[%s2436_s7 + $0x10] sm:$0xff] (%p46_p3)   ;;  %s2441_s8 = scalar_lea.vmem (%p46_p3), [#allocation2], %s2228_s29 }
  0x11   : > { %255 = vst [vmem:[%s2441_s8] sm:$0xff] %v254_v0   ;;  %259 = vst [vmem:[%s2441_s8 + $0x8] sm:$0xff] %v258_v1   ;;  %v266_v3 = vld [vmem:[%s2436_s7 + $0x18] sm:$0xff]   ;;  %v270_v4 = vld [vmem:[%s2436_s7 + $0x20] sm:$0xff]  }
  0x12   : > { %263 = vst [vmem:[%s2441_s8 + $0x10] sm:$0xff] %v262_v2   ;;  %v274_v5 = vld [vmem:[%s2436_s7 + $0x28] sm:$0xff]   ;;  %267 = vst [vmem:[%s2441_s8 + $0x18] sm:$0xff] %v266_v3   ;;  %v278_v6 = vld [vmem:[%s2436_s7 + $0x30] sm:$0xff]  }
  0x13   : > { %271 = vst [vmem:[%s2441_s8 + $0x20] sm:$0xff] %v270_v4   ;;  %275 = vst [vmem:[%s2441_s8 + $0x28] sm:$0xff] %v274_v5   ;;  %v282_v7 = vld [vmem:[%s2436_s7 + $0x38] sm:$0xff]   ;;  %v286_v8 = vld [vmem:[%s2436_s7 + $0x40] sm:$0xff]  }
  0x14   : > { %279 = vst [vmem:[%s2441_s8 + $0x30] sm:$0xff] %v278_v6   ;;  %283 = vst [vmem:[%s2441_s8 + $0x38] sm:$0xff] %v282_v7   ;;  %v290_v9 = vld [vmem:[%s2436_s7 + $0x90] sm:$0xff]   ;;  %v294_v10 = vld [vmem:[%s2436_s7 + $0x98] sm:$0xff]  }
  0x15   : > { %287 = vst [vmem:[%s2441_s8 + $0x40] sm:$0xff] %v286_v8   ;;  %v298_v11 = vld [vmem:[%s2436_s7 + $0xa0] sm:$0xff]   ;;  %291 = vst [vmem:[%s2441_s8 + $0x48] sm:$0xff] %v290_v9   ;;  %v302_v12 = vld [vmem:[%s2436_s7 + $0xa8] sm:$0xff]  }
  0x16   : > { %295 = vst [vmem:[%s2441_s8 + $0x50] sm:$0xff] %v294_v10   ;;  %299 = vst [vmem:[%s2441_s8 + $0x58] sm:$0xff] %v298_v11   ;;  %v306_v13 = vld [vmem:[%s2436_s7 + $0xb0] sm:$0xff]   ;;  %v310_v14 = vld [vmem:[%s2436_s7 + $0xb8] sm:$0xff]  }
  0x17   : > { %303 = vst [vmem:[%s2441_s8 + $0x60] sm:$0xff] %v302_v12   ;;  %307 = vst [vmem:[%s2441_s8 + $0x68] sm:$0xff] %v306_v13   ;;  %v314_v15 = vld [vmem:[%s2436_s7 + $0xc0] sm:$0xff]   ;;  %v318_v16 = vld [vmem:[%s2436_s7 + $0xc8] sm:$0xff]  }
  0x18   : > { %311 = vst [vmem:[%s2441_s8 + $0x70] sm:$0xff] %v310_v14   ;;  %v322_v17 = vld [vmem:[%s2436_s7 + $0xd0] sm:$0xff]   ;;  %315 = vst [vmem:[%s2441_s8 + $0x78] sm:$0xff] %v314_v15   ;;  %v326_v18 = vld [vmem:[%s2436_s7 + $0x120] sm:$0xff]  }
  0x19   : > { %319 = vst [vmem:[%s2441_s8 + $0x80] sm:$0xff] %v318_v16   ;;  %323 = vst [vmem:[%s2441_s8 + $0x88] sm:$0xff] %v322_v17   ;;  %v330_v19 = vld [vmem:[%s2436_s7 + $0x128] sm:$0xff]   ;;  %v334_v20 = vld [vmem:[%s2436_s7 + $0x130] sm:$0xff]  }
  0x1a   : > { %327 = vst [vmem:[%s2441_s8 + $0x90] sm:$0xff] %v326_v18   ;;  %331 = vst [vmem:[%s2441_s8 + $0x98] sm:$0xff] %v330_v19   ;;  %v338_v21 = vld [vmem:[%s2436_s7 + $0x138] sm:$0xff]   ;;  %v342_v22 = vld [vmem:[%s2436_s7 + $0x140] sm:$0xff]  }
  0x1b   : > { %335 = vst [vmem:[%s2441_s8 + $0xa0] sm:$0xff] %v334_v20   ;;  %v346_v23 = vld [vmem:[%s2436_s7 + $0x148] sm:$0xff]   ;;  %339 = vst [vmem:[%s2441_s8 + $0xa8] sm:$0xff] %v338_v21   ;;  %v350_v24 = vld [vmem:[%s2436_s7 + $0x150] sm:$0xff]  }
  0x1c   : > { %343 = vst [vmem:[%s2441_s8 + $0xb0] sm:$0xff] %v342_v22   ;;  %347 = vst [vmem:[%s2441_s8 + $0xb8] sm:$0xff] %v346_v23   ;;  %v354_v25 = vld [vmem:[%s2436_s7 + $0x158] sm:$0xff]   ;;  %v358_v26 = vld [vmem:[%s2436_s7 + $0x160] sm:$0xff]  }
  0x1d   : > { %351 = vst [vmem:[%s2441_s8 + $0xc0] sm:$0xff] %v350_v24   ;;  %355 = vst [vmem:[%s2441_s8 + $0xc8] sm:$0xff] %v354_v25   ;;  %v362_v27 = vld [vmem:[%s2436_s7 + $0x1b0] sm:$0xff]   ;;  %v366_v28 = vld [vmem:[%s2436_s7 + $0x1b8] sm:$0xff]  }
  0x1e   : > { %359 = vst [vmem:[%s2441_s8 + $0xd0] sm:$0xff] %v358_v26   ;;  %v370_v29 = vld [vmem:[%s2436_s7 + $0x1c0] sm:$0xff]   ;;  %363 = vst [vmem:[%s2441_s8 + $0xd8] sm:$0xff] %v362_v27   ;;  %v374_v30 = vld [vmem:[%s2436_s7 + $0x1c8] sm:$0xff]  }
  0x1f   : > { %367 = vst [vmem:[%s2441_s8 + $0xe0] sm:$0xff] %v366_v28   ;;  %371 = vst [vmem:[%s2441_s8 + $0xe8] sm:$0xff] %v370_v29   ;;  %v378_v31 = vld [vmem:[%s2436_s7 + $0x1d0] sm:$0xff]   ;;  %v382_v32 = vld [vmem:[%s2436_s7 + $0x1d8] sm:$0xff]  }
  0x20   : > { %375 = vst [vmem:[%s2441_s8 + $0xf0] sm:$0xff] %v374_v30   ;;  %379 = vst [vmem:[%s2441_s8 + $0xf8] sm:$0xff] %v378_v31   ;;  %v386_v33 = vld [vmem:[%s2436_s7 + $0x1e0] sm:$0xff]   ;;  %v390_v34 = vld [vmem:[%s2436_s7 + $0x1e8] sm:$0xff]  }
  0x21   : > { %383 = vst [vmem:[%s2441_s8 + $0x100] sm:$0xff] %v382_v32   ;;  %v394_v35 = vld [vmem:[%s2436_s7 + $0x1f0] sm:$0xff]   ;;  %387 = vst [vmem:[%s2441_s8 + $0x108] sm:$0xff] %v386_v33  }
  0x22   : > { %391 = vst [vmem:[%s2441_s8 + $0x110] sm:$0xff] %v390_v34   ;;  %395 = vst [vmem:[%s2441_s8 + $0x118] sm:$0xff] %v394_v35  }
  0x23 PF: > { %p2029_p6 = scmp.ge.s32.totalorder %s2352_s22, 1  ;;  %p564_p7 = scmp.lt.s32.totalorder %s2352_s22, 3 }
  0x25   : > { %p565_p8 = pnand %p2029_p6, %p564_p7 }
  0x26   : > { %s571_s9 = sand.u32 (!%p565_p8), 1, %s2336_s18   ;;  %s2354_s12 = smov (!%p565_p8), 120  }
  0x27   : > { %568 = sbr.rel (%p565_p8) target bundleno = 573 (0x23d), region = 73  ;;  %s2355_s13 = smov (!%p565_p8), 16  }
  0x28   : > { %s2230_s10 = smul.u32 (!%p565_p8), 288, %s571_s9  ;;  %s2356_s14 = smov (!%p565_p8), 24  }
  0x29   : > { %s2357_s15 = smov (!%p565_p8), 8   ;;  %s2358_s16 = smov (!%p565_p8), 32  }
  0x2a   : > { %s2515_s11 = scalar_lea.vmem (!%p565_p8), [#allocation2], %s2230_s10  ;;  %s2359_s17 = smov (!%p565_p8), 40  }
  0x2b   : > { %s2360_s18 = smov (!%p565_p8), 48   ;;  %s2361_s24 = smov (!%p565_p8), 56  }
  0x2c   : > { %v647_v36 = vld [vmem:[%s2515_s11] sm:$0xf]  ;;  %v648_v37 = vld [vmem:[%s2515_s11 + $0x8] sm:$0xf]  ;;  %vm672_vm0 = vsmask.f32 3328 }
  0x2d   : > { %v2042_v38 = vld [vmem:[%s2515_s11 + $0xa0] sm:$0xf]  ;;  %v690_v39 = vshrl.u32 %v648_v37, 16  ;;  %v693_v40 = vshll.u32 %v648_v37, 16  ;;  %v2520_v41 = vcombine.low %v647_v36, %v648_v37  ;;  %v676_v42 = vshrl.u32 %v647_v36, 16  ;;  %s2362_s10 = smov 64  }
  0x2e   : > { %v2043_v43 = vld [vmem:[%s2515_s11 + $0xa8] sm:$0xf]  ;;  %vm673_vm1 = vsmask.f32 7440  ;;  %v679_v44 = vshll.u32 %v647_v36, 16  ;;  %v842_v52 = vshrl.u32 %v2042_v38, 16 }
  0x2f   : > { %v856_v45 = vshrl.u32 %v2043_v43, 16  ;;  %v859_v46 = vshll.u32 %v2043_v43, 16  ;;  %v2523_v47 = vcombine.low %v2042_v38, %v2043_v43  ;;  %v649_v48 = vld [vmem:[%s2515_s11 + $0x10] sm:$0xf]  ;;  %v692_v49 = vrot.slane %v690_v39, 4  ;;  %1473 = vrot.lane.b32.xlu0 %v2520_v41, %s2354_s12  ;;  %vm2552_vm2 = vmor %vm672_vm0, %vm673_vm1  ;;  %p632_p9 = scmp.lt.s32.totalorder %s2344_s20, 1 }
  0x30   : > { %v695_v50 = vrot.slane %v693_v40, 5  ;;  %v678_v51 = vrot.slane %v676_v42, 4  ;;  %v650_v53 = vld [vmem:[%s2515_s11 + $0x18] sm:$0xf]  ;;  %v681_v54 = vrot.slane %v679_v44, 5  ;;  %v845_v57 = vshll.u32 %v2042_v38, 16 }
  0x31   : > { %v858_v55 = vrot.slane %v856_v45, 4  ;;  %v861_v56 = vrot.slane %v859_v46, 5  ;;  %1491 = vrot.lane.b32.xlu1 %v2523_v47, %s2355_s13  ;;  %v844_v59 = vrot.slane %v842_v52, 4  ;;  %v704_v60 = vshrl.u32 %v649_v48, 16  ;;  %v2532_v2 = vld [vmem:[%s2515_s11 + $0xe8] ss:$8 sps:$4 sm:$0xff]  }
  0x32   : > { %v696_v58 = vor.u32 %v695_v50, %v692_v49  ;;  %v707_v61 = vshll.u32 %v649_v48, 16  ;;  %v682_v62 = vor.u32 %v681_v54, %v678_v51  ;;  %v847_v0 = vrot.slane %v845_v57, 5  ;;  %v2040_v3 = vld [vmem:[%s2515_s11 + $0x90] sm:$0xf]  ;;  %v2041_v8 = vld [vmem:[%s2515_s11 + $0x98] sm:$0xf] }
  0x33   : > { %v862_v63 = vor.u32 %v861_v56, %v858_v55  ;;  %v718_v1 = vshrl.u32 %v650_v53, 16  ;;  %v706_v5 = vrot.slane %v704_v60, 4  ;;  %v721_v7 = vshll.u32 %v650_v53, 16  ;;  %v664_v13 = vld [vmem:[%s2515_s11 + $0x4] sm:$0x1]  ;;  %s3057_s20 = smov (!%p632_p9, %s2344_s20), 1 }
  0x34   : > { %v697_v4 = vrot.slane %v696_v58, 4  ;;  %v709_v6 = vrot.slane %v707_v61, 5  ;;  %v683_v9 = vrot.slane %v682_v62, 4  ;;  %v848_v11 = vor.u32 %v847_v0, %v844_v59  ;;  %v665_v18 = vld [vmem:[%s2515_s11 + $0xc] sm:$0x1]  ;;  %s645_s27 = scalar_lea.vmem %s3047_s5, %s3057_s20 }
  0x35   : > { %v2536_v10 = vrot.slane %v862_v63, 4  ;;  %v720_v12 = vrot.slane %v718_v1, 4  ;;  %1499 = vrot.lane.b32.xlu1 %v2532_v2, %s2356_s14  ;;  %v723_v14 = vrot.slane %v721_v7, 5  ;;  %v2541_v15 = vcombine.low %v649_v48, %v650_v53  ;;  %v666_v30 = vld [vmem:[%s2515_s11 + $0x14] sm:$0x1] }
  0x36   : > { %v814_v16 = vshrl.u32 %v2040_v3, 16  ;;  %v817_v17 = vshll.u32 %v2040_v3, 16  ;;  %v2544_v19 = vrot.slane %v848_v11, 4  ;;  %v828_v20 = vshrl.u32 %v2041_v8, 16  ;;  %v2558_v35 = vld [vmem:[%s2515_s11 + $0xd8] ss:$8 sps:$4 sm:$0xff]  }
  0x37   : > { %v831_v21 = vshll.u32 %v2041_v8, 16  ;;  %v2546_v22 = vcombine.low %v2040_v3, %v2041_v8  ;;  %1475 = vrot.lane.b32.xlu0 %v2541_v15, %s2354_s12  ;;  %v685_v25 = vshll.u32 %v664_v13, 16  ;;  %v699_v26 = vshll.u32 %v665_v18, 16  ;;  %v667_v36 = vld [vmem:[%s2515_s11 + $0x1c] sm:$0x1] }
  0x38   : > { %v816_v23 = vrot.slane %v814_v16, 4  ;;  %v819_v24 = vrot.slane %v817_v17, 5  ;;  %v830_v27 = vrot.slane %v828_v20, 4  ;;  %v710_v31 = vor.u32 %v709_v6, %v706_v5  ;;  %v2056_v43 = vld [vmem:[%s2515_s11 + $0x94] sm:$0x1] }
  0x39   : > { %v833_v28 = vrot.slane %v831_v21, 5  ;;  %v724_v32 = vor.u32 %v723_v14, %v720_v12  ;;  %v687_v33 = vrot.slane %v685_v25, 5  ;;  %v701_v34 = vrot.slane %v699_v26, 5  ;;  %v2057_v49 = vld [vmem:[%s2515_s11 + $0x9c] sm:$0x1] }
  0x3a   : > { %v713_v37 = vshll.u32 %v666_v30, 16  ;;  %v820_v38 = vor.u32 %v819_v24, %v816_v23  ;;  %v711_v39 = vrot.slane %v710_v31, 4  ;;  %v727_v42 = vshll.u32 %v667_v36, 16  ;;  %v2058_v51 = vld [vmem:[%s2515_s11 + $0xa4] sm:$0x1] }
  0x3b   : > { %v725_v40 = vrot.slane %v724_v32, 4  ;;  %v834_v44 = vor.u32 %v833_v28, %v830_v27  ;;  %1489 = vrot.lane.b32.xlu0 %v2546_v22, %s2355_s13  ;;  %v688_v45 = vsel %vm2552_vm2, %v683_v9, %v687_v33  ;;  %v702_v46 = vsel %vm2552_vm2, %v697_v4, %v701_v34  ;;  %v2059_v56 = vld [vmem:[%s2515_s11 + $0xac] sm:$0x1]  ;;  %v2064_v61 = vld [vmem:[%s2515_s11 + $0x8] sm:$0xf] }
  0x3c   : > { %v715_v48 = vrot.slane %v713_v37, 5  ;;  %v821_v50 = vrot.slane %v820_v38, 4  ;;  %v2570_v52 = vcombine.low %v688_v45, %v702_v46  ;;  %v729_v53 = vrot.slane %v727_v42, 5  ;;  %v2065_v0 = vld [vmem:[%s2515_s11 + $0x10] sm:$0xf] }
  0x3d   : > { %v823_v54 = vshll.u32 %v2056_v43, 16  ;;  %v835_v55 = vrot.slane %v834_v44, 4  ;;  %v837_v58 = vshll.u32 %v2057_v49, 16  ;;  %v851_v59 = vshll.u32 %v2058_v51, 16  ;;  %v2066_v8 = vld [vmem:[%s2515_s11 + $0x18] sm:$0xf] }
  0x3e   : > { %v716_v57 = vsel %vm2552_vm2, %v711_v39, %v715_v48  ;;  %v865_v60 = vshll.u32 %v2059_v56, 16  ;;  %1481 = vrot.lane.b32.xlu1 %v2570_v52, %s2357_s15  ;;  %v730_v62 = vsel %vm2552_vm2, %v725_v40, %v729_v53  ;;  %v952_v1 = vshrl.u32 %v2064_v61, 16  ;;  %v2067_v14 = vld [vmem:[%s2515_s11 + $0x20] sm:$0xf]  ;;  %v2080_v31 = vld [vmem:[%s2515_s11 + $0xc] sm:$0x1] }
  0x3f   : > { %v825_v63 = vrot.slane %v823_v54, 5  ;;  %v955_v3 = vshll.u32 %v2064_v61, 16  ;;  %1497 = vrot.lane.b32.xlu0 %v2558_v35, %s2356_s14  ;;  %v2583_v4 = vcombine.low %v716_v57, %v730_v62  ;;  %v839_v5 = vrot.slane %v837_v58, 5  ;;  %v2081_v37 = vld [vmem:[%s2515_s11 + $0x14] sm:$0x1] }
  0x40   : > { %v853_v6 = vrot.slane %v851_v59, 5  ;;  %v867_v7 = vrot.slane %v865_v60, 5  ;;  %v954_v11 = vrot.slane %v952_v1, 4  ;;  %v966_v13 = vshrl.u32 %v2065_v0, 16  ;;  %v2614_v40 = vld [vmem:[%s2515_s11 + $0x50] ss:$8 sps:$4 sm:$0xff]  }
  0x41   : > { %v826_v9 = vsel %vm2552_vm2, %v821_v50, %v825_v63  ;;  %v957_v12 = vrot.slane %v955_v3, 5  ;;  %v840_v16 = vsel %vm2552_vm2, %v835_v55, %v839_v5  ;;  %v969_v20 = vshll.u32 %v2065_v0, 16  ;;  %v651_v45 = vld [vmem:[%s2515_s11 + $0x20] sm:$0xf]  ;;  %v652_v48 = vld [vmem:[%s2515_s11 + $0x28] sm:$0xf] }
  0x42   : > { %v854_v17 = vsel %vm2552_vm2, %v2544_v19, %v853_v6  ;;  %v868_v18 = vsel %vm2552_vm2, %v2536_v10, %v867_v7  ;;  %1483 = vrot.lane.b32.xlu1 %v2583_v4, %s2357_s15  ;;  %v2599_v21 = vcombine.low %v826_v9, %v840_v16  ;;  %v968_v24 = vrot.slane %v966_v13, 4  ;;  %v2621_v53 = vld [vmem:[%s2515_s11 + $0x60] ss:$8 sps:$4 sm:$0xff]   ;;  %v2082_v58 = vld [vmem:[%s2515_s11 + $0x1c] sm:$0x1] }
  0x43   : > { %v2601_v23 = vcombine.low %v854_v17, %v868_v18  ;;  %v971_v25 = vrot.slane %v969_v20, 5  ;;  %v980_v26 = vshrl.u32 %v2066_v8, 16  ;;  %v983_v27 = vshll.u32 %v2066_v8, 16  ;;  %v2083_v63 = vld [vmem:[%s2515_s11 + $0x24] sm:$0x1] }
  0x44   : > { %v994_v19 = vshrl.u32 %v2067_v14, 16  ;;  %1505 = vrot.lane.b32.xlu0 %v2599_v21, %s2358_s16  ;;  %v2605_v10 = vcombine.low %v2064_v61, %v2065_v0  ;;  %v997_v28 = vshll.u32 %v2067_v14, 16  ;;  %v2607_v30 = vcombine.low %v2066_v8, %v2067_v14  ;;  %v653_v0 = vld [vmem:[%s2515_s11 + $0x30] sm:$0xf]  ;;  %v654_v7 = vld [vmem:[%s2515_s11 + $0x38] sm:$0xf] }
  0x45   : > { %v958_v32 = vor.u32 %v957_v12, %v954_v11  ;;  %v982_v33 = vrot.slane %v980_v26, 4  ;;  %v985_v34 = vrot.slane %v983_v27, 5  ;;  %v961_v38 = vshll.u32 %v2080_v31, 16  ;;  %v668_v18 = vld [vmem:[%s2515_s11 + $0x24] sm:$0x1] }
  0x46   : > { %v996_v36 = vrot.slane %v994_v19, 4  ;;  %1507 = vrot.lane.b32.xlu1 %v2601_v23, %s2358_s16  ;;  %v999_v39 = vrot.slane %v997_v28, 5  ;;  %v972_v43 = vor.u32 %v971_v25, %v968_v24  ;;  %v975_v44 = vshll.u32 %v2081_v37, 16  ;;  %v669_v27 = vld [vmem:[%s2515_s11 + $0x2c] sm:$0x1] }
  0x47   : > { %v959_v42 = vrot.slane %v958_v32, 4  ;;  %v963_v46 = vrot.slane %v961_v38, 5  ;;  %v732_v49 = vshrl.u32 %v651_v45, 16  ;;  %v735_v50 = vshll.u32 %v651_v45, 16  ;;  %v2771_v29 = vld [vmem:[%s2515_s11 + $0x48] ss:$8 sps:$4 sm:$0xff]  }
  0x48   : > { %v986_v51 = vor.u32 %v985_v34, %v982_v33  ;;  %1513 = vrot.lane.b32.xlu0 %v2605_v10, %s2359_s17  ;;  %v973_v54 = vrot.slane %v972_v43, 4  ;;  %v977_v55 = vrot.slane %v975_v44, 5  ;;  %v746_v56 = vshrl.u32 %v652_v48, 16  ;;  %v670_v33 = vld [vmem:[%s2515_s11 + $0x34] sm:$0x1] }
  0x49   : > { %v749_v57 = vshll.u32 %v652_v48, 16  ;;  %v964_v59 = vsel %vm2552_vm2, %v959_v42, %v963_v46  ;;  %v734_v60 = vrot.slane %v732_v49, 4  ;;  %v737_v61 = vrot.slane %v735_v50, 5  ;;  %v2044_v42 = vld [vmem:[%s2515_s11 + $0xb0] sm:$0xf] }
  0x4a   : > { %v2626_v62 = vcombine.low %v651_v45, %v652_v48  ;;  %1515 = vrot.lane.b32.xlu1 %v2607_v30, %s2359_s17  ;;  %v978_v1 = vsel %vm2552_vm2, %v973_v54, %v977_v55  ;;  %v748_v3 = vrot.slane %v746_v56, 4  ;;  %v987_v6 = vrot.slane %v986_v51, 4  ;;  %v2045_v48 = vld [vmem:[%s2515_s11 + $0xb8] sm:$0xf] }
  0x4b   : > { %v751_v5 = vrot.slane %v749_v57, 5  ;;  %v2635_v8 = vcombine.low %v964_v59, %v978_v1  ;;  %v989_v9 = vshll.u32 %v2082_v58, 16  ;;  %v1000_v11 = vor.u32 %v999_v39, %v996_v36  ;;  %v671_v39 = vld [vmem:[%s2515_s11 + $0x3c] sm:$0x1]  ;;  %v2046_v59 = vld [vmem:[%s2515_s11 + $0xc0] sm:$0xf] }
  0x4c   : > { %v1003_v12 = vshll.u32 %v2083_v63, 16  ;;  %1521 = vrot.lane.b32.xlu0 %v2614_v40, %s2360_s18  ;;  %v760_v13 = vshrl.u32 %v653_v0, 16  ;;  %v763_v14 = vshll.u32 %v653_v0, 16  ;;  %v774_v16 = vshrl.u32 %v654_v7, 16 }
  0x4d   : > { %v777_v17 = vshll.u32 %v654_v7, 16  ;;  %v991_v20 = vrot.slane %v989_v9, 5  ;;  %v1001_v24 = vrot.slane %v1000_v11, 4  ;;  %v2640_v26 = vcombine.low %v653_v0, %v654_v7 }
  0x4e   : > { %v1005_v25 = vrot.slane %v1003_v12, 5  ;;  %1523 = vrot.lane.b32.xlu1 %v2621_v53, %s2360_s18  ;;  %v762_v19 = vrot.slane %v760_v13, 4  ;;  %v765_v28 = vrot.slane %v763_v14, 5  ;;  %v776_v31 = vrot.slane %v774_v16, 4  ;;  %v2047_v13 = vld [vmem:[%s2515_s11 + $0xc8] sm:$0xf] }
  0x4f   : > { %v779_v32 = vrot.slane %v777_v17, 5  ;;  %v992_v34 = vsel %vm2552_vm2, %v987_v6, %v991_v20  ;;  %v738_v37 = vor.u32 %v737_v61, %v734_v60  ;;  %v741_v38 = vshll.u32 %v668_v18, 16  ;;  %v2060_v20 = vld [vmem:[%s2515_s11 + $0xb4] sm:$0x1] }
  0x50   : > { %v1006_v36 = vsel %vm2552_vm2, %v1001_v24, %v1005_v25  ;;  %1529 = vrot.lane.b32.xlu0 %v2635_v8, %s2361_s24  ;;  %v752_v44 = vor.u32 %v751_v5, %v748_v3  ;;  %v755_v45 = vshll.u32 %v669_v27, 16  ;;  %v766_v46 = vor.u32 %v765_v28, %v762_v19  ;;  %v2061_v28 = vld [vmem:[%s2515_s11 + $0xbc] sm:$0x1] }
  0x51   : > { %v2654_v43 = vcombine.low %v992_v34, %v1006_v36  ;;  %v739_v49 = vrot.slane %v738_v37, 4  ;;  %v743_v50 = vrot.slane %v741_v38, 5  ;;  %v769_v51 = vshll.u32 %v670_v33, 16  ;;  %v2062_v36 = vld [vmem:[%s2515_s11 + $0xc4] sm:$0x1] }
  0x52   : > { %v780_v54 = vor.u32 %v779_v32, %v776_v31  ;;  %1477 = vrot.lane.b32.xlu1 %v2626_v62, %s2354_s12  ;;  %v753_v55 = vrot.slane %v752_v44, 4  ;;  %v757_v56 = vrot.slane %v755_v45, 5  ;;  %v767_v57 = vrot.slane %v766_v46, 4  ;;  %v2063_v37 = vld [vmem:[%s2515_s11 + $0xcc] sm:$0x1] }
  0x53   : > { %v783_v58 = vshll.u32 %v671_v39, 16  ;;  %v744_v60 = vsel %vm2552_vm2, %v739_v49, %v743_v50  ;;  %v771_v61 = vrot.slane %v769_v51, 5  ;;  %v870_v0 = vshrl.u32 %v2044_v42, 16  ;;  %v2068_v45 = vld [vmem:[%s2515_s11 + $0x28] sm:$0xf] }
  0x54   : > { %v781_v63 = vrot.slane %v780_v54, 4  ;;  %1531 = vrot.lane.b32.xlu0 %v2654_v43, %s2361_s24  ;;  %v758_v1 = vsel %vm2552_vm2, %v753_v55, %v757_v56  ;;  %v873_v5 = vshll.u32 %v2044_v42, 16  ;;  %v884_v6 = vshrl.u32 %v2045_v48, 16  ;;  %v2691_v49 = vld [vmem:[%s2515_s11 + $0xf8] ss:$8 sps:$4 sm:$0xff]  }
  0x55   : > { %v785_v3 = vrot.slane %v783_v58, 5  ;;  %v2666_v7 = vcombine.low %v744_v60, %v758_v1  ;;  %v772_v9 = vsel %vm2552_vm2, %v767_v57, %v771_v61  ;;  %v872_v11 = vrot.slane %v870_v0, 4  ;;  %v2069_v54 = vld [vmem:[%s2515_s11 + $0x30] sm:$0xf] }
  0x56   : > { %v887_v12 = vshll.u32 %v2045_v48, 16  ;;  %1479 = vrot.lane.b32.xlu1 %v2640_v26, %s2354_s12  ;;  %v875_v16 = vrot.slane %v873_v5, 5  ;;  %v886_v17 = vrot.slane %v884_v6, 4  ;;  %v2675_v18 = vcombine.low %v2044_v42, %v2045_v48 }
  0x57   : > { %v786_v14 = vsel %vm2552_vm2, %v781_v63, %v785_v3  ;;  %v898_v27 = vshrl.u32 %v2046_v59, 16  ;;  %v901_v19 = vshll.u32 %v2046_v59, 16  ;;  %v912_v31 = vshrl.u32 %v2047_v13, 16 }
  0x58   : > { %v2678_v24 = vcombine.low %v772_v9, %v786_v14  ;;  %v889_v25 = vrot.slane %v887_v12, 5  ;;  %1485 = vrot.lane.b32.xlu0 %v2666_v7, %s2357_s15  ;;  %v915_v32 = vshll.u32 %v2047_v13, 16  ;;  %v2683_v33 = vcombine.low %v2046_v59, %v2047_v13  ;;  %v2697_v59 = vld [vmem:[%s2515_s11 + $0x108] ss:$8 sps:$4 sm:$0xff]   ;;  %v2070_v9 = vld [vmem:[%s2515_s11 + $0x38] sm:$0xf] }
  0x59   : > { %v876_v34 = vor.u32 %v875_v16, %v872_v11  ;;  %v900_v38 = vrot.slane %v898_v27, 4  ;;  %v903_v39 = vrot.slane %v901_v19, 5  ;;  %v879_v42 = vshll.u32 %v2060_v20, 16  ;;  %v2071_v14 = vld [vmem:[%s2515_s11 + $0x40] sm:$0xf] }
  0x5a   : > { %v890_v44 = vor.u32 %v889_v25, %v886_v17  ;;  %1487 = vrot.lane.b32.xlu1 %v2678_v24, %s2357_s15  ;;  %v914_v46 = vrot.slane %v912_v31, 4  ;;  %v917_v48 = vrot.slane %v915_v32, 5  ;;  %v893_v51 = vshll.u32 %v2061_v28, 16  ;;  %v2084_v32 = vld [vmem:[%s2515_s11 + $0x2c] sm:$0x1] }
  0x5b   : > { %v877_v50 = vrot.slane %v876_v34, 4  ;;  %v881_v55 = vrot.slane %v879_v42, 5  ;;  %v904_v57 = vor.u32 %v903_v39, %v900_v38  ;;  %v907_v58 = vshll.u32 %v2062_v36, 16  ;;  %v2085_v34 = vld [vmem:[%s2515_s11 + $0x34] sm:$0x1] }
  0x5c   : > { %v891_v56 = vrot.slane %v890_v44, 4  ;;  %1493 = vrot.lane.b32.xlu0 %v2675_v18, %s2355_s13  ;;  %v895_v60 = vrot.slane %v893_v51, 5  ;;  %v918_v61 = vor.u32 %v917_v48, %v914_v46  ;;  %v921_v63 = vshll.u32 %v2063_v37, 16  ;;  %v2086_v42 = vld [vmem:[%s2515_s11 + $0x3c] sm:$0x1] }
  0x5d   : > { %v1008_v0 = vshrl.u32 %v2068_v45, 16  ;;  %v882_v1 = vsel %vm2552_vm2, %v877_v50, %v881_v55  ;;  %v905_v3 = vrot.slane %v904_v57, 4  ;;  %v909_v5 = vrot.slane %v907_v58, 5  ;;  %v2087_v51 = vld [vmem:[%s2515_s11 + $0x44] sm:$0x1] }
  0x5e   : > { %v1011_v6 = vshll.u32 %v2068_v45, 16  ;;  %1495 = vrot.lane.b32.xlu1 %v2683_v33, %s2355_s13  ;;  %v896_v11 = vsel %vm2552_vm2, %v891_v56, %v895_v60  ;;  %v919_v12 = vrot.slane %v918_v61, 4  ;;  %v923_v13 = vrot.slane %v921_v63, 5 }
  0x5f   : > { %v910_v16 = vsel %vm2552_vm2, %v905_v3, %v909_v5  ;;  %v1010_v17 = vrot.slane %v1008_v0, 4  ;;  %v1022_v25 = vshrl.u32 %v2069_v54, 16  ;;  %v2711_v27 = vcombine.low %v882_v1, %v896_v11 }
  0x60   : > { %v1013_v20 = vrot.slane %v1011_v6, 5  ;;  %1501 = vrot.lane.b32.xlu0 %v2691_v49, %s2356_s14  ;;  %v924_v19 = vsel %vm2552_vm2, %v919_v12, %v923_v13  ;;  %v1025_v28 = vshll.u32 %v2069_v54, 16  ;;  %v1036_v31 = vshrl.u32 %v2070_v9, 16  ;;  %v2732_v6 = vld [vmem:[%s2515_s11 + $0x70] ss:$8 sps:$4 sm:$0xff]  }
  0x61   : > { %v1024_v36 = vrot.slane %v1022_v25, 4  ;;  %v2717_v37 = vcombine.low %v2068_v45, %v2069_v54  ;;  %v1039_v38 = vshll.u32 %v2070_v9, 16  ;;  %v1050_v39 = vshrl.u32 %v2071_v14, 16 }
  0x62   : > { %1503 = vrot.lane.b32.xlu1 %v2697_v59, %s2356_s14  ;;  %v2722_v44 = vcombine.low %v910_v16, %v924_v19  ;;  %v1027_v46 = vrot.slane %v1025_v28, 5  ;;  %v1038_v48 = vrot.slane %v1036_v31, 4  ;;  %v1053_v50 = vshll.u32 %v2071_v14, 16  ;;  %v2305_v31 = vld [vmem:[%s3043_s1 + $0x3c] sm:$0xff]  }
  0x63   : > { %v1041_v55 = vrot.slane %v1039_v38, 5  ;;  %v1052_v56 = vrot.slane %v1050_v39, 4  ;;  %v1014_v57 = vor.u32 %v1013_v20, %v1010_v17  ;;  %v1017_v58 = vshll.u32 %v2084_v32, 16  ;;  %v2306_v39 = vld [vmem:[%s3043_s1 + $0x34] sm:$0xff]  }
  0x64   : > { %1509 = vrot.lane.b32.xlu0 %v2711_v27, %s2358_s16  ;;  %v1055_v45 = vrot.slane %v1053_v50, 5  ;;  %v1028_v54 = vor.u32 %v1027_v46, %v1024_v36  ;;  %v1031_v60 = vshll.u32 %v2085_v34, 16  ;;  %v1045_v61 = vshll.u32 %v2086_v42, 16  ;;  %v2776_v46 = vld [vmem:[%s2515_s11 + $0x58] ss:$8 sps:$4 sm:$0xff]  }
  0x65   : > { %v1015_v63 = vrot.slane %v1014_v57, 4  ;;  %v1019_v0 = vrot.slane %v1017_v58, 5  ;;  %v1042_v1 = vor.u32 %v1041_v55, %v1038_v48  ;;  %v1059_v3 = vshll.u32 %v2087_v51, 16  ;;  %v2307_v48 = vld [vmem:[%s3043_s1 + $0x2c] sm:$0xff]   ;;  %v2309_v50 = vld [vmem:[%s3043_s1 + $0x20] ss:$0 sps:$4 sm:$0xff]  }
  0x66   : > { %1511 = vrot.lane.b32.xlu1 %v2722_v44, %s2358_s16  ;;  %v2729_v5 = vcombine.low %v2070_v9, %v2071_v14  ;;  %v1029_v11 = vrot.slane %v1028_v54, 4  ;;  %v1033_v12 = vrot.slane %v1031_v60, 5  ;;  %v1056_v13 = vor.u32 %v1055_v45, %v1052_v56  ;;  %v2743_v9 = vld [vmem:[%s2515_s11 + $0x80] ss:$8 sps:$4 sm:$0xff]   ;;  %v2304_v14 = vld [vmem:[%s3043_s1 + $0x44] ss:$0 sps:$4 sm:$0xff]  }
  0x67   : > { %v1043_v16 = vrot.slane %v1042_v1, 4  ;;  %v1047_v17 = vrot.slane %v1045_v61, 5  ;;  %v1061_v20 = vrot.slane %v1059_v3, 5  ;;  %v1020_v19 = vsel %vm2552_vm2, %v1015_v63, %v1019_v0  ;;  %v2308_v55 = vld [vmem:[%s3043_s1 + $0x24] sm:$0xff]   ;;  %v2310_v56 = vld [vmem:[%s3043_s1 + $0x18] sm:$0xff]   ;;  %v2311_v57 = vld [vmem:[%s3043_s1 + $0x10] sm:$0xff]  }
  0x68   : > { %1517 = vrot.lane.b32.xlu0 %v2717_v37, %s2359_s17  ;;  %v1057_v25 = vrot.slane %v1056_v13, 4  ;;  %v1034_v28 = vsel %vm2552_vm2, %v1029_v11, %v1033_v12  ;;  %vm1404_vm3 = vcmask 1043456   ;;  %vm1283_vm4 = vcmask 64512  }
  0x69   : > { %v1048_v32 = vsel %vm2552_vm2, %v1043_v16, %v1047_v17  ;;  %v2757_v36 = vcombine.low %v1020_v19, %v1034_v28  ;;  %2227 = vmatprep.subr.msk.bf16.mxu1 %vm1404_vm3, %v2304_v14  ;;  %v1651_v38 = vsel %vm1404_vm3, %v2304_v14, 0  ;;  %2226 = vmatprep.subr.msk.bf16.mxu0 %vm1404_vm3, %v2309_v50  ;;  %v1406_v51 = vsel %vm1404_vm3, %v2309_v50, 0 }
  0x6a   : > { %1519 = vrot.lane.b32.xlu1 %v2729_v5, %s2359_s17  ;;  %v1062_v34 = vsel %vm2552_vm2, %v1057_v25, %v1061_v20  ;;  %2209 = vmatpush3.bf16.msra.mxu1 %v1651_v38  ;;  %vm1296_vm5 = vcmask 130048   ;;  %vm1305_vm6 = vcmask 195584   ;;  %vm1314_vm7 = vcmask 261120  }
  0x6b   : > { %v2766_v42 = vcombine.low %v1048_v32, %v1062_v34  ;;  %2210 = vmatprep.subr.bf16.mxu1 %v2305_v31  ;;  %2191 = vmatpush3.bf16.msra.mxu0 %v1406_v51  ;;  %vm1323_vm8 = vcmask 326656   ;;  %vm1332_vm9 = vcmask 392192   ;;  %vm1341_vm10 = vcmask 457728  }
  0x6c   : > { %1525 = vrot.lane.b32.xlu0 %v2732_v6, %s2360_s18  ;;  %2192 = vmatprep.subr.bf16.mxu0 %v2310_v56  ;;  %vm1350_vm11 = vcmask 523264   ;;  %vm1395_vm12 = vcmask 588800   ;;  %vm1828_vm13 = vcmask 125952   ;;  %vm1859_vm14 = vcmask 122880  }
  0x6e   : > { %1527 = vrot.lane.b32.xlu1 %v2743_v9, %s2360_s18  ;;  %2211 = vmatpush3.bf16.msra.mxu1 %v2305_v31 }
  0x6f   : > { %2212 = vmatprep.subr.bf16.mxu1 %v2306_v39  ;;  %2193 = vmatpush3.bf16.msra.mxu0 %v2310_v56 }
  0x70   : > { %1533 = vrot.lane.b32.xlu0 %v2757_v36, %s2361_s24  ;;  %2194 = vmatprep.subr.bf16.mxu0 %v2311_v57 }
  0x72   : > { %1535 = vrot.lane.b32.xlu1 %v2766_v42, %s2361_s24  ;;  %2213 = vmatpush3.bf16.msra.mxu1 %v2306_v39 }
  0x73   : > { %2214 = vmatprep.subr.bf16.mxu1 %v2307_v48  ;;  %2195 = vmatpush3.bf16.msra.mxu0 %v2311_v57 }
  0x74   : > { %1103 = vrot.lane.b32.xlu0 %v2771_v29, %s2357_s15 }
  0x76   : > { %1105 = vrot.lane.b32.xlu1 %v2776_v46, %s2357_s15  ;;  %2215 = vmatpush3.bf16.msra.mxu1 %v2307_v48 }
  0x77   : > { %2216 = vmatprep.subr.bf16.mxu1 %v2308_v55 }
  0x78   : > { %1123 = vrot.lane.b32.xlu0 %v2570_v52, %s2355_s13  ;;  %v2312_v52 = vld [vmem:[%s3043_s1 + $0x8] sm:$0xff]  }
  0x79   : > { %2196 = vmatprep.subr.bf16.mxu0 %v2312_v52 }
  0x7a   : > { %1125 = vrot.lane.b32.xlu1 %v2583_v4, %s2355_s13  ;;  %2217 = vmatpush3.bf16.msra.mxu1 %v2308_v55 }
  0x7b   : > { %2197 = vmatpush3.bf16.msra.mxu0 %v2312_v52 }
  0x7c   : > { %1151 = vrot.lane.b32.xlu0 %v2546_v22, %s2356_s14  ;;  %v2313_v22 = vld [vmem:[%s3043_s1] sm:$0xff]  }
  0x7d   : > { %2198 = vmatprep.subr.bf16.mxu0 %v2313_v22 }
  0x7e   : > { %1153 = vrot.lane.b32.xlu1 %v2523_v47, %s2356_s14  ;;  %v2830_v47 = vld [vmem:[%s2515_s11 + $0x68] ss:$8 sps:$4 sm:$0xff]  }
  0x7f   : > { %2199 = vmatpush3.bf16.msra.mxu0 %v2313_v22 }
  0x80   : > { %1179 = vrot.lane.b32.xlu0 %v2558_v35, %s2358_s16 }
  0x82   : > { %1181 = vrot.lane.b32.xlu1 %v2532_v2, %s2358_s16  ;;  %v2836_v2 = vld [vmem:[%s2515_s11 + $0x78] ss:$8 sps:$4 sm:$0xff]  }
  0x84   : > { %1199 = vrot.lane.b32.xlu0 %v2599_v21, %s2359_s17 }
  0x86   : > { %1201 = vrot.lane.b32.xlu1 %v2601_v23, %s2359_s17 }
  0x88   : > { %1227 = vrot.lane.b32.xlu0 %v2605_v10, %s2360_s18 }
  0x8a   : > { %1229 = vrot.lane.b32.xlu1 %v2607_v30, %s2360_s18 }
  0x8c   : > { %1255 = vrot.lane.b32.xlu0 %v2614_v40, %s2361_s24 }
  0x8e   : > { %1257 = vrot.lane.b32.xlu1 %v2621_v53, %s2361_s24 }
  0x90   : > { %1275 = vrot.lane.b32.xlu0 %v2635_v8, %s2362_s10 }
  0x92   : > { %1107 = vrot.lane.b32.xlu1 %v2830_v47, %s2357_s15 }
  0x94   : > { %1277 = vrot.lane.b32.xlu0 %v2654_v43, %s2362_s10 }
  0x96   : > { %1109 = vrot.lane.b32.xlu1 %v2836_v2, %s2357_s15 }
  0x98   : > { %1127 = vrot.lane.b32.xlu0 %v2666_v7, %s2355_s13 }
  0x9a   : > { %1129 = vrot.lane.b32.xlu1 %v2678_v24, %s2355_s13 }
  0x9c   : > { %1155 = vrot.lane.b32.xlu0 %v2675_v18, %s2356_s14 }
  0x9e   : > { %1157 = vrot.lane.b32.xlu1 %v2683_v33, %s2356_s14 }
  0xa0   : > { %1183 = vrot.lane.b32.xlu0 %v2691_v49, %s2358_s16 }
  0xa1   : > { %v1474_v35 = vpop.permute.xlu0 %1473 }
  0xa2   : > { %1185 = vrot.lane.b32.xlu1 %v2697_v59, %s2358_s16  ;;  %v1539_v43 = vsel %vm1283_vm4, %v1474_v35, %v2771_v29 }
  0xa3   : > { %v1492_v4 = vpop.permute.xlu1 %1491 }
  0xa4   : > { %1203 = vrot.lane.b32.xlu0 %v2711_v27, %s2359_s17 }
  0xa6   : > { %1205 = vrot.lane.b32.xlu1 %v2722_v44, %s2359_s17 }
  0xa7   : > { %v1500_v23 = vpop.permute.xlu1 %1499 }
  0xa8   : > { %1231 = vrot.lane.b32.xlu0 %v2717_v37, %s2360_s18 }
  0xa9   : > { %v1476_v21 = vpop.permute.xlu0 %1475 }
  0xaa   : > { %1233 = vrot.lane.b32.xlu1 %v2729_v5, %s2360_s18  ;;  %v1542_v24 = vsel %vm1283_vm4, %v1476_v21, %v2776_v46 }
  0xac   : > { %1259 = vrot.lane.b32.xlu0 %v2732_v6, %s2361_s24 }
  0xad   : > { %v1490_v10 = vpop.permute.xlu0 %1489 }
  0xae   : > { %1261 = vrot.lane.b32.xlu1 %v2743_v9, %s2361_s24 }
  0xb0   : > { %v1482_v30 = vpop.permute.xlu1 %1481  ;;  %1279 = vrot.lane.b32.xlu0 %v2757_v36, %s2362_s10 }
  0xb1   : > { %v1498_v40 = vpop.permute.xlu0 %1497  ;;  %v1550_v18 = vsel %vm1296_vm5, %v1539_v43, %v1482_v30 }
  0xb2   : > { %1281 = vrot.lane.b32.xlu1 %v2766_v42, %s2362_s10  ;;  %v1558_v59 = vsel %vm1305_vm6, %v1550_v18, %v1490_v10 }
  0xb3   : > { %v1566_v58 = vsel %vm1314_vm7, %v1558_v59, %v1498_v40 }
  0xb4   : > { %v1484_v53 = vpop.permute.xlu1 %1483 }
  0xb5   : > { %v1552_v49 = vsel %vm1296_vm5, %v1542_v24, %v1484_v53 }
  0xb6   : > { %v1506_v8 = vpop.permute.xlu0 %1505  ;;  %v1560_v37 = vsel %vm1305_vm6, %v1552_v49, %v1492_v4 }
  0xb7   : > { %v1574_v45 = vsel %vm1323_vm8, %v1566_v58, %v1506_v8  ;;  %v1568_v60 = vsel %vm1314_vm7, %v1560_v37, %v1500_v23 }
  0xb8   : > { %v1508_v7 = vpop.permute.xlu1 %1507 }
  0xb9   : > { %v1576_v3 = vsel %vm1323_vm8, %v1568_v60, %v1508_v7 }
  0xba   : > { %v1514_v33 = vpop.permute.xlu0 %1513 }
  0xbb   : > { %v1582_v61 = vsel %vm1332_vm9, %v1574_v45, %v1514_v33 }
  0xbc   : > { %v1516_v27 = vpop.permute.xlu1 %1515 }
  0xbd   : > { %v1584_v6 = vsel %vm1332_vm9, %v1576_v3, %v1516_v27 }
  0xbe   : > { %v1522_v44 = vpop.permute.xlu0 %1521 }
  0xbf   : > { %v1590_v63 = vsel %vm1341_vm10, %v1582_v61, %v1522_v44 }
  0xc0   : > { %v1524_v54 = vpop.permute.xlu1 %1523 }
  0xc1   : > { %v1592_v11 = vsel %vm1341_vm10, %v1584_v6, %v1524_v54 }
  0xc2   : > { %v1530_v0 = vpop.permute.xlu0 %1529 }
  0xc3   : > { %v1598_v1 = vsel %vm1350_vm11, %v1590_v63, %v1530_v0 }
  0xc4   : > { %v1478_v5 = vpop.permute.xlu1 %1477  ;;  %2218 = vmatprep.mubr.msk.bf16.mxu1 %vm1395_vm12, %v1598_v1 }
  0xc5   : > { %v1545_v34 = vsel %vm1283_vm4, %v1478_v5, %v2830_v47 }
  0xc6   : > { %v1532_v12 = vpop.permute.xlu0 %1531 }
  0xc7   : > { %v1600_v13 = vsel %vm1350_vm11, %v1592_v11, %v1532_v12 }
  0xc8   : > { %v1480_v16 = vpop.permute.xlu1 %1479  ;;  %2219 = vmatmul.mubr.msk.bf16.vlgmr.msra.gmra.mxu1 %vm1395_vm12, %v1600_v13 }
  0xc9   : > { %v1548_v39 = vsel %vm1283_vm4, %v1480_v16, %v2836_v2 }
  0xca   : > { %v1486_v17 = vpop.permute.xlu0 %1485 }
  0xcb   : > { %v1554_v38 = vsel %vm1296_vm5, %v1545_v34, %v1486_v17 }
  0xcc   : > { %v1488_v20 = vpop.permute.xlu1 %1487 }
  0xcd   : > { %v1556_v46 = vsel %vm1296_vm5, %v1548_v39, %v1488_v20 }
  0xce   : > { %v1494_v25 = vpop.permute.xlu0 %1493 }
  0xcf   : > { %v1562_v42 = vsel %vm1305_vm6, %v1554_v38, %v1494_v25 }
  0xd0   : > { %v1496_v19 = vpop.permute.xlu1 %1495 }
  0xd1   : > { %v1564_v50 = vsel %vm1305_vm6, %v1556_v46, %v1496_v19 }
  0xd2   : > { %v1502_v28 = vpop.permute.xlu0 %1501 }
  0xd3   : > { %v1570_v48 = vsel %vm1314_vm7, %v1562_v42, %v1502_v28 }
  0xd4   : > { %v1504_v9 = vpop.permute.xlu1 %1503 }
  0xd5   : > { %v1572_v56 = vsel %vm1314_vm7, %v1564_v50, %v1504_v9 }
  0xd6   : > { %v1510_v14 = vpop.permute.xlu0 %1509 }
  0xd7   : > { %v1578_v51 = vsel %vm1323_vm8, %v1570_v48, %v1510_v14 }
  0xd8   : > { %v1512_v31 = vpop.permute.xlu1 %1511 }
  0xd9   : > { %v1580_v52 = vsel %vm1323_vm8, %v1572_v56, %v1512_v31 }
  0xda   : > { %v1518_v32 = vpop.permute.xlu0 %1517 }
  0xdb   : > { %v1586_v57 = vsel %vm1332_vm9, %v1578_v51, %v1518_v32 }
  0xdc   : > { %v1520_v36 = vpop.permute.xlu1 %1519 }
  0xdd   : > { %v1588_v2 = vsel %vm1332_vm9, %v1580_v52, %v1520_v36 }
  0xde   : > { %v1526_v29 = vpop.permute.xlu0 %1525 }
  0xdf   : > { %v1594_v22 = vsel %vm1341_vm10, %v1586_v57, %v1526_v29 }
  0xe0   : > { %v1528_v55 = vpop.permute.xlu1 %1527 }
  0xe1   : > { %v1596_v4 = vsel %vm1341_vm10, %v1588_v2, %v1528_v55 }
  0xe2   : > { %v1534_v47 = vpop.permute.xlu0 %1533 }
  0xe3   : > { %v1602_v35 = vsel %vm1350_vm11, %v1594_v22, %v1534_v47 }
  0xe4   : > { %v1536_v21 = vpop.permute.xlu1 %1535  ;;  %2222 = vmatprep.mubr.msk.bf16.mxu1 %vm1395_vm12, %v1602_v35 }
  0xe5   : > { %v1604_v23 = vsel %vm1350_vm11, %v1596_v4, %v1536_v21 }
  0xe6   : > { %2223 = vmatmul.mubr.msk.bf16.gmra.mxu1 %vm1395_vm12, %v1604_v23  ;;  %v1104_v10 = vpop.permute.xlu0 %1103 }
  0xe7   : > { %v1286_v8 = vsel %vm1283_vm4, %v2520_v41, %v1104_v10 }
  0xe8   : > { %v1106_v30 = vpop.permute.xlu1 %1105 }
  0xe9   : > { %v1289_v24 = vsel %vm1283_vm4, %v2541_v15, %v1106_v30 }
  0xea   : > { %v1124_v40 = vpop.permute.xlu0 %1123 }
  0xeb   : > { %v1298_v18 = vsel %vm1296_vm5, %v1286_v8, %v1124_v40 }
  0xec   : > { %v1126_v53 = vpop.permute.xlu1 %1125 }
  0xed   : > { %v1300_v27 = vsel %vm1296_vm5, %v1289_v24, %v1126_v53 }
  0xee   : > { %v1152_v43 = vpop.permute.xlu0 %1151 }
  0xef   : > { %v1307_v49 = vsel %vm1305_vm6, %v1298_v18, %v1152_v43 }
  0xf0   : > { %v1154_v7 = vpop.permute.xlu1 %1153 }
  0xf1   : > { %v1309_v58 = vsel %vm1305_vm6, %v1300_v27, %v1154_v7 }
  0xf2   : > { %v1180_v33 = vpop.permute.xlu0 %1179 }
  0xf3   : > { %v1316_v44 = vsel %vm1314_vm7, %v1307_v49, %v1180_v33 }
  0xf4   : > { %v1182_v59 = vpop.permute.xlu1 %1181 }
  0xf5   : > { %v1318_v60 = vsel %vm1314_vm7, %v1309_v58, %v1182_v59  ;;  %v2959_v59 = vld [vmem:[%s3044_s2] ss:$0 sm:$0xff] }
  0xf6   : > { %v1200_v37 = vpop.permute.xlu0 %1199 }
  0xf7   : > { %v1325_v41 = vsel %vm1323_vm8, %v1316_v44, %v1200_v37  ;;  %v2967_v37 = vld [vmem:[%s3045_s3] ss:$0 sm:$0xff] }
  0xf8   : > { %v1202_v45 = vpop.permute.xlu1 %1201 }
  0xf9   : > { %v1327_v63 = vsel %vm1323_vm8, %v1318_v60, %v1202_v45 }
  0xfa   : > { %v1228_v54 = vpop.permute.xlu0 %1227 }
  0xfb   : > { %v1334_v15 = vsel %vm1332_vm9, %v1325_v41, %v1228_v54 }
  0xfc   : > { %v1230_v61 = vpop.permute.xlu1 %1229 }
  0xfd   : > { %v1336_v5 = vsel %vm1332_vm9, %v1327_v63, %v1230_v61 }
  0xfe   : > { %v1256_v0 = vpop.permute.xlu0 %1255 }
  0xff   : > { %v1343_v1 = vsel %vm1341_vm10, %v1334_v15, %v1256_v0 }
 0x100   : > { %v1258_v3 = vpop.permute.xlu1 %1257 }
 0x101   : > { %v1345_v12 = vsel %vm1341_vm10, %v1336_v5, %v1258_v3 }
 0x102   : > { %v1276_v6 = vpop.permute.xlu0 %1275 }
 0x103   : > { %v1352_v11 = vsel %vm1350_vm11, %v1343_v1, %v1276_v6 }
 0x104   : > { %v1108_v13 = vpop.permute.xlu1 %1107  ;;  %2200 = vmatprep.mubr.msk.bf16.mxu0 %vm1395_vm12, %v1352_v11 }
 0x105   : > { %v1292_v28 = vsel %vm1283_vm4, %v2626_v62, %v1108_v13 }
 0x106   : > { %v1278_v16 = vpop.permute.xlu0 %1277 }
 0x107   : > { %v1354_v17 = vsel %vm1350_vm11, %v1345_v12, %v1278_v16 }
 0x108   : > { %2201 = vmatmul.mubr.msk.bf16.vlgmr.msra.gmra.mxu0 %vm1395_vm12, %v1354_v17  ;;  %v1110_v20 = vpop.permute.xlu1 %1109 }
 0x109   : > { %v1295_v14 = vsel %vm1283_vm4, %v2640_v26, %v1110_v20 }
 0x10a   : > { %v1128_v25 = vpop.permute.xlu0 %1127 }
 0x10b   : > { %v1302_v32 = vsel %vm1296_vm5, %v1292_v28, %v1128_v25 }
 0x10c   : > { %v1130_v19 = vpop.permute.xlu1 %1129 }
 0x10d   : > { %v1304_v36 = vsel %vm1296_vm5, %v1295_v14, %v1130_v19 }
 0x10e   : > { %v1156_v9 = vpop.permute.xlu0 %1155 }
 0x10f   : > { %v1311_v38 = vsel %vm1305_vm6, %v1302_v32, %v1156_v9 }
 0x110   : > { %v1158_v31 = vpop.permute.xlu1 %1157 }
 0x111   : > { %v1313_v42 = vsel %vm1305_vm6, %v1304_v36, %v1158_v31 }
 0x112   : > { %v1184_v34 = vpop.permute.xlu0 %1183 }
 0x113   : > { %v1320_v46 = vsel %vm1314_vm7, %v1311_v38, %v1184_v34 }
 0x114   : > { %v1186_v39 = vpop.permute.xlu1 %1185 }
 0x115   : > { %v1322_v62 = vsel %vm1314_vm7, %v1313_v42, %v1186_v39 }
 0x116   : > { %v1204_v29 = vpop.permute.xlu0 %1203 }
 0x117   : > { %v1329_v50 = vsel %vm1323_vm8, %v1320_v46, %v1204_v29 }
 0x118   : > { %v1206_v48 = vpop.permute.xlu1 %1205 }
 0x119   : > { %v1331_v51 = vsel %vm1323_vm8, %v1322_v62, %v1206_v48 }
 0x11a   : > { %v1232_v26 = vpop.permute.xlu0 %1231 }
 0x11b   : > { %v1338_v56 = vsel %vm1332_vm9, %v1329_v50, %v1232_v26 }
 0x11c   : > { %v1234_v55 = vpop.permute.xlu1 %1233 }
 0x11d   : > { %v1340_v52 = vsel %vm1332_vm9, %v1331_v51, %v1234_v55 }
 0x11e   : > { %v1260_v57 = vpop.permute.xlu0 %1259 }
 0x11f   : > { %v1347_v22 = vsel %vm1341_vm10, %v1338_v56, %v1260_v57 }
 0x120   : > { %v1262_v47 = vpop.permute.xlu1 %1261 }
 0x121   : > { %v1349_v2 = vsel %vm1341_vm10, %v1340_v52, %v1262_v47 }
 0x122   : > { %v1280_v35 = vpop.permute.xlu0 %1279 }
 0x123   : > { %v1356_v4 = vsel %vm1350_vm11, %v1347_v22, %v1280_v35 }
 0x124   : > { %v1282_v21 = vpop.permute.xlu1 %1281  ;;  %2204 = vmatprep.mubr.msk.bf16.mxu0 %vm1395_vm12, %v1356_v4 }
 0x125   : > { %v1358_v23 = vsel %vm1350_vm11, %v1349_v2, %v1282_v21 }
 0x126   : > { %2205 = vmatmul.mubr.msk.bf16.gmra.mxu0 %vm1395_vm12, %v1358_v23 }
 0x188   : > { %v2220_v10 = vpop.f32.mrf.mxu1 }
 0x18a   : > { %v1687_v30 = vpop.f32.mrf.mxu1 }
 0x18b   : > { %1726 = vrot.lane.b32.xlu0 %v1687_v30, %s2357_s15 }
 0x18c   : > { %v2221_v40 = vpop.f32.mrf.mxu1 }
 0x18e   : > { %v1690_v53 = vpop.f32.mrf.mxu1 }
 0x18f   : > { %1730 = vrot.lane.b32.xlu0 %v2220_v10, %s2357_s15  ;;  %1728 = vrot.lane.b32.xlu1 %v1690_v53, %s2357_s15 }
 0x193   : > { %1732 = vrot.lane.b32.xlu1 %v2221_v40, %s2357_s15 }
 0x1a6   : > { %v2224_v8 = vpop.f32.mrf.mxu1 }
 0x1a8   : > { %v1703_v43 = vpop.f32.mrf.mxu1 }
 0x1a9   : > { %1734 = vrot.lane.b32.xlu0 %v1703_v43, %s2357_s15 }
 0x1aa   : > { %v2225_v7 = vpop.f32.mrf.mxu1 }
 0x1ac   : > { %v1706_v18 = vpop.f32.mrf.mxu1 }
 0x1ad   : > { %1738 = vrot.lane.b32.xlu0 %v2224_v8, %s2357_s15  ;;  %1736 = vrot.lane.b32.xlu1 %v1706_v18, %s2357_s15 }
 0x1b1   : > { %1740 = vrot.lane.b32.xlu1 %v2225_v7, %s2357_s15  ;;  %s2163_s15 = sshll.u32 %s3057_s20, 5 }
 0x1b2   : > { %s2980_s24 = scalar_lea.vmem %s3046_s4, %s2163_s15 }
 0x1c8   : > { %v2202_v24 = vpop.f32.mrf.mxu0 }
 0x1ca   : > { %v1442_v33 = vpop.f32.mrf.mxu0 }
 0x1cc   : > { %v2203_v49 = vpop.f32.mrf.mxu0 }
 0x1ce   : > { %v1445_v45 = vpop.f32.mrf.mxu0 }
 0x1e6   : > { %v2206_v14 = vpop.f32.mrf.mxu0 }
 0x1e8   : > { %v1458_v31 = vpop.f32.mrf.mxu0 }
 0x1ea   : > { %v2207_v34 = vpop.f32.mrf.mxu0 }
 0x1ec   : > { %v1461_v46 = vpop.f32.mrf.mxu0 }
 0x1fd   : > { %v1727_v27 = vpop.permute.xlu0 %1726 }
 0x1fe   : > { %v1750_v44 = vsel %vm1283_vm4, %v1442_v33, %v1727_v27 }
 0x1ff   : > { %v1765_v58 = vmul.f32 %v2959_v59, %v1750_v44 }
 0x201   : > { %v1780_v41 = vadd.f32 %v2967_v37, %v1765_v58  ;;  %v1731_v54 = vpop.permute.xlu0 %1730  ;;  %v1729_v60 = vpop.permute.xlu1 %1728 }
 0x202   : > { %v1752_v61 = vsel %vm1283_vm4, %v2202_v24, %v1731_v54  ;;  %v1751_v15 = vsel %vm1283_vm4, %v1445_v45, %v1729_v60 }
 0x203   : > { %v1788_v63 = vmax.f32 %v1780_v41, 0.0  ;;  %v1767_v0 = vmul.f32 %v2959_v59, %v1752_v61  ;;  %v1766_v1 = vmul.f32 %v2959_v59, %v1751_v15 }
 0x205   : > { %v2164_v3 = vpack.c.bf16 %v1788_v63, %v1788_v63  ;;  %v1782_v5 = vadd.f32 %v2967_v37, %v1767_v0  ;;  %v1781_v6 = vadd.f32 %v2967_v37, %v1766_v1  ;;  %v1733_v11 = vpop.permute.xlu1 %1732  ;;  %v1837_v36 = vsel %vm1296_vm5, %v1788_v63, 0.0 }
 0x206   : > { %v1753_v12 = vsel %vm1283_vm4, %v2203_v49, %v1733_v11 }
 0x207   : > { %1829 = vst.msk [vmem:[%s2980_s24] sm:$0xf] %vm1828_vm13, %v2164_v3  ;;  %v1790_v13 = vmax.f32 %v1782_v5, 0.0  ;;  %v1789_v16 = vmax.f32 %v1781_v6, 0.0  ;;  %v1768_v17 = vmul.f32 %v2959_v59, %v1753_v12 }
 0x209   : > { %v2166_v20 = vpack.c.bf16 %v1790_v13, %v1790_v13  ;;  %v2165_v25 = vpack.c.bf16 %v1789_v16, %v1789_v16  ;;  %v1783_v19 = vadd.f32 %v2967_v37, %v1768_v17  ;;  %v1838_v32 = vsel %vm1296_vm5, %v1789_v16, 0.0 }
 0x20a   : > { %v1839_v39 = vadd.f32 %v1838_v32, %v1837_v36  ;;  %v1840_v48 = vsel %vm1296_vm5, %v1790_v13, 0.0 }
 0x20b   : > { %1831 = vst.msk [vmem:[%s2980_s24 + $0x8] sm:$0xf] %vm1828_vm13, %v2166_v20  ;;  %1830 = vst.msk [vmem:[%s2980_s24 + $0x4] sm:$0xf] %vm1828_vm13, %v2165_v25  ;;  %v1791_v28 = vmax.f32 %v1783_v19, 0.0 }
 0x20c   : > { %v1841_v51 = vadd.f32 %v1840_v48, %v1839_v39 }
 0x20d   : > { %v2167_v9 = vpack.c.bf16 %v1791_v28, %v1791_v28  ;;  %v1842_v57 = vsel %vm1296_vm5, %v1791_v28, 0.0 }
 0x20e   : > { %v1843_v10 = vadd.f32 %v1842_v57, %v1841_v51 }
 0x20f   : > { %1832 = vst.msk [vmem:[%s2980_s24 + $0xc] sm:$0xf] %vm1828_vm13, %v2167_v9 }
 0x21b   : > { %v1735_v38 = vpop.permute.xlu0 %1734 }
 0x21c   : > { %v1754_v42 = vsel %vm1283_vm4, %v1458_v31, %v1735_v38 }
 0x21d   : > { %v1769_v29 = vmul.f32 %v2959_v59, %v1754_v42 }
 0x21f   : > { %v1784_v62 = vadd.f32 %v2967_v37, %v1769_v29  ;;  %v1739_v50 = vpop.permute.xlu0 %1738  ;;  %v1737_v26 = vpop.permute.xlu1 %1736 }
 0x220   : > { %v1756_v55 = vsel %vm1283_vm4, %v2206_v14, %v1739_v50  ;;  %v1755_v56 = vsel %vm1283_vm4, %v1461_v46, %v1737_v26 }
 0x221   : > { %v1792_v52 = vmax.f32 %v1784_v62, 0.0  ;;  %v1771_v22 = vmul.f32 %v2959_v59, %v1756_v55  ;;  %v1770_v47 = vmul.f32 %v2959_v59, %v1755_v56 }
 0x223   : > { %v2168_v2 = vpack.c.bf16 %v1792_v52, %v1792_v52  ;;  %v1844_v35 = vsel %vm1296_vm5, %v1792_v52, 0.0  ;;  %v1786_v4 = vadd.f32 %v2967_v37, %v1771_v22  ;;  %v1785_v21 = vadd.f32 %v2967_v37, %v1770_v47  ;;  %v1741_v23 = vpop.permute.xlu1 %1740 }
 0x224   : > { %v1757_v30 = vsel %vm1283_vm4, %v2207_v34, %v1741_v23  ;;  %v1845_v43 = vadd.f32 %v1844_v35, %v1843_v10 }
 0x225   : > { %1833 = vst.msk [vmem:[%s2980_s24 + $0x10] sm:$0xf] %vm1828_vm13, %v2168_v2  ;;  %v1794_v40 = vmax.f32 %v1786_v4, 0.0  ;;  %v1793_v53 = vmax.f32 %v1785_v21, 0.0  ;;  %v1772_v8 = vmul.f32 %v2959_v59, %v1757_v30 }
 0x227   : > { %v2170_v7 = vpack.c.bf16 %v1794_v40, %v1794_v40  ;;  %v2169_v18 = vpack.c.bf16 %v1793_v53, %v1793_v53  ;;  %v1846_v24 = vsel %vm1296_vm5, %v1793_v53, 0.0  ;;  %v1787_v49 = vadd.f32 %v2967_v37, %v1772_v8 }
 0x228   : > { %v1847_v33 = vadd.f32 %v1846_v24, %v1845_v43  ;;  %v1848_v27 = vsel %vm1296_vm5, %v1794_v40, 0.0 }
 0x229   : > { %1835 = vst.msk [vmem:[%s2980_s24 + $0x18] sm:$0xf] %vm1828_vm13, %v2170_v7  ;;  %1834 = vst.msk [vmem:[%s2980_s24 + $0x14] sm:$0xf] %vm1828_vm13, %v2169_v18  ;;  %v1795_v58 = vmax.f32 %v1787_v49, 0.0 }
 0x22a   : > { %v1849_v44 = vadd.f32 %v1848_v27, %v1847_v33 }
 0x22b   : > { %v2171_v45 = vpack.c.bf16 %v1795_v58, %v1795_v58  ;;  %v1850_v59 = vsel %vm1296_vm5, %v1795_v58, 0.0 }
 0x22c   : > { %v1851_v41 = vadd.f32 %v1850_v59, %v1849_v44 }
 0x22d   : > { %1836 = vst.msk [vmem:[%s2980_s24 + $0x1c] sm:$0xf] %vm1828_vm13, %v2171_v45 }
 0x22e   : > { %v1852_v54 = vrot.slane %v1851_v41, 4 }
 0x230   : > { %v1853_v60 = vadd.f32 %v1852_v54, %v1851_v41 }
 0x232   : > { %v1854_v61 = vrot.slane %v1853_v60, 2 }
 0x234   : > { %v1855_v15 = vadd.f32 %v1854_v61, %v1853_v60 }
 0x236   : > { %v1856_v37 = vrot.slane %v1855_v15, 1 }
 0x238   : > { %v1857_v63 = vadd.f32 %v1856_v37, %v1855_v15 }
 0x23a   : > { %v1858_v0 = vmul.f32 0.015625, %v1857_v63 }
 0x23c   : > { %1860 = vst.msk [vmem:[%s645_s27] sm:$0x1] %vm1859_vm14, %v1858_v0 }
 0x23d PF: > { %s16_s22 = sadd.s32 1, %s2352_s22   ;;  %s3050_s18 = smov %s2340_s19 }
 0x23e   : > { %p13_p10 = scmp.ge.s32.totalorder %s16_s22, 4   ;;  %s3051_s19 = smov %s2428_s26 }
 0x23f   : > { %s3052_s20 = smov %s2348_s21  ;;  %s3053_s21 = smov %s3055_s23 }
 0x240   :  { %15 = sbr.rel (!%p13_p10) target bundleno = 3 (0x3), region = 139 }

// kernel: a_call__.10
= control target key start
LH: loop header
LB: loop body
LE: loop exit
PB: predicated region body
PF: predicated region fallthrough
CT: control target
= control target key end

     0   :  { %s1093_s21 = smov 0   ;;  %s1095_s22 = smov 0   ;;  %s1184_s0 = inlined_call_operand.vmem [shape: bf16[2,64,16], index: 0, kind: input, shape index: {}]   ;;  %s1185_s1 = inlined_call_operand.vmem [shape: bf16[2,1,16], index: 1, kind: input, shape index: {}]   ;;  %s1186_s2 = inlined_call_operand.vmem [shape: bf16[16,16], index: 2, kind: input, shape index: {}]   ;;  %s1187_s3 = inlined_call_operand.vmem [shape: f32[1,16], index: 3, kind: input, shape index: {}]   ;;  %s1188_s4 = inlined_call_operand.vmem [shape: f32[1,16], index: 4, kind: input, shape index: {}]   ;;  %s1189_s5 = inlined_call_operand.vmem [shape: bf16[2,64,16], index: 5, kind: input, shape index: {}]   ;;  %s1190_s6 = inlined_call_operand.vmem [shape: bf16[2,64,16], index: 6, kind: output, shape index: {}]  }
   0x1   :  { %s1097_s23 = smov 0  }
   0x2 LB: > { %s42_s24 = sadd.s32 1, %s1051_s22  ;;  %p931_p0 = scmp.ge.s32.totalorder %s1055_s23, 1  ;;  %s1055_s23 = sphi %s1097_s23, %s16_s23   ;;  %s1051_s22 = sphi %s1095_s22, %s1192_s22   ;;  %s1047_s21 = sphi %s1093_s21, %s1191_s21  }
   0x3   : > { %p44_p1 = scmp.ge.s32.totalorder %s42_s24, 2  ;;  %p321_p2 = scmp.lt.s32.totalorder %s1055_s23, 3 }
   0x5   : > { %s1194_s24 = smov (%p44_p1, %s42_s24), 0  ;;  %p322_p3 = pnand %p931_p0, %p321_p2 }
   0x6   : > { %p398_p4 = scmp.lt.s32.totalorder (!%p322_p3), %s1047_s21, 1 }
   0x7   : > { %325 = sbr.rel (%p322_p3) target bundleno = 248 (0xf8), region = 44 }
   0xc   : > { %v1032_v0 = vld [vmem:[%s1186_s2] sm:$0xff]   ;;  %v483_v1 = vlaneseq  ;;  %vm462_vm0 = vcmask 130048   ;;  %s1196_s21 = smov (!%p398_p4, %s1047_s21), 1  ;;  %v1057_v3 = vmov 0.0   ;;  %vm734_vm1 = vcmask 125952  }
   0xd   : > { %995 = vmatprep.subr.bf16.mxu0 %v1032_v0  ;;  %1005 = vmatprep.subr.bf16.mxu1 %v1032_v0  ;;  %465 = vst.msk [vmem:[#allocation2 + $0x10] sm:$0xff] %vm462_vm0, %v1057_v3  ;;  %463 = vst.msk [vmem:[#allocation2] sm:$0xff] %vm462_vm0, %v1057_v3  ;;  %s1122_s27 = sshll.u32 %s1196_s21, 5  ;;  %s415_s30 = scalar_lea.vmem %s1185_s1, %s1196_s21  ;;  %v948_v55 = vld [vmem:[%s1187_s3] ss:$0 sm:$0xff] }
   0xe   : > { %v484_v2 = vshrl.u32 %v483_v1, 7  ;;  %464 = vst.msk [vmem:[#allocation2 + $0x8] sm:$0xff] %vm462_vm0, %v1057_v3  ;;  %466 = vst.msk [vmem:[#allocation2 + $0x18] sm:$0xff] %vm462_vm0, %v1057_v3  ;;  %996 = vmatpush3.bf16.msra.mxu0 %v1032_v0  ;;  %1006 = vmatpush3.bf16.msra.mxu1 %v1032_v0  ;;  %s408_s9 = scalar_lea.vmem %s1184_s0, %s1122_s27  ;;  %v479_v5 = vld [vmem:[%s415_s30] sm:$0x1]  ;;  %s442_s12 = scalar_lea.vmem %s1189_s5, %s1122_s27 }
   0xf   : > { %467 = vst.msk [vmem:[#allocation2 + $0x20] sm:$0xff] %vm462_vm0, %v1057_v3  ;;  %468 = vst.msk [vmem:[#allocation2 + $0x28] sm:$0xff] %vm462_vm0, %v1057_v3  ;;  %v481_v6 = vpack.i.b16 %v479_v5, %v479_v5  ;;  %v471_v7 = vld [vmem:[%s408_s9] sm:$0xf]  ;;  %v472_v8 = vld [vmem:[%s408_s9 + $0x4] sm:$0xf]  ;;  %s1157_s19 = scalar_lea.vmem %s1190_s6, %s1122_s27 }
  0x10   : > { %469 = vst.msk [vmem:[#allocation2 + $0x30] sm:$0xff] %vm462_vm0, %v1057_v3  ;;  %470 = vst.msk [vmem:[#allocation2 + $0x38] sm:$0xff] %vm462_vm0, %v1057_v3  ;;  %v485_v4 = vsub.s32 0, %v484_v2  ;;  %v475_v10 = vld [vmem:[%s408_s9 + $0x10] sm:$0xf]  ;;  %v987_v53 = vld [vmem:[%s442_s12 + $0x8] sm:$0xff]  }
  0x11   : > { %v476_v11 = vld [vmem:[%s408_s9 + $0x14] sm:$0xf]  ;;  %v473_v12 = vld [vmem:[%s408_s9 + $0x8] sm:$0xf]  ;;  %v474_v14 = vld [vmem:[%s408_s9 + $0xc] sm:$0xf]  ;;  %v977_v61 = vunpack.c.l.bf16 %v987_v53 }
  0x12   : > { %v486_v9 = vrot.slane %v481_v6, %v485_v4  ;;  %v477_v15 = vld [vmem:[%s408_s9 + $0x18] sm:$0xf]  ;;  %v478_v16 = vld [vmem:[%s408_s9 + $0x1c] sm:$0xf]  ;;  %v972_v56 = vld [vmem:[%s442_s12] sm:$0xff]  }
  0x13   : > { %v989_v54 = vld [vmem:[%s442_s12 + $0x18] sm:$0xff]   ;;  %v988_v57 = vld [vmem:[%s442_s12 + $0x10] sm:$0xff]   ;;  %v949_v59 = vld [vmem:[%s1188_s4] ss:$0 sm:$0xff]  ;;  %v973_v1 = vunpack.c.l.bf16 %v972_v56 }
  0x14   : > { %v938_v13 = vcombine.low %v486_v9, %v486_v9  ;;  %v501_v29 = vld [vmem:[#allocation2 + $0x10] sm:$0xff]  ;;  %v499_v33 = vld [vmem:[#allocation2] sm:$0xff]  ;;  %v985_v62 = vunpack.c.l.bf16 %v989_v54  ;;  %v981_v2 = vunpack.c.l.bf16 %v988_v57  ;;  %v974_v9 = vunpack.c.h.bf16 %v972_v56 }
  0x15   : > { %v502_v39 = vld [vmem:[#allocation2 + $0x18] sm:$0xff]  ;;  %v500_v45 = vld [vmem:[#allocation2 + $0x8] sm:$0xff] }
  0x16   : > { %v491_v17 = vmul.bf16 %v938_v13, %v471_v7  ;;  %v492_v18 = vmul.bf16 %v938_v13, %v472_v8  ;;  %v495_v19 = vmul.bf16 %v938_v13, %v475_v10  ;;  %v496_v20 = vmul.bf16 %v938_v13, %v476_v11  ;;  %v503_v34 = vld [vmem:[#allocation2 + $0x20] sm:$0xff]  ;;  %v504_v46 = vld [vmem:[#allocation2 + $0x28] sm:$0xff] }
  0x17   : > { %v493_v21 = vmul.bf16 %v938_v13, %v473_v12  ;;  %v494_v22 = vmul.bf16 %v938_v13, %v474_v14  ;;  %v497_v23 = vmul.bf16 %v938_v13, %v477_v15  ;;  %v498_v24 = vmul.bf16 %v938_v13, %v478_v16  ;;  %v505_v30 = vld [vmem:[#allocation2 + $0x30] sm:$0xff]  ;;  %v506_v40 = vld [vmem:[#allocation2 + $0x38] sm:$0xff] }
  0x18   : > { %v939_v25 = vcombine.low %v491_v17, %v492_v18  ;;  %v941_v26 = vcombine.low %v495_v19, %v496_v20  ;;  %v978_v10 = vunpack.c.h.bf16 %v987_v53  ;;  %v982_v11 = vunpack.c.h.bf16 %v988_v57 }
  0x19   : > { %v940_v27 = vcombine.low %v493_v21, %v494_v22  ;;  %v942_v28 = vcombine.low %v497_v23, %v498_v24  ;;  %v986_v18 = vunpack.c.h.bf16 %v989_v54 }
  0x1a   : > { %997 = vmatprep.mubr.msk.bf16.mxu0 %vm462_vm0, %v939_v25  ;;  %1001 = vmatprep.mubr.msk.bf16.mxu1 %vm462_vm0, %v941_v26 }
  0x1b   : > { %998 = vmatmul.mubr.msk.bf16.vlgmr.msra.gmra.mxu0 %vm462_vm0, %v940_v27  ;;  %1002 = vmatmul.mubr.msk.bf16.vlgmr.msra.gmra.mxu1 %vm462_vm0, %v942_v28 }
  0xdb   : > { %v999_v31 = vpop.f32.mrf.mxu0  ;;  %v1003_v32 = vpop.f32.mrf.mxu1 }
  0xdc   : > { %v615_v35 = vadd.f32 %v999_v31, %v501_v29  ;;  %v619_v36 = vadd.f32 %v1003_v32, %v505_v30 }
  0xdd   : > { %v582_v37 = vpop.f32.mrf.mxu0  ;;  %v598_v38 = vpop.f32.mrf.mxu1 }
  0xde   : > { %623 = vst.msk [vmem:[#allocation2 + $0x10] sm:$0xff] %vm462_vm0, %v615_v35  ;;  %627 = vst.msk [vmem:[#allocation2 + $0x30] sm:$0xff] %vm462_vm0, %v619_v36  ;;  %v613_v41 = vadd.f32 %v582_v37, %v499_v33  ;;  %v617_v42 = vadd.f32 %v598_v38, %v503_v34 }
  0xdf   : > { %v1000_v43 = vpop.f32.mrf.mxu0  ;;  %v1004_v44 = vpop.f32.mrf.mxu1 }
  0xe0   : > { %621 = vst.msk [vmem:[#allocation2] sm:$0xff] %vm462_vm0, %v613_v41  ;;  %625 = vst.msk [vmem:[#allocation2 + $0x20] sm:$0xff] %vm462_vm0, %v617_v42  ;;  %v616_v47 = vadd.f32 %v1000_v43, %v502_v39  ;;  %v620_v48 = vadd.f32 %v1004_v44, %v506_v40 }
  0xe1   : > { %v585_v49 = vpop.f32.mrf.mxu0  ;;  %v601_v50 = vpop.f32.mrf.mxu1 }
  0xe2   : > { %624 = vst.msk [vmem:[#allocation2 + $0x18] sm:$0xff] %vm462_vm0, %v616_v47  ;;  %628 = vst.msk [vmem:[#allocation2 + $0x38] sm:$0xff] %vm462_vm0, %v620_v48  ;;  %v614_v51 = vadd.f32 %v585_v49, %v500_v45  ;;  %v618_v52 = vadd.f32 %v601_v50, %v504_v46 }
  0xe4   : > { %622 = vst.msk [vmem:[#allocation2 + $0x8] sm:$0xff] %vm462_vm0, %v614_v51  ;;  %626 = vst.msk [vmem:[#allocation2 + $0x28] sm:$0xff] %vm462_vm0, %v618_v52 }
  0xe5   : > { %v634_v58 = vld [vmem:[#allocation2 + $0x10] sm:$0xff] }
  0xe6   : > { %v638_v60 = vld [vmem:[#allocation2 + $0x30] sm:$0xff]  ;;  %v649_v63 = vmul.f32 %v948_v55, %v634_v58 }
  0xe7   : > { %v653_v0 = vmul.f32 %v948_v55, %v638_v60  ;;  %v632_v3 = vld [vmem:[#allocation2] sm:$0xff] }
  0xe8   : > { %v636_v4 = vld [vmem:[#allocation2 + $0x20] sm:$0xff]  ;;  %v664_v5 = vadd.f32 %v949_v59, %v649_v63  ;;  %v647_v7 = vmul.f32 %v948_v55, %v632_v3 }
  0xe9   : > { %v668_v6 = vadd.f32 %v949_v59, %v653_v0  ;;  %v651_v8 = vmul.f32 %v948_v55, %v636_v4  ;;  %v635_v12 = vld [vmem:[#allocation2 + $0x18] sm:$0xff] }
  0xea   : > { %v639_v13 = vld [vmem:[#allocation2 + $0x38] sm:$0xff]  ;;  %v688_v14 = vadd.f32 %v977_v61, %v664_v5  ;;  %v662_v16 = vadd.f32 %v949_v59, %v647_v7  ;;  %v650_v19 = vmul.f32 %v948_v55, %v635_v12 }
  0xeb   : > { %v692_v15 = vadd.f32 %v985_v62, %v668_v6  ;;  %v666_v17 = vadd.f32 %v949_v59, %v651_v8  ;;  %v654_v20 = vmul.f32 %v948_v55, %v639_v13  ;;  %v633_v21 = vld [vmem:[#allocation2 + $0x8] sm:$0xff] }
  0xec   : > { %v637_v22 = vld [vmem:[#allocation2 + $0x28] sm:$0xff]  ;;  %v696_v23 = vmax.f32 %v688_v14, 0.0  ;;  %v686_v25 = vadd.f32 %v973_v1, %v662_v16  ;;  %v665_v27 = vadd.f32 %v949_v59, %v650_v19  ;;  %v648_v29 = vmul.f32 %v948_v55, %v633_v21 }
  0xed   : > { %v700_v24 = vmax.f32 %v692_v15, 0.0  ;;  %v690_v26 = vadd.f32 %v981_v2, %v666_v17  ;;  %v669_v28 = vadd.f32 %v949_v59, %v654_v20  ;;  %v652_v30 = vmul.f32 %v948_v55, %v637_v22 }
  0xee   : > { %v965_v31 = vpack.c.bf16 %v696_v23, %v696_v23  ;;  %v694_v33 = vmax.f32 %v686_v25, 0.0  ;;  %v689_v35 = vadd.f32 %v978_v10, %v665_v27  ;;  %v663_v37 = vadd.f32 %v949_v59, %v648_v29 }
  0xef   : > { %v969_v32 = vpack.c.bf16 %v700_v24, %v700_v24  ;;  %v698_v34 = vmax.f32 %v690_v26, 0.0  ;;  %v693_v36 = vadd.f32 %v986_v18, %v669_v28  ;;  %v667_v38 = vadd.f32 %v949_v59, %v652_v30 }
  0xf0   : > { %737 = vst.msk [vmem:[%s1157_s19 + $0x8] sm:$0xf] %vm734_vm1, %v965_v31  ;;  %v963_v39 = vpack.c.bf16 %v694_v33, %v694_v33  ;;  %v697_v41 = vmax.f32 %v689_v35, 0.0  ;;  %v687_v43 = vadd.f32 %v974_v9, %v663_v37 }
  0xf1   : > { %741 = vst.msk [vmem:[%s1157_s19 + $0x18] sm:$0xf] %vm734_vm1, %v969_v32  ;;  %v967_v40 = vpack.c.bf16 %v698_v34, %v698_v34  ;;  %v701_v42 = vmax.f32 %v693_v36, 0.0  ;;  %v691_v44 = vadd.f32 %v982_v11, %v667_v38 }
  0xf2   : > { %735 = vst.msk [vmem:[%s1157_s19] sm:$0xf] %vm734_vm1, %v963_v39  ;;  %v966_v45 = vpack.c.bf16 %v697_v41, %v697_v41  ;;  %v695_v47 = vmax.f32 %v687_v43, 0.0 }
  0xf3   : > { %739 = vst.msk [vmem:[%s1157_s19 + $0x10] sm:$0xf] %vm734_vm1, %v967_v40  ;;  %v970_v46 = vpack.c.bf16 %v701_v42, %v701_v42  ;;  %v699_v48 = vmax.f32 %v691_v44, 0.0 }
  0xf4   : > { %738 = vst.msk [vmem:[%s1157_s19 + $0xc] sm:$0xf] %vm734_vm1, %v966_v45  ;;  %v964_v49 = vpack.c.bf16 %v695_v47, %v695_v47 }
  0xf5   : > { %742 = vst.msk [vmem:[%s1157_s19 + $0x1c] sm:$0xf] %vm734_vm1, %v970_v46  ;;  %v968_v50 = vpack.c.bf16 %v699_v48, %v699_v48 }
  0xf6   : > { %736 = vst.msk [vmem:[%s1157_s19 + $0x4] sm:$0xf] %vm734_vm1, %v964_v49 }
  0xf7   : > { %740 = vst.msk [vmem:[%s1157_s19 + $0x14] sm:$0xf] %vm734_vm1, %v968_v50 }
  0xf8 PF: > { %s16_s23 = sadd.s32 1, %s1055_s23   ;;  %s1191_s21 = smov %s1051_s22 }
  0xf9   : > { %p13_p5 = scmp.ge.s32.totalorder %s16_s23, 4   ;;  %s1192_s22 = smov %s1194_s24 }
  0xfb   :  { %15 = sbr.rel (!%p13_p5) target bundleno = 2 (0x2), region = 97 }

// kernel: a_call__.11
= control target key start
LH: loop header
LB: loop body
LE: loop exit
PB: predicated region body
PF: predicated region fallthrough
CT: control target
= control target key end

     0   :  { %vm22_vm0 = vcmask 130048   ;;  %v529_v1 = vmov 0.0   ;;  %vm418_vm1 = vcmask 125952   ;;  %s728_s1 = inlined_call_operand.vmem [shape: bf16[16,16], index: 1, kind: input, shape index: {}]   ;;  %s729_s0 = inlined_call_operand.vmem [shape: bf16[128,16], index: 0, kind: input, shape index: {}]   ;;  %s730_s2 = inlined_call_operand.vmem [shape: f32[1,16], index: 2, kind: input, shape index: {}]   ;;  %s731_s3 = inlined_call_operand.vmem [shape: f32[1,16], index: 3, kind: input, shape index: {}]   ;;  %s732_s4 = inlined_call_operand.vmem [shape: bf16[128,16], index: 4, kind: output, shape index: {}]  }
   0x1   :  { %v520_v0 = vld [vmem:[%s728_s1] sm:$0xff]   ;;  %25 = vst.msk [vmem:[#allocation2 + $0x10] sm:$0xff] %vm22_vm0, %v529_v1  ;;  %23 = vst.msk [vmem:[#allocation2] sm:$0xff] %vm22_vm0, %v529_v1  ;;  %v523_v4 = vld [vmem:[%s729_s0 + $0x8] sm:$0xff]  }
   0x2   :  { %24 = vst.msk [vmem:[#allocation2 + $0x8] sm:$0xff] %vm22_vm0, %v529_v1  ;;  %26 = vst.msk [vmem:[#allocation2 + $0x18] sm:$0xff] %vm22_vm0, %v529_v1  ;;  %v521_v2 = vld [vmem:[%s729_s0] sm:$0xff]   ;;  %499 = vmatprep.subr.bf16.mxu0 %v520_v0  ;;  %517 = vmatprep.subr.bf16.mxu1 %v520_v0  ;;  %v524_v5 = vld [vmem:[%s729_s0 + $0x28] sm:$0xff]  }
   0x3   :  { %27 = vst.msk [vmem:[#allocation2 + $0x20] sm:$0xff] %vm22_vm0, %v529_v1  ;;  %28 = vst.msk [vmem:[#allocation2 + $0x28] sm:$0xff] %vm22_vm0, %v529_v1  ;;  %v522_v3 = vld [vmem:[%s729_s0 + $0x20] sm:$0xff]   ;;  %500 = vmatpush3.bf16.msra.mxu0 %v520_v0  ;;  %518 = vmatpush3.bf16.msra.mxu1 %v520_v0  ;;  %v525_v6 = vld [vmem:[%s729_s0 + $0x10] sm:$0xff]  }
   0x4   :  { %29 = vst.msk [vmem:[#allocation2 + $0x30] sm:$0xff] %vm22_vm0, %v529_v1  ;;  %30 = vst.msk [vmem:[#allocation2 + $0x38] sm:$0xff] %vm22_vm0, %v529_v1  ;;  %501 = vmatprep.mubr.msk.bf16.mxu0 %vm22_vm0, %v521_v2  ;;  %509 = vmatprep.mubr.msk.bf16.mxu1 %vm22_vm0, %v522_v3  ;;  %v526_v7 = vld [vmem:[%s729_s0 + $0x30] sm:$0xff]   ;;  %v527_v8 = vld [vmem:[%s729_s0 + $0x18] sm:$0xff]  }
   0x5   :  { %31 = vst.msk [vmem:[#allocation2 + $0x40] sm:$0xff] %vm22_vm0, %v529_v1  ;;  %32 = vst.msk [vmem:[#allocation2 + $0x48] sm:$0xff] %vm22_vm0, %v529_v1  ;;  %v528_v9 = vld [vmem:[%s729_s0 + $0x38] sm:$0xff]   ;;  %v615_v36 = vld [vmem:[%s730_s2] ss:$0 sm:$0xff] }
   0x6   :  { %33 = vst.msk [vmem:[#allocation2 + $0x50] sm:$0xff] %vm22_vm0, %v529_v1  ;;  %34 = vst.msk [vmem:[#allocation2 + $0x58] sm:$0xff] %vm22_vm0, %v529_v1  ;;  %502 = vmatmul.mubr.msk.bf16.vlgmr.msra.gmra.mxu0 %vm22_vm0, %v523_v4  ;;  %510 = vmatmul.mubr.msk.bf16.vlgmr.msra.gmra.mxu1 %vm22_vm0, %v524_v5  ;;  %v622_v44 = vld [vmem:[%s731_s3] ss:$0 sm:$0xff] }
   0x7   :  { %35 = vst.msk [vmem:[#allocation2 + $0x60] sm:$0xff] %vm22_vm0, %v529_v1  ;;  %36 = vst.msk [vmem:[#allocation2 + $0x68] sm:$0xff] %vm22_vm0, %v529_v1  ;;  %505 = vmatprep.mubr.msk.bf16.mxu0 %vm22_vm0, %v525_v6  ;;  %513 = vmatprep.mubr.msk.bf16.mxu1 %vm22_vm0, %v526_v7 }
   0x8   :  { %37 = vst.msk [vmem:[#allocation2 + $0x70] sm:$0xff] %vm22_vm0, %v529_v1  ;;  %38 = vst.msk [vmem:[#allocation2 + $0x78] sm:$0xff] %vm22_vm0, %v529_v1  ;;  %v41_v10 = vld [vmem:[#allocation2 + $0x10] sm:$0xff]  ;;  %v39_v14 = vld [vmem:[#allocation2] sm:$0xff] }
   0x9   :  { %v42_v20 = vld [vmem:[#allocation2 + $0x18] sm:$0xff]  ;;  %v40_v26 = vld [vmem:[#allocation2 + $0x8] sm:$0xff] }
   0xa   :  { %v43_v39 = vld [vmem:[#allocation2 + $0x20] sm:$0xff]  ;;  %v44_v62 = vld [vmem:[#allocation2 + $0x28] sm:$0xff] }
   0xb   :  { %v45_v32 = vld [vmem:[#allocation2 + $0x30] sm:$0xff]  ;;  %v46_v52 = vld [vmem:[#allocation2 + $0x38] sm:$0xff] }
   0xc   :  { %v47_v15 = vld [vmem:[#allocation2 + $0x40] sm:$0xff]  ;;  %v48_v27 = vld [vmem:[#allocation2 + $0x48] sm:$0xff] }
   0xd   :  { %v49_v11 = vld [vmem:[#allocation2 + $0x50] sm:$0xff]  ;;  %v50_v21 = vld [vmem:[#allocation2 + $0x58] sm:$0xff] }
   0xe   :  { %506 = vmatmul.mubr.msk.bf16.gmra.mxu0 %vm22_vm0, %v527_v8  ;;  %514 = vmatmul.mubr.msk.bf16.gmra.mxu1 %vm22_vm0, %v528_v9  ;;  %v51_v40 = vld [vmem:[#allocation2 + $0x60] sm:$0xff]  ;;  %v52_v63 = vld [vmem:[#allocation2 + $0x68] sm:$0xff] }
   0xf   :  { %v53_v33 = vld [vmem:[#allocation2 + $0x70] sm:$0xff]  ;;  %v54_v53 = vld [vmem:[#allocation2 + $0x78] sm:$0xff] }
  0xc6   :  { %v503_v12 = vpop.f32.mrf.mxu0  ;;  %v511_v13 = vpop.f32.mrf.mxu1 }
  0xc7   :  { %v243_v16 = vadd.f32 %v503_v12, %v41_v10  ;;  %v251_v17 = vadd.f32 %v511_v13, %v49_v11 }
  0xc8   :  { %v178_v18 = vpop.f32.mrf.mxu0  ;;  %v210_v19 = vpop.f32.mrf.mxu1 }
  0xc9   :  { %259 = vst.msk [vmem:[#allocation2 + $0x10] sm:$0xff] %vm22_vm0, %v243_v16  ;;  %267 = vst.msk [vmem:[#allocation2 + $0x50] sm:$0xff] %vm22_vm0, %v251_v17  ;;  %v241_v22 = vadd.f32 %v178_v18, %v39_v14  ;;  %v249_v23 = vadd.f32 %v210_v19, %v47_v15 }
  0xca   :  { %v504_v24 = vpop.f32.mrf.mxu0  ;;  %v512_v25 = vpop.f32.mrf.mxu1 }
  0xcb   :  { %257 = vst.msk [vmem:[#allocation2] sm:$0xff] %vm22_vm0, %v241_v22  ;;  %265 = vst.msk [vmem:[#allocation2 + $0x40] sm:$0xff] %vm22_vm0, %v249_v23  ;;  %v244_v28 = vadd.f32 %v504_v24, %v42_v20  ;;  %v252_v29 = vadd.f32 %v512_v25, %v50_v21 }
  0xcc   :  { %v181_v30 = vpop.f32.mrf.mxu0  ;;  %v213_v31 = vpop.f32.mrf.mxu1 }
  0xcd   :  { %260 = vst.msk [vmem:[#allocation2 + $0x18] sm:$0xff] %vm22_vm0, %v244_v28  ;;  %268 = vst.msk [vmem:[#allocation2 + $0x58] sm:$0xff] %vm22_vm0, %v252_v29  ;;  %v242_v34 = vadd.f32 %v181_v30, %v40_v26  ;;  %v250_v35 = vadd.f32 %v213_v31, %v48_v27 }
  0xce   :  { %v507_v37 = vpop.f32.mrf.mxu0  ;;  %v515_v38 = vpop.f32.mrf.mxu1 }
  0xcf   :  { %258 = vst.msk [vmem:[#allocation2 + $0x8] sm:$0xff] %vm22_vm0, %v242_v34  ;;  %266 = vst.msk [vmem:[#allocation2 + $0x48] sm:$0xff] %vm22_vm0, %v250_v35  ;;  %v247_v41 = vadd.f32 %v507_v37, %v45_v32  ;;  %v255_v42 = vadd.f32 %v515_v38, %v53_v33 }
  0xd0   :  { %v278_v43 = vld [vmem:[#allocation2 + $0x10] sm:$0xff]  ;;  %v194_v46 = vpop.f32.mrf.mxu0  ;;  %v226_v47 = vpop.f32.mrf.mxu1 }
  0xd1   :  { %v286_v45 = vld [vmem:[#allocation2 + $0x50] sm:$0xff]  ;;  %v301_v48 = vmul.f32 %v615_v36, %v278_v43  ;;  %263 = vst.msk [vmem:[#allocation2 + $0x30] sm:$0xff] %vm22_vm0, %v247_v41  ;;  %271 = vst.msk [vmem:[#allocation2 + $0x70] sm:$0xff] %vm22_vm0, %v255_v42  ;;  %v245_v50 = vadd.f32 %v194_v46, %v43_v39  ;;  %v253_v51 = vadd.f32 %v226_v47, %v51_v40 }
  0xd2   :  { %v309_v49 = vmul.f32 %v615_v36, %v286_v45  ;;  %v276_v54 = vld [vmem:[#allocation2] sm:$0xff]  ;;  %v508_v56 = vpop.f32.mrf.mxu0  ;;  %v516_v57 = vpop.f32.mrf.mxu1 }
  0xd3   :  { %v284_v55 = vld [vmem:[#allocation2 + $0x40] sm:$0xff]  ;;  %v324_v58 = vadd.f32 %v622_v44, %v301_v48  ;;  %v299_v60 = vmul.f32 %v615_v36, %v276_v54  ;;  %261 = vst.msk [vmem:[#allocation2 + $0x20] sm:$0xff] %vm22_vm0, %v245_v50  ;;  %269 = vst.msk [vmem:[#allocation2 + $0x60] sm:$0xff] %vm22_vm0, %v253_v51  ;;  %v248_v2 = vadd.f32 %v508_v56, %v46_v52 }
  0xd4   :  { %v332_v59 = vadd.f32 %v622_v44, %v309_v49  ;;  %v307_v61 = vmul.f32 %v615_v36, %v284_v55  ;;  %v279_v0 = vld [vmem:[#allocation2 + $0x18] sm:$0xff]  ;;  %v256_v3 = vadd.f32 %v516_v57, %v54_v53  ;;  %v197_v4 = vpop.f32.mrf.mxu0  ;;  %v229_v5 = vpop.f32.mrf.mxu1 }
  0xd5   :  { %v287_v1 = vld [vmem:[#allocation2 + $0x58] sm:$0xff]  ;;  %v340_v6 = vmax.f32 %v324_v58, 0.0  ;;  %v322_v8 = vadd.f32 %v622_v44, %v299_v60  ;;  %v302_v10 = vmul.f32 %v615_v36, %v279_v0  ;;  %264 = vst.msk [vmem:[#allocation2 + $0x38] sm:$0xff] %vm22_vm0, %v248_v2  ;;  %v246_v14 = vadd.f32 %v197_v4, %v44_v62 }
  0xd6   :  { %v348_v7 = vmax.f32 %v332_v59, 0.0  ;;  %v330_v9 = vadd.f32 %v622_v44, %v307_v61  ;;  %v310_v11 = vmul.f32 %v615_v36, %v287_v1  ;;  %v277_v12 = vld [vmem:[#allocation2 + $0x8] sm:$0xff]  ;;  %272 = vst.msk [vmem:[#allocation2 + $0x78] sm:$0xff] %vm22_vm0, %v256_v3  ;;  %v254_v15 = vadd.f32 %v229_v5, %v52_v63 }
  0xd7   :  { %v285_v13 = vld [vmem:[#allocation2 + $0x48] sm:$0xff]  ;;  %v476_v16 = vpack.c.bf16 %v340_v6, %v340_v6  ;;  %v338_v18 = vmax.f32 %v322_v8, 0.0  ;;  %v325_v20 = vadd.f32 %v622_v44, %v302_v10  ;;  %v300_v22 = vmul.f32 %v615_v36, %v277_v12  ;;  %262 = vst.msk [vmem:[#allocation2 + $0x28] sm:$0xff] %vm22_vm0, %v246_v14 }
  0xd8   :  { %v484_v17 = vpack.c.bf16 %v348_v7, %v348_v7  ;;  %v346_v19 = vmax.f32 %v330_v9, 0.0  ;;  %v333_v21 = vadd.f32 %v622_v44, %v310_v11  ;;  %v308_v23 = vmul.f32 %v615_v36, %v285_v13  ;;  %v282_v24 = vld [vmem:[#allocation2 + $0x30] sm:$0xff]  ;;  %270 = vst.msk [vmem:[#allocation2 + $0x68] sm:$0xff] %vm22_vm0, %v254_v15 }
  0xd9   :  { %v290_v25 = vld [vmem:[#allocation2 + $0x70] sm:$0xff]  ;;  %421 = vst.msk [vmem:[%s732_s4 + $0x8] sm:$0xf] %vm418_vm1, %v476_v16  ;;  %v474_v26 = vpack.c.bf16 %v338_v18, %v338_v18  ;;  %v305_v28 = vmul.f32 %v615_v36, %v282_v24  ;;  %v341_v30 = vmax.f32 %v325_v20, 0.0  ;;  %v323_v32 = vadd.f32 %v622_v44, %v300_v22 }
  0xda   :  { %429 = vst.msk [vmem:[%s732_s4 + $0x28] sm:$0xf] %vm418_vm1, %v484_v17  ;;  %v482_v27 = vpack.c.bf16 %v346_v19, %v346_v19  ;;  %v313_v29 = vmul.f32 %v615_v36, %v290_v25  ;;  %v349_v31 = vmax.f32 %v333_v21, 0.0  ;;  %v331_v33 = vadd.f32 %v622_v44, %v308_v23  ;;  %v280_v34 = vld [vmem:[#allocation2 + $0x20] sm:$0xff] }
  0xdb   :  { %v288_v35 = vld [vmem:[#allocation2 + $0x60] sm:$0xff]  ;;  %419 = vst.msk [vmem:[%s732_s4] sm:$0xf] %vm418_vm1, %v474_v26  ;;  %v328_v37 = vadd.f32 %v622_v44, %v305_v28  ;;  %v303_v39 = vmul.f32 %v615_v36, %v280_v34  ;;  %v477_v41 = vpack.c.bf16 %v341_v30, %v341_v30  ;;  %v339_v43 = vmax.f32 %v323_v32, 0.0 }
  0xdc   :  { %427 = vst.msk [vmem:[%s732_s4 + $0x20] sm:$0xf] %vm418_vm1, %v482_v27  ;;  %v336_v38 = vadd.f32 %v622_v44, %v313_v29  ;;  %v311_v40 = vmul.f32 %v615_v36, %v288_v35  ;;  %v485_v42 = vpack.c.bf16 %v349_v31, %v349_v31  ;;  %v347_v45 = vmax.f32 %v331_v33, 0.0  ;;  %v283_v50 = vld [vmem:[#allocation2 + $0x38] sm:$0xff] }
  0xdd   :  { %v344_v46 = vmax.f32 %v328_v37, 0.0  ;;  %v326_v48 = vadd.f32 %v622_v44, %v303_v39  ;;  %v291_v51 = vld [vmem:[#allocation2 + $0x78] sm:$0xff]  ;;  %422 = vst.msk [vmem:[%s732_s4 + $0xc] sm:$0xf] %vm418_vm1, %v477_v41  ;;  %v475_v52 = vpack.c.bf16 %v339_v43, %v339_v43  ;;  %v306_v54 = vmul.f32 %v615_v36, %v283_v50 }
  0xde   :  { %v352_v47 = vmax.f32 %v336_v38, 0.0  ;;  %v334_v49 = vadd.f32 %v622_v44, %v311_v40  ;;  %430 = vst.msk [vmem:[%s732_s4 + $0x2c] sm:$0xf] %vm418_vm1, %v485_v42  ;;  %v483_v53 = vpack.c.bf16 %v347_v45, %v347_v45  ;;  %v314_v55 = vmul.f32 %v615_v36, %v291_v51  ;;  %v281_v60 = vld [vmem:[#allocation2 + $0x28] sm:$0xff] }
  0xdf   :  { %v480_v56 = vpack.c.bf16 %v344_v46, %v344_v46  ;;  %v342_v58 = vmax.f32 %v326_v48, 0.0  ;;  %v289_v61 = vld [vmem:[#allocation2 + $0x68] sm:$0xff]  ;;  %420 = vst.msk [vmem:[%s732_s4 + $0x4] sm:$0xf] %vm418_vm1, %v475_v52  ;;  %v329_v62 = vadd.f32 %v622_v44, %v306_v54  ;;  %v304_v0 = vmul.f32 %v615_v36, %v281_v60 }
  0xe0   :  { %v488_v57 = vpack.c.bf16 %v352_v47, %v352_v47  ;;  %v350_v59 = vmax.f32 %v334_v49, 0.0  ;;  %428 = vst.msk [vmem:[%s732_s4 + $0x24] sm:$0xf] %vm418_vm1, %v483_v53  ;;  %v337_v63 = vadd.f32 %v622_v44, %v314_v55  ;;  %v312_v1 = vmul.f32 %v615_v36, %v289_v61 }
  0xe1   :  { %425 = vst.msk [vmem:[%s732_s4 + $0x18] sm:$0xf] %vm418_vm1, %v480_v56  ;;  %v478_v2 = vpack.c.bf16 %v342_v58, %v342_v58  ;;  %v345_v4 = vmax.f32 %v329_v62, 0.0  ;;  %v327_v6 = vadd.f32 %v622_v44, %v304_v0 }
  0xe2   :  { %433 = vst.msk [vmem:[%s732_s4 + $0x38] sm:$0xf] %vm418_vm1, %v488_v57  ;;  %v486_v3 = vpack.c.bf16 %v350_v59, %v350_v59  ;;  %v353_v5 = vmax.f32 %v337_v63, 0.0  ;;  %v335_v7 = vadd.f32 %v622_v44, %v312_v1 }
  0xe3   :  { %423 = vst.msk [vmem:[%s732_s4 + $0x10] sm:$0xf] %vm418_vm1, %v478_v2  ;;  %v481_v36 = vpack.c.bf16 %v345_v4, %v345_v4  ;;  %v343_v9 = vmax.f32 %v327_v6, 0.0 }
  0xe4   :  { %431 = vst.msk [vmem:[%s732_s4 + $0x30] sm:$0xf] %vm418_vm1, %v486_v3  ;;  %v489_v8 = vpack.c.bf16 %v353_v5, %v353_v5  ;;  %v351_v10 = vmax.f32 %v335_v7, 0.0 }
  0xe5   :  { %426 = vst.msk [vmem:[%s732_s4 + $0x1c] sm:$0xf] %vm418_vm1, %v481_v36  ;;  %v479_v44 = vpack.c.bf16 %v343_v9, %v343_v9 }
  0xe6   :  { %434 = vst.msk [vmem:[%s732_s4 + $0x3c] sm:$0xf] %vm418_vm1, %v489_v8  ;;  %v487_v11 = vpack.c.bf16 %v351_v10, %v351_v10 }
  0xe7   :  { %424 = vst.msk [vmem:[%s732_s4 + $0x14] sm:$0xf] %vm418_vm1, %v479_v44 }
  0xe8   :  { %432 = vst.msk [vmem:[%s732_s4 + $0x34] sm:$0xf] %vm418_vm1, %v487_v11 }

// kernel: a_call__.12
= control target key start
LH: loop header
LB: loop body
LE: loop exit
PB: predicated region body
PF: predicated region fallthrough
CT: control target
= control target key end

     0   :  { %s2161_s18 = smov 0   ;;  %s2163_s19 = smov 0   ;;  %s2881_s0 = inlined_call_operand.vmem [shape: bf16[1,2,10,10,16], index: 0, kind: input, shape index: {}]   ;;  %s2882_s1 = inlined_call_operand.vmem [shape: bf16[2,72,8], index: 1, kind: input, shape index: {}]   ;;  %s2883_s2 = inlined_call_operand.vmem [shape: f32[1,1,16], index: 2, kind: input, shape index: {}]   ;;  %s2884_s3 = inlined_call_operand.vmem [shape: f32[1,1,16], index: 3, kind: input, shape index: {}]   ;;  %s2885_s4 = inlined_call_operand.vmem [shape: bf16[2,64,16], index: 4, kind: output, shape index: {0}]   ;;  %s2886_s5 = inlined_call_operand.vmem [shape: f32[2,1,16], index: 5, kind: output, shape index: {1}]  }
   0x1   :  { %s2165_s20 = smov 0  }
   0x2 LB: > { %s25_s21 = sadd.s32 1, %s2116_s19  ;;  %p1826_p0 = scmp.ge.s32.totalorder %s2120_s20, 1  ;;  %s2120_s20 = sphi %s2165_s20, %s16_s20   ;;  %s2116_s19 = sphi %s2163_s19, %s2932_s19   ;;  %s2112_s18 = sphi %s2161_s18, %s2931_s18  }
   0x3   : > { %p26_p1 = scmp.ge.s32.totalorder %s25_s21, 2  ;;  %p239_p2 = scmp.lt.s32.totalorder %s2120_s20, 3 }
   0x5   : > { %s2934_s21 = smov (%p26_p1, %s25_s21), 0  ;;  %p240_p3 = pnand %p1826_p0, %p239_p2 }
   0x7   : > { %243 = sbr.rel (%p240_p3) target bundleno = 551 (0x227), region = 36 }
   0xc   : > { %p291_p4 = scmp.lt.s32.totalorder %s2112_s18, 1  ;;  %vm482_vm0 = vcmask 1042432   ;;  %vm483_vm1 = vcmask 1046532   ;;  %s2122_s26 = smov 16   ;;  %vm343_vm3 = vsmask.f32 3328 }
   0xd   : > { %s2123_s27 = smov 120   ;;  %vm2210_vm2 = vmor %vm482_vm0, %vm483_vm1  ;;  %vm344_vm4 = vsmask.f32 7440  ;;  %s2124_s28 = smov 8   ;;  %vm1204_vm6 = vcmask 1043456   ;;  %vm1083_vm7 = vcmask 64512  }
   0xe   : > { %s2936_s18 = smov (!%p291_p4, %s2112_s18), 1  ;;  %vm2298_vm5 = vmor %vm343_vm3, %vm344_vm4  ;;  %s2125_s29 = smov 32   ;;  %vm1096_vm8 = vcmask 130048   ;;  %vm1105_vm9 = vcmask 195584   ;;  %vm1114_vm10 = vcmask 261120   ;;  %vm1123_vm11 = vcmask 326656  }
   0xf   : > { %s2042_s22 = smul.u32 80, %s2936_s18  ;;  %s2126_s30 = smov 24   ;;  %vm1132_vm12 = vcmask 392192   ;;  %vm1141_vm13 = vcmask 457728   ;;  %vm1150_vm14 = vcmask 523264   ;;  %vm1195_vm15 = vcmask 588800  }
  0x10   : > { %s2127_s6 = smov 40   ;;  %s2128_s7 = smov 48   ;;  %vm1628_vm0 = vcmask 125952   ;;  %vm1659_vm1 = vcmask 122880  }
  0x11   : > { %s2185_s25 = scalar_lea.vmem %s2881_s0, %s2042_s22  ;;  %s2129_s8 = smov 56  }
  0x12   : > { %v1840_v0 = vld [vmem:[%s2185_s25 + $0x18] sm:$0xf]  ;;  %v1841_v1 = vld [vmem:[%s2185_s25 + $0x20] sm:$0xf]  ;;  %v328_v7 = vld [vmem:[%s2185_s25 + $0x8] sm:$0xf]  ;;  %s325_s23 = scalar_lea.vmem %s2886_s5, %s2936_s18 }
  0x13   : > { %v327_v2 = vld [vmem:[%s2185_s25] sm:$0xf]  ;;  %v577_v3 = vshrl.u32 %v1841_v1, 16  ;;  %v580_v4 = vshll.u32 %v1841_v1, 16  ;;  %v2190_v5 = vcombine.low %v1840_v0, %v1841_v1  ;;  %v563_v6 = vshrl.u32 %v1840_v0, 16  ;;  %s2130_s15 = smov 64  }
  0x14   : > { %v566_v8 = vshll.u32 %v1840_v0, 16  ;;  %v361_v9 = vshrl.u32 %v328_v7, 16  ;;  %v364_v10 = vshll.u32 %v328_v7, 16  ;;  %v2193_v11 = vcombine.low %v327_v2, %v328_v7  ;;  %v2196_v12 = vld [vmem:[%s2185_s25 + $0x4] sm:$0x1] }
  0x15   : > { %v579_v13 = vrot.slane %v577_v3, 4  ;;  %v582_v14 = vrot.slane %v580_v4, 5  ;;  %1291 = vrot.lane.b32.xlu1 %v2190_v5, %s2122_s26  ;;  %v565_v15 = vrot.slane %v563_v6, 4  ;;  %v2201_v16 = vld [vmem:[%s2185_s25 + $0xc] sm:$0x1]  ;;  %v347_v19 = vshrl.u32 %v327_v2, 16 }
  0x16   : > { %2900 = vst [vmem:[#allocation2_spill] sm:$0xff] %v2193_v11  ;;  %v568_v17 = vrot.slane %v566_v8, 5  ;;  %v2203_v18 = vrot.slane %v361_v9, 4  ;;  %1273 = vrot.lane.b32.xlu0 %v2193_v11, %s2123_s27  ;;  %v350_v20 = vshll.u32 %v327_v2, 16  ;;  %v458_v21 = vld [vmem:[%s2185_s25] sm:$0xe] }
  0x17   : > { %v583_v23 = vor.u32 %v582_v14, %v579_v13  ;;  %v2214_v24 = vrot.slane %v364_v10, 5  ;;  %v459_v25 = vld [vmem:[%s2185_s25 + $0x8] sm:$0xe]  ;;  %v1830_v26 = vrot.slane %v458_v21, 9  ;;  %v487_v27 = vrot.slane %v2196_v12, 5 }
  0x18   : > { %v569_v28 = vor.u32 %v568_v17, %v565_v15  ;;  %v1831_v29 = vrot.slane %v459_v25, 9  ;;  %v491_v31 = vrot.slane %v2201_v16, 5  ;;  %v2222_v32 = vld [vmem:[%s2185_s25 + $0x10] sm:$0xf]  ;;  %v2225_v33 = vld [vmem:[%s2185_s25 + $0x18] sm:$0xf] }
  0x19   : > { %v488_v30 = vsel %vm2210_vm2, %v1830_v26, %v487_v27  ;;  %v2227_v34 = vrot.slane %v347_v19, 4  ;;  %v2229_v35 = vrot.slane %v350_v20, 5  ;;  %v2232_v36 = vld [vmem:[%s2185_s25 + $0x14] sm:$0x1]  ;;  %v2234_v37 = vrot.slane %v583_v23, 4 }
  0x1a   : > { %v367_v38 = vor.u32 %v2214_v24, %v2203_v18  ;;  %v492_v39 = vsel %vm2210_vm2, %v1831_v29, %v491_v31  ;;  %v375_v40 = vshrl.u32 %v2222_v32, 16  ;;  %v2242_v41 = vld [vmem:[%s2185_s25 + $0x1c] sm:$0x1]  ;;  %v460_v42 = vld [vmem:[%s2185_s25 + $0x10] sm:$0xe]  ;;  %v2245_v43 = vrot.slane %v569_v28, 4 }
  0x1b   : > { %v2247_v44 = vcombine.low %v488_v30, %v492_v39  ;;  %v378_v45 = vshll.u32 %v2222_v32, 16  ;;  %v2252_v46 = vcombine.low %v2222_v32, %v2225_v33  ;;  %v461_v47 = vld [vmem:[%s2185_s25 + $0x18] sm:$0xe]  ;;  %v1838_v48 = vld [vmem:[%s2185_s25 + $0x8] sm:$0xf]  ;;  %v389_v49 = vshrl.u32 %v2225_v33, 16 }
  0x1c   : > { %v392_v50 = vshll.u32 %v2225_v33, 16  ;;  %v1832_v51 = vrot.slane %v460_v42, 9  ;;  %v495_v52 = vrot.slane %v2232_v36, 5  ;;  %v1839_v53 = vld [vmem:[%s2185_s25 + $0x10] sm:$0xf]  ;;  %v1833_v54 = vrot.slane %v461_v47, 9 }
  0x1d   : > { %2903 = vst [vmem:[#allocation3_spill] sm:$0xff] %v2252_v46  ;;  %1281 = vrot.lane.b32.xlu1 %v2247_v44, %s2124_s28  ;;  %1275 = vrot.lane.b32.xlu0 %v2252_v46, %s2123_s27  ;;  %v499_v55 = vrot.slane %v2242_v41, 5  ;;  %v535_v56 = vshrl.u32 %v1838_v48, 16  ;;  %v538_v57 = vshll.u32 %v1838_v48, 16  ;;  %v1848_v58 = vld [vmem:[%s2185_s25 + $0x1c] sm:$0x1]  ;;  %v2268_v62 = vcombine.low %v1838_v48, %v1839_v53 }
  0x1e   : > { %v496_v59 = vsel %vm2210_vm2, %v1832_v51, %v495_v52  ;;  %v549_v60 = vshrl.u32 %v1839_v53, 16  ;;  %v552_v61 = vshll.u32 %v1839_v53, 16  ;;  %v1849_v63 = vld [vmem:[%s2185_s25 + $0x24] sm:$0x1]  ;;  %v1856_v0 = vld [vmem:[%s2185_s25 + $0x18] sm:$0xe]  ;;  %v353_v14 = vor.u32 %v2229_v35, %v2227_v34 }
  0x1f   : > { %v500_v1 = vsel %vm2210_vm2, %v1833_v54, %v499_v55  ;;  %v537_v2 = vrot.slane %v535_v56, 4  ;;  %v540_v3 = vrot.slane %v538_v57, 5  ;;  %v1857_v4 = vld [vmem:[%s2185_s25 + $0x20] sm:$0xe]  ;;  %v1864_v6 = vrot.slane %v1856_v0, 9 }
  0x20   : > { %v2275_v7 = vcombine.low %v496_v59, %v500_v1  ;;  %v551_v8 = vrot.slane %v549_v60, 4  ;;  %v554_v9 = vrot.slane %v552_v61, 5  ;;  %v680_v10 = vrot.slane %v1848_v58, 5  ;;  %v1846_v13 = vld [vmem:[%s2185_s25 + $0xc] sm:$0x1] }
  0x21   : > { %1289 = vrot.lane.b32.xlu0 %v2268_v62, %s2122_s26  ;;  %v1865_v15 = vrot.slane %v1857_v4, 9  ;;  %v684_v17 = vrot.slane %v1849_v63, 5  ;;  %v1847_v19 = vld [vmem:[%s2185_s25 + $0x14] sm:$0x1]  ;;  %v1854_v20 = vld [vmem:[%s2185_s25 + $0x8] sm:$0xe]  ;;  %v541_v21 = vor.u32 %v540_v3, %v537_v2 }
  0x22   : > { %1283 = vrot.lane.b32.xlu1 %v2275_v7, %s2124_s28  ;;  %v681_v23 = vsel %vm2210_vm2, %v1864_v6, %v680_v10  ;;  %v1855_v25 = vld [vmem:[%s2185_s25 + $0x10] sm:$0xe]  ;;  %v1862_v26 = vrot.slane %v1854_v20, 9  ;;  %v672_v27 = vrot.slane %v1846_v13, 5  ;;  %v676_v28 = vrot.slane %v1847_v19, 5 }
  0x23   : > { %v685_v29 = vsel %vm2210_vm2, %v1865_v15, %v684_v17  ;;  %v1863_v30 = vrot.slane %v1855_v25, 9  ;;  %v572_v31 = vshll.u32 %v1848_v58, 16  ;;  %v586_v39 = vshll.u32 %v1849_v63, 16  ;;  %v1872_v42 = vld [vmem:[%s2185_s25 + $0x20] sm:$0xf] }
  0x24   : > { %v2292_v47 = vcombine.low %v681_v23, %v685_v29  ;;  %v673_v48 = vsel %vm2210_vm2, %v1862_v26, %v672_v27  ;;  %v542_v52 = vrot.slane %v541_v21, 4  ;;  %v544_v53 = vshll.u32 %v1846_v13, 16  ;;  %v1873_v61 = vld [vmem:[%s2185_s25 + $0x28] sm:$0xf]  ;;  %v1870_v4 = vld [vmem:[%s2185_s25 + $0x10] sm:$0xf] }
  0x25   : > { %v677_v54 = vsel %vm2210_vm2, %v1863_v30, %v676_v28  ;;  %v574_v55 = vrot.slane %v572_v31, 5  ;;  %v588_v56 = vrot.slane %v586_v39, 5  ;;  %v555_v57 = vor.u32 %v554_v9, %v551_v8  ;;  %v1871_v6 = vld [vmem:[%s2185_s25 + $0x18] sm:$0xf]  ;;  %v2324_v13 = vld [vmem:[%s2185_s25 + $0x24] sm:$0x1] }
  0x26   : > { %1307 = vrot.lane.b32.xlu1 %v2292_v47, %s2125_s29  ;;  %v2306_v58 = vcombine.low %v673_v48, %v677_v54  ;;  %v546_v59 = vrot.slane %v544_v53, 5  ;;  %v558_v60 = vshll.u32 %v1847_v19, 16  ;;  %v748_v63 = vshrl.u32 %v1872_v42, 16  ;;  %v2329_v20 = vld [vmem:[%s2185_s25 + $0x2c] sm:$0x1] }
  0x27   : > { %v575_v0 = vsel %vm2298_vm5, %v2245_v43, %v574_v55  ;;  %v589_v1 = vsel %vm2298_vm5, %v2234_v37, %v588_v56  ;;  %v556_v2 = vrot.slane %v555_v57, 4  ;;  %v751_v3 = vshll.u32 %v1872_v42, 16  ;;  %v1878_v27 = vld [vmem:[%s2185_s25 + $0x14] sm:$0x1]  ;;  %v1879_v39 = vld [vmem:[%s2185_s25 + $0x1c] sm:$0x1] }
  0x28   : > { %1305 = vrot.lane.b32.xlu0 %v2306_v58, %s2125_s29  ;;  %v2319_v8 = vcombine.low %v575_v0, %v589_v1  ;;  %v547_v9 = vsel %vm2298_vm5, %v542_v52, %v546_v59  ;;  %v560_v10 = vrot.slane %v558_v60, 5  ;;  %v750_v43 = vrot.slane %v748_v63, 4  ;;  %v2366_v24 = vld [vmem:[%s2185_s25 + $0x20] sm:$0xf] }
  0x29   : > { %v753_v15 = vrot.slane %v751_v3, 5  ;;  %v762_v37 = vshrl.u32 %v1873_v61, 16  ;;  %v765_v17 = vshll.u32 %v1873_v61, 16  ;;  %v2326_v19 = vcombine.low %v1872_v42, %v1873_v61 }
  0x2a   : > { %1299 = vrot.lane.b32.xlu1 %v2319_v8, %s2126_s30  ;;  %v561_v21 = vsel %vm2298_vm5, %v556_v2, %v560_v10  ;;  %v720_v23 = vshrl.u32 %v1870_v4, 16  ;;  %v723_v25 = vshll.u32 %v1870_v4, 16  ;;  %v734_v26 = vshrl.u32 %v1871_v6, 16 }
  0x2b   : > { %v2336_v28 = vcombine.low %v547_v9, %v561_v21  ;;  %v764_v29 = vrot.slane %v762_v37, 4  ;;  %v767_v30 = vrot.slane %v765_v17, 5  ;;  %v737_v31 = vshll.u32 %v1871_v6, 16  ;;  %v1886_v21 = vld [vmem:[%s2185_s25 + $0x10] sm:$0xe] }
  0x2c   : > { %v722_v42 = vrot.slane %v720_v23, 4  ;;  %v725_v48 = vrot.slane %v723_v25, 5  ;;  %v736_v52 = vrot.slane %v734_v26, 4  ;;  %v2339_v53 = vcombine.low %v1870_v4, %v1871_v6 }
  0x2d   : > { %1297 = vrot.lane.b32.xlu0 %v2336_v28, %s2126_s30  ;;  %v739_v54 = vrot.slane %v737_v31, 5  ;;  %v754_v55 = vor.u32 %v753_v15, %v750_v43  ;;  %v757_v56 = vshll.u32 %v2324_v13, 16  ;;  %v768_v57 = vor.u32 %v767_v30, %v764_v29 }
  0x2e   : > { %1315 = vrot.lane.b32.xlu1 %v2326_v19, %s2127_s6  ;;  %v771_v59 = vshll.u32 %v2329_v20, 16  ;;  %v726_v60 = vor.u32 %v725_v48, %v722_v42  ;;  %v729_v61 = vshll.u32 %v1878_v27, 16  ;;  %v743_v63 = vshll.u32 %v1879_v39, 16  ;;  %v2405_v42 = vld [vmem:[%s2185_s25 + $0x38] sm:$0xf] }
  0x2f   : > { %v755_v0 = vrot.slane %v754_v55, 4  ;;  %v759_v1 = vrot.slane %v757_v56, 5  ;;  %v769_v2 = vrot.slane %v768_v57, 4  ;;  %v740_v3 = vor.u32 %v739_v54, %v736_v52  ;;  %v1888_v48 = vld [vmem:[%s2185_s25 + $0x20] sm:$0xe] }
  0x30   : > { %v773_v4 = vrot.slane %v771_v59, 5  ;;  %v727_v6 = vrot.slane %v726_v60, 4  ;;  %v731_v9 = vrot.slane %v729_v61, 5  ;;  %v745_v10 = vrot.slane %v743_v63, 5  ;;  %v1889_v52 = vld [vmem:[%s2185_s25 + $0x28] sm:$0xe] }
  0x31   : > { %v2350_v43 = vrot.slane %v367_v38, 4  ;;  %v2354_v15 = vrot.slane %v375_v40, 4  ;;  %1313 = vrot.lane.b32.xlu0 %v2339_v53, %s2127_s6  ;;  %v760_v37 = vsel %vm2298_vm5, %v755_v0, %v759_v1  ;;  %v741_v17 = vrot.slane %v740_v3, 4  ;;  %v2369_v38 = vld [vmem:[%s2185_s25 + $0x28] sm:$0xf] }
  0x32   : > { %v774_v23 = vsel %vm2298_vm5, %v769_v2, %v773_v4  ;;  %v732_v18 = vsel %vm2298_vm5, %v727_v6, %v731_v9  ;;  %v1887_v40 = vld [vmem:[%s2185_s25 + $0x18] sm:$0xe]  ;;  %v2375_v25 = vrot.slane %v353_v14, 4  ;;  %v2379_v26 = vrot.slane %v378_v45, 5  ;;  %v2396_v45 = vld [vmem:[%s2185_s25 + $0x30] sm:$0xf] }
  0x33   : > { %v2381_v29 = vcombine.low %v760_v37, %v774_v23  ;;  %v746_v30 = vsel %vm2298_vm5, %v741_v17, %v745_v10  ;;  %v2387_v31 = vrot.slane %v389_v49, 4  ;;  %v2391_v34 = vrot.slane %v392_v50, 5  ;;  %v2412_v54 = vld [vmem:[%s2185_s25 + $0x34] sm:$0x1]  ;;  %v2419_v56 = vld [vmem:[%s2185_s25 + $0x3c] sm:$0x1] }
  0x34   : > { %v2393_v35 = vcombine.low %v732_v18, %v746_v30  ;;  %v1894_v32 = vrot.slane %v1886_v21, 9  ;;  %v2402_v49 = vcombine.low %v2366_v24, %v2369_v38  ;;  %v857_v33 = vrot.slane %v1878_v27, 5  ;;  %v464_v57 = vld [vmem:[%s2185_s25 + $0x30] sm:$0xe]  ;;  %v2430_v61 = vld [vmem:[%s2185_s25 + $0x24] sm:$0x1] }
  0x35   : > { %1323 = vrot.lane.b32.xlu1 %v2381_v29, %s2128_s7  ;;  %v1895_v50 = vrot.slane %v1887_v40, 9  ;;  %v861_v14 = vrot.slane %v1879_v39, 5  ;;  %v465_v39 = vld [vmem:[%s2185_s25 + $0x38] sm:$0xe]  ;;  %v2427_v60 = vcombine.low %v2396_v45, %v2405_v42  ;;  %v2433_v63 = vld [vmem:[%s2185_s25 + $0x2c] sm:$0x1] }
  0x36   : > { %2906 = vst [vmem:[#allocation4_spill] sm:$0xff] %v2402_v49  ;;  %1321 = vrot.lane.b32.xlu0 %v2393_v35, %s2128_s7  ;;  %v858_v55 = vsel %vm2210_vm2, %v1894_v32, %v857_v33  ;;  %v462_v0 = vld [vmem:[%s2185_s25 + $0x20] sm:$0xe]  ;;  %v1896_v2 = vrot.slane %v1888_v48, 9  ;;  %v865_v3 = vrot.slane %v2324_v13, 5  ;;  %v1897_v4 = vrot.slane %v1889_v52, 9 }
  0x37   : > { %v862_v27 = vsel %vm2210_vm2, %v1895_v50, %v861_v14  ;;  %2907 = vst [vmem:[#allocation5_spill] sm:$0xff] %v2427_v60  ;;  %v869_v6 = vrot.slane %v2329_v20, 5  ;;  %v463_v9 = vld [vmem:[%s2185_s25 + $0x28] sm:$0xe]  ;;  %v1836_v10 = vrot.slane %v464_v57, 9  ;;  %v511_v37 = vrot.slane %v2412_v54, 5 }
  0x38   : > { %v2423_v59 = vcombine.low %v858_v55, %v862_v27  ;;  %v1837_v17 = vrot.slane %v465_v39, 9  ;;  %v515_v21 = vrot.slane %v2419_v56, 5  ;;  %v1844_v23 = vld [vmem:[%s2185_s25 + $0x38] sm:$0xf]  ;;  %v866_v18 = vsel %vm2210_vm2, %v1896_v2, %v865_v3  ;;  %v1845_v30 = vld [vmem:[%s2185_s25 + $0x40] sm:$0xf] }
  0x39   : > { %1277 = vrot.lane.b32.xlu1 %v2402_v49, %s2123_s27  ;;  %v870_v13 = vsel %vm2210_vm2, %v1897_v4, %v869_v6  ;;  %v1834_v20 = vrot.slane %v462_v0, 9  ;;  %v503_v40 = vrot.slane %v2430_v61, 5  ;;  %v512_v33 = vsel %vm2210_vm2, %v1836_v10, %v511_v37  ;;  %v1842_v48 = vld [vmem:[%s2185_s25 + $0x28] sm:$0xf]  ;;  %v1843_v4 = vld [vmem:[%s2185_s25 + $0x30] sm:$0xf] }
  0x3a   : > { %1329 = vrot.lane.b32.xlu0 %v2423_v59, %s2129_s8  ;;  %v2454_v32 = vcombine.low %v866_v18, %v870_v13  ;;  %v516_v50 = vsel %vm2210_vm2, %v1837_v17, %v515_v21  ;;  %v1835_v14 = vrot.slane %v463_v9, 9  ;;  %v507_v27 = vrot.slane %v2433_v63, 5  ;;  %v1852_v17 = vld [vmem:[%s2185_s25 + $0x3c] sm:$0x1] }
  0x3b   : > { %v2463_v52 = vcombine.low %v512_v33, %v516_v50  ;;  %v504_v55 = vsel %vm2210_vm2, %v1834_v20, %v503_v40  ;;  %v619_v57 = vshrl.u32 %v1844_v23, 16  ;;  %v622_v39 = vshll.u32 %v1844_v23, 16  ;;  %v1853_v40 = vld [vmem:[%s2185_s25 + $0x44] sm:$0x1] }
  0x3c   : > { %v633_v0 = vshrl.u32 %v1845_v30, 16  ;;  %v636_v2 = vshll.u32 %v1845_v30, 16  ;;  %v2470_v3 = vcombine.low %v1844_v23, %v1845_v30  ;;  %v508_v6 = vsel %vm2210_vm2, %v1835_v14, %v507_v27  ;;  %v1850_v14 = vld [vmem:[%s2185_s25 + $0x2c] sm:$0x1] }
  0x3d   : > { %1279 = vrot.lane.b32.xlu1 %v2427_v60, %s2123_s27  ;;  %2908 = vst [vmem:[#allocation6_spill] sm:$0xff] %v2463_v52  ;;  %v621_v9 = vrot.slane %v619_v57, 4  ;;  %v591_v10 = vshrl.u32 %v1842_v48, 16  ;;  %v594_v37 = vshll.u32 %v1842_v48, 16  ;;  %v2476_v21 = vcombine.low %v504_v55, %v508_v6 }
  0x3e   : > { %1331 = vrot.lane.b32.xlu0 %v2454_v32, %s2129_s8  ;;  %2909 = vst [vmem:[#allocation7_spill] sm:$0xff] %v2470_v3  ;;  %v624_v18 = vrot.slane %v622_v39, 5  ;;  %v635_v13 = vrot.slane %v633_v0, 4  ;;  %v638_v20 = vrot.slane %v636_v2, 5  ;;  %v605_v33 = vshrl.u32 %v1843_v4, 16 }
  0x3f   : > { %2910 = vst [vmem:[#allocation8_spill] sm:$0xff] %v2476_v21  ;;  %v593_v23 = vrot.slane %v591_v10, 4  ;;  %v596_v30 = vrot.slane %v594_v37, 5  ;;  %v608_v50 = vshll.u32 %v1843_v4, 16  ;;  %v2484_v55 = vcombine.low %v1842_v48, %v1843_v4  ;;  %v1851_v0 = vld [vmem:[%s2185_s25 + $0x34] sm:$0x1] }
  0x40   : > { %v625_v27 = vor.u32 %v624_v18, %v621_v9  ;;  %v628_v57 = vshll.u32 %v1852_v17, 16  ;;  %v639_v39 = vor.u32 %v638_v20, %v635_v13  ;;  %v1860_v2 = vld [vmem:[%s2185_s25 + $0x38] sm:$0xe]  ;;  %v607_v6 = vrot.slane %v605_v33, 4  ;;  %v1861_v37 = vld [vmem:[%s2185_s25 + $0x40] sm:$0xe] }
  0x41   : > { %1287 = vrot.lane.b32.xlu1 %v2463_v52, %s2124_s28  ;;  %2911 = vst [vmem:[#allocation9_spill] sm:$0xff] %v2484_v55  ;;  %v610_v1 = vrot.slane %v608_v50, 5  ;;  %v642_v10 = vshll.u32 %v1853_v40, 16  ;;  %v597_v60 = vor.u32 %v596_v30, %v593_v23  ;;  %v600_v52 = vshll.u32 %v1850_v14, 16  ;;  %v1859_v13 = vld [vmem:[%s2185_s25 + $0x30] sm:$0xe] }
  0x42   : > { %1285 = vrot.lane.b32.xlu0 %v2476_v21, %s2124_s28  ;;  %v626_v49 = vrot.slane %v625_v27, 4  ;;  %v630_v46 = vrot.slane %v628_v57, 5  ;;  %v640_v11 = vrot.slane %v639_v39, 4  ;;  %v1858_v21 = vld [vmem:[%s2185_s25 + $0x28] sm:$0xe]  ;;  %v614_v18 = vshll.u32 %v1851_v0, 16 }
  0x43   : > { %v644_v48 = vrot.slane %v642_v10, 5  ;;  %v598_v4 = vrot.slane %v597_v60, 4  ;;  %v611_v9 = vor.u32 %v610_v1, %v607_v6  ;;  %v602_v23 = vrot.slane %v600_v52, 5  ;;  %v1876_v50 = vld [vmem:[%s2185_s25 + $0x40] sm:$0xf] }
  0x44   : > { %v631_v20 = vsel %vm2298_vm5, %v626_v49, %v630_v46  ;;  %v1868_v30 = vrot.slane %v1860_v2, 9  ;;  %v696_v33 = vrot.slane %v1852_v17, 5  ;;  %v616_v60 = vrot.slane %v614_v18, 5  ;;  %v1877_v39 = vld [vmem:[%s2185_s25 + $0x48] sm:$0xf] }
  0x45   : > { %1295 = vrot.lane.b32.xlu1 %v2470_v3, %s2122_s26  ;;  %v645_v27 = vsel %vm2298_vm5, %v640_v11, %v644_v48  ;;  %v612_v57 = vrot.slane %v611_v9, 4  ;;  %v1869_v1 = vrot.slane %v1861_v37, 9  ;;  %v603_v10 = vsel %vm2298_vm5, %v598_v4, %v602_v23  ;;  %v1874_v52 = vld [vmem:[%s2185_s25 + $0x30] sm:$0xf]  ;;  %v1875_v48 = vld [vmem:[%s2185_s25 + $0x38] sm:$0xf] }
  0x46   : > { %1293 = vrot.lane.b32.xlu0 %v2484_v55, %s2122_s26  ;;  %v2501_v6 = vcombine.low %v631_v20, %v645_v27  ;;  %v697_v46 = vsel %vm2210_vm2, %v1868_v30, %v696_v33  ;;  %v700_v49 = vrot.slane %v1853_v40, 5  ;;  %v1866_v2 = vrot.slane %v1858_v21, 9  ;;  %v1891_v55 = vld [vmem:[%s2185_s25 + $0x38] sm:$0xe] }
  0x47   : > { %v617_v17 = vsel %vm2298_vm5, %v612_v57, %v616_v60  ;;  %v688_v3 = vrot.slane %v1850_v14, 5  ;;  %v1867_v11 = vrot.slane %v1859_v13, 9  ;;  %v692_v9 = vrot.slane %v1851_v0, 5  ;;  %v1884_v0 = vld [vmem:[%s2185_s25 + $0x44] sm:$0x1] }
  0x48   : > { %2912 = vst [vmem:[#allocation10_spill] sm:$0xff] %v2501_v6  ;;  %v2513_v37 = vcombine.low %v603_v10, %v617_v17  ;;  %v701_v4 = vsel %vm2210_vm2, %v1869_v1, %v700_v49  ;;  %v804_v40 = vshrl.u32 %v1876_v50, 16  ;;  %v807_v14 = vshll.u32 %v1876_v50, 16  ;;  %v1885_v1 = vld [vmem:[%s2185_s25 + $0x4c] sm:$0x1] }
  0x49   : > { %1303 = vrot.lane.b32.xlu1 %v2501_v6, %s2126_s30  ;;  %v2517_v18 = vcombine.low %v697_v46, %v701_v4  ;;  %v689_v21 = vsel %vm2210_vm2, %v1866_v2, %v688_v3  ;;  %v818_v13 = vshrl.u32 %v1877_v39, 16  ;;  %v693_v20 = vsel %vm2210_vm2, %v1867_v11, %v692_v9  ;;  %v1882_v2 = vld [vmem:[%s2185_s25 + $0x34] sm:$0x1]  ;;  %v1883_v9 = vld [vmem:[%s2185_s25 + $0x3c] sm:$0x1] }
  0x4a   : > { %2913 = vst [vmem:[#allocation11_spill] sm:$0xff] %v2513_v37  ;;  %1301 = vrot.lane.b32.xlu0 %v2513_v37, %s2126_s30  ;;  %v806_v23 = vrot.slane %v804_v40, 4  ;;  %v821_v30 = vshll.u32 %v1877_v39, 16  ;;  %v2525_v33 = vcombine.low %v1876_v50, %v1877_v39  ;;  %v2528_v27 = vcombine.low %v689_v21, %v693_v20  ;;  %v1892_v20 = vld [vmem:[%s2185_s25 + $0x40] sm:$0xe] }
  0x4b   : > { %2914 = vst [vmem:[#allocation12_spill] sm:$0xff] %v2517_v18  ;;  %v809_v57 = vrot.slane %v807_v14, 5  ;;  %v820_v60 = vrot.slane %v818_v13, 4  ;;  %v776_v3 = vshrl.u32 %v1874_v52, 16  ;;  %v779_v46 = vshll.u32 %v1874_v52, 16 }
  0x4c   : > { %2915 = vst [vmem:[#allocation13_spill] sm:$0xff] %v2525_v33  ;;  %2916 = vst [vmem:[#allocation14_spill] sm:$0xff] %v2528_v27  ;;  %v823_v10 = vrot.slane %v821_v30, 5  ;;  %v790_v49 = vshrl.u32 %v1875_v48, 16  ;;  %v793_v17 = vshll.u32 %v1875_v48, 16  ;;  %v2534_v50 = vcombine.low %v1874_v52, %v1875_v48 }
  0x4d   : > { %1311 = vrot.lane.b32.xlu1 %v2517_v18, %s2125_s29  ;;  %v778_v11 = vrot.slane %v776_v3, 4  ;;  %v810_v39 = vor.u32 %v809_v57, %v806_v23  ;;  %v813_v4 = vshll.u32 %v1884_v0, 16  ;;  %v781_v40 = vrot.slane %v779_v46, 5  ;;  %v1893_v3 = vld [vmem:[%s2185_s25 + $0x48] sm:$0xe] }
  0x4e   : > { %1309 = vrot.lane.b32.xlu0 %v2528_v27, %s2125_s29  ;;  %v792_v21 = vrot.slane %v790_v49, 4  ;;  %v795_v14 = vrot.slane %v793_v17, 5  ;;  %v824_v13 = vor.u32 %v823_v10, %v820_v60  ;;  %v827_v6 = vshll.u32 %v1885_v1, 16  ;;  %v1890_v27 = vld [vmem:[%s2185_s25 + $0x30] sm:$0xe] }
  0x4f   : > { %v811_v30 = vrot.slane %v810_v39, 4  ;;  %v815_v18 = vrot.slane %v813_v4, 5  ;;  %v785_v37 = vshll.u32 %v1882_v2, 16  ;;  %v782_v48 = vor.u32 %v781_v40, %v778_v11 }
  0x50   : > { %v825_v52 = vrot.slane %v824_v13, 4  ;;  %v796_v23 = vor.u32 %v795_v14, %v792_v21  ;;  %v799_v57 = vshll.u32 %v1883_v9, 16  ;;  %v829_v49 = vrot.slane %v827_v6, 5 }
  0x51   : > { %1319 = vrot.lane.b32.xlu1 %v2525_v33, %s2127_s6  ;;  %v816_v46 = vsel %vm2298_vm5, %v811_v30, %v815_v18  ;;  %v787_v60 = vrot.slane %v785_v37, 5  ;;  %v1900_v10 = vrot.slane %v1892_v20, 9  ;;  %v783_v17 = vrot.slane %v782_v48, 4 }
  0x52   : > { %1317 = vrot.lane.b32.xlu0 %v2534_v50, %s2127_s6  ;;  %v797_v39 = vrot.slane %v796_v23, 4  ;;  %v801_v4 = vrot.slane %v799_v57, 5  ;;  %v881_v33 = vrot.slane %v1884_v0, 5  ;;  %v830_v11 = vsel %vm2298_vm5, %v825_v52, %v829_v49 }
  0x53   : > { %v1901_v40 = vrot.slane %v1893_v3, 9  ;;  %v885_v21 = vrot.slane %v1885_v1, 5  ;;  %v1898_v14 = vrot.slane %v1890_v27, 9  ;;  %v2551_v13 = vcombine.low %v816_v46, %v830_v11  ;;  %v2090_v11 = vld [vmem:[%s2882_s1 + $0x34] sm:$0xff]  }
  0x54   : > { %v788_v6 = vsel %vm2298_vm5, %v783_v17, %v787_v60  ;;  %v802_v37 = vsel %vm2298_vm5, %v797_v39, %v801_v4  ;;  %v882_v18 = vsel %vm2210_vm2, %v1900_v10, %v881_v33  ;;  %v873_v30 = vrot.slane %v1882_v2, 5  ;;  %v2093_v17 = vld [vmem:[%s2882_s1 + $0x20] ss:$0 sps:$4 sm:$0xff]  }
  0x55   : > { %v2559_v20 = vcombine.low %v788_v6, %v802_v37  ;;  %v886_v0 = vsel %vm2210_vm2, %v1901_v40, %v885_v21  ;;  %v1899_v52 = vrot.slane %v1891_v55, 9  ;;  %1327 = vrot.lane.b32.xlu1 %v2551_v13, %s2128_s7  ;;  %v877_v1 = vrot.slane %v1883_v9, 5  ;;  %2040 = vmatprep.subr.msk.bf16.mxu0 %vm1204_vm6, %v2093_v17  ;;  %v2094_v40 = vld [vmem:[%s2882_s1 + $0x18] sm:$0xff]  }
  0x56   : > { %v2565_v27 = vcombine.low %v882_v18, %v886_v0  ;;  %v356_v48 = vshll.u32 %v2196_v12, 16  ;;  %v370_v23 = vshll.u32 %v2201_v16, 16  ;;  %v874_v33 = vsel %vm2210_vm2, %v1898_v14, %v873_v30 }
  0x57   : > { %1325 = vrot.lane.b32.xlu0 %v2559_v20, %s2128_s7  ;;  %v2917_v2 = vor.u32 %v2379_v26, %v2354_v15  ;;  %v384_v57 = vshll.u32 %v2232_v36, 16  ;;  %v395_v3 = vor.u32 %v2391_v34, %v2387_v31  ;;  %v878_v12 = vsel %vm2210_vm2, %v1899_v52, %v877_v1 }
  0x58   : > { %v358_v9 = vrot.slane %v356_v48, 5  ;;  %v372_v16 = vrot.slane %v370_v23, 5  ;;  %v398_v46 = vshll.u32 %v2242_v41, 16  ;;  %v2582_v49 = vcombine.low %v874_v33, %v878_v12  ;;  %v2092_v33 = vld [vmem:[%s2882_s1 + $0x24] sm:$0xff]  }
  0x59   : > { %v382_v55 = vrot.slane %v2917_v2, 4  ;;  %v386_v60 = vrot.slane %v384_v57, 5  ;;  %v396_v10 = vrot.slane %v395_v3, 4  ;;  %1335 = vrot.lane.b32.xlu1 %v2565_v27, %s2129_s8  ;;  %v417_v4 = vshrl.u32 %v2369_v38, 16  ;;  %v2097_v12 = vld [vmem:[%s2882_s1] sm:$0xff]  }
  0x5a   : > { %v359_v36 = vsel %vm2298_vm5, %v2375_v25, %v358_v9  ;;  %v373_v22 = vsel %vm2298_vm5, %v2350_v43, %v372_v16  ;;  %v400_v15 = vrot.slane %v398_v46, 5  ;;  %v2088_v25 = vld [vmem:[%s2882_s1 + $0x44] ss:$0 sps:$4 sm:$0xff]   ;;  %v2089_v43 = vld [vmem:[%s2882_s1 + $0x3c] sm:$0xff]   ;;  %v420_v21 = vshll.u32 %v2369_v38, 16  ;;  %v2091_v38 = vld [vmem:[%s2882_s1 + $0x2c] sm:$0xff]  }
  0x5b   : > { %1333 = vrot.lane.b32.xlu0 %v2582_v49, %s2129_s8  ;;  %v2594_v41 = vcombine.low %v359_v36, %v373_v22  ;;  %v387_v26 = vsel %vm2298_vm5, %v382_v55, %v386_v60  ;;  %2041 = vmatprep.subr.msk.bf16.mxu1 %vm1204_vm6, %v2088_v25  ;;  %v1451_v39 = vsel %vm1204_vm6, %v2088_v25, 0  ;;  %v403_v14 = vshrl.u32 %v2366_v24, 16  ;;  %v2922_v25 = vld [vmem:[#allocation11_spill] sm:$0xff] }
  0x5c   : > { %v401_v31 = vsel %vm2298_vm5, %v396_v10, %v400_v15  ;;  %2023 = vmatpush3.bf16.msra.mxu1 %v1451_v39  ;;  %v406_v6 = vshll.u32 %v2366_v24, 16  ;;  %v1206_v37 = vsel %vm1204_vm6, %v2093_v17, 0  ;;  %v419_v18 = vrot.slane %v417_v4, 4  ;;  %v2095_v24 = vld [vmem:[%s2882_s1 + $0x10] sm:$0xff]   ;;  %v2924_v39 = vld [vmem:[#allocation14_spill] sm:$0xff] }
  0x5d   : > { %v2603_v34 = vcombine.low %v387_v26, %v401_v31  ;;  %2024 = vmatprep.subr.bf16.mxu1 %v2089_v43  ;;  %2005 = vmatpush3.bf16.msra.mxu0 %v1206_v37  ;;  %v431_v0 = vshrl.u32 %v2396_v45, 16  ;;  %v405_v30 = vrot.slane %v403_v14, 4  ;;  %v445_v1 = vshrl.u32 %v2405_v42, 16  ;;  %v2921_v31 = vld [vmem:[#allocation7_spill] sm:$0xff]  ;;  %v2925_v4 = vld [vmem:[#allocation12_spill] sm:$0xff] }
  0x5e   : > { %2006 = vmatprep.subr.bf16.mxu0 %v2094_v40  ;;  %v408_v52 = vrot.slane %v406_v6, 5  ;;  %v448_v48 = vshll.u32 %v2405_v42, 16  ;;  %v412_v42 = vshll.u32 %v2430_v61, 16  ;;  %v426_v3 = vshll.u32 %v2433_v63, 16 }
  0x5f   : > { %919 = vrot.lane.b32.xlu0 %v2594_v41, %s2124_s28  ;;  %921 = vrot.lane.b32.xlu1 %v2603_v34, %s2124_s28  ;;  %v433_v23 = vrot.slane %v431_v0, 4  ;;  %v447_v55 = vrot.slane %v445_v1, 4  ;;  %v440_v63 = vshll.u32 %v2412_v54, 16  ;;  %v454_v60 = vshll.u32 %v2419_v56, 16 }
  0x60   : > { %2025 = vmatpush3.bf16.msra.mxu1 %v2089_v43  ;;  %v450_v57 = vrot.slane %v448_v48, 5  ;;  %v428_v16 = vrot.slane %v426_v3, 5 }
  0x61   : > { %2026 = vmatprep.subr.bf16.mxu1 %v2090_v11  ;;  %2007 = vmatpush3.bf16.msra.mxu0 %v2094_v40  ;;  %v442_v54 = vrot.slane %v440_v63, 5  ;;  %v456_v22 = vrot.slane %v454_v60, 5 }
  0x62   : > { %2008 = vmatprep.subr.bf16.mxu0 %v2095_v24  ;;  %v451_v46 = vor.u32 %v450_v57, %v447_v55 }
  0x63   : > { %939 = vrot.lane.b32.xlu0 %v2247_v44, %s2122_s26  ;;  %941 = vrot.lane.b32.xlu1 %v2275_v7, %s2122_s26  ;;  %v422_v44 = vrot.slane %v420_v21, 5  ;;  %v434_v7 = vshll.u32 %v2396_v45, 16  ;;  %v2926_v21 = vld [vmem:[#allocation13_spill] sm:$0xff] }
  0x64   : > { %2027 = vmatpush3.bf16.msra.mxu1 %v2090_v11  ;;  %v452_v36 = vrot.slane %v451_v46, 4 }
  0x65   : > { %2028 = vmatprep.subr.bf16.mxu1 %v2091_v38  ;;  %v436_v45 = vrot.slane %v434_v7, 5  ;;  %v423_v2 = vor.u32 %v422_v44, %v419_v18  ;;  %2009 = vmatpush3.bf16.msra.mxu0 %v2095_v24 }
  0x66   : > { %v457_v56 = vsel %vm2298_vm5, %v452_v36, %v456_v22 }
  0x67   : > { %967 = vrot.lane.b32.xlu0 %v2268_v62, %s2126_s30  ;;  %969 = vrot.lane.b32.xlu1 %v2190_v5, %s2126_s30  ;;  %v2096_v62 = vld [vmem:[%s2882_s1 + $0x8] sm:$0xff]   ;;  %v409_v5 = vor.u32 %v408_v52, %v405_v30  ;;  %v424_v61 = vrot.slane %v423_v2, 4  ;;  %v437_v9 = vor.u32 %v436_v45, %v433_v23 }
  0x68   : > { %2029 = vmatpush3.bf16.msra.mxu1 %v2091_v38  ;;  %2010 = vmatprep.subr.bf16.mxu0 %v2096_v62 }
  0x69   : > { %2030 = vmatprep.subr.bf16.mxu1 %v2092_v33  ;;  %2011 = vmatpush3.bf16.msra.mxu0 %v2096_v62  ;;  %v429_v10 = vsel %vm2298_vm5, %v424_v61, %v428_v16 }
  0x6a   : > { %2012 = vmatprep.subr.bf16.mxu0 %v2097_v12 }
  0x6b   : > { %987 = vrot.lane.b32.xlu0 %v2336_v28, %s2125_s29  ;;  %989 = vrot.lane.b32.xlu1 %v2319_v8, %s2125_s29  ;;  %v410_v8 = vrot.slane %v409_v5, 4  ;;  %v414_v28 = vrot.slane %v412_v42, 5 }
  0x6c   : > { %2031 = vmatpush3.bf16.msra.mxu1 %v2092_v33 }
  0x6d   : > { %2013 = vmatpush3.bf16.msra.mxu0 %v2097_v12 }
  0x6f   : > { %1007 = vrot.lane.b32.xlu0 %v2306_v58, %s2127_s6  ;;  %1009 = vrot.lane.b32.xlu1 %v2292_v47, %s2127_s6  ;;  %v415_v47 = vsel %vm2298_vm5, %v410_v8, %v414_v28  ;;  %v438_v58 = vrot.slane %v437_v9, 4 }
  0x73   : > { %1035 = vrot.lane.b32.xlu0 %v2339_v53, %s2128_s7  ;;  %1037 = vrot.lane.b32.xlu1 %v2326_v19, %s2128_s7  ;;  %v2676_v53 = vcombine.low %v415_v47, %v429_v10  ;;  %v443_v19 = vsel %vm2298_vm5, %v438_v58, %v442_v54 }
  0x74   : > { %v2685_v15 = vcombine.low %v443_v19, %v457_v56 }
  0x77   : > { %1055 = vrot.lane.b32.xlu0 %v2393_v35, %s2129_s8  ;;  %1057 = vrot.lane.b32.xlu1 %v2381_v29, %s2129_s8  ;;  %v2918_v29 = vld [vmem:[#allocation8_spill] sm:$0xff]  ;;  %v2919_v35 = vld [vmem:[#allocation6_spill] sm:$0xff] }
  0x7b   : > { %1075 = vrot.lane.b32.xlu0 %v2423_v59, %s2130_s15  ;;  %923 = vrot.lane.b32.xlu1 %v2676_v53, %s2124_s28  ;;  %v2920_v59 = vld [vmem:[#allocation9_spill] sm:$0xff] }
  0x7f   : > { %1077 = vrot.lane.b32.xlu0 %v2454_v32, %s2130_s15  ;;  %925 = vrot.lane.b32.xlu1 %v2685_v15, %s2124_s28  ;;  %v2923_v32 = vld [vmem:[#allocation10_spill] sm:$0xff] }
  0x83   : > { %943 = vrot.lane.b32.xlu0 %v2918_v29, %s2122_s26  ;;  %945 = vrot.lane.b32.xlu1 %v2919_v35, %s2122_s26 }
  0x87   : > { %v1292_v51 = vpop.permute.xlu1 %1291  ;;  %971 = vrot.lane.b32.xlu0 %v2920_v59, %s2126_s30  ;;  %973 = vrot.lane.b32.xlu1 %v2921_v31, %s2126_s30 }
  0x88   : > { %v1274_v26 = vpop.permute.xlu0 %1273 }
  0x89   : > { %v1339_v38 = vsel %vm1083_vm7, %v1274_v26, %v2594_v41 }
  0x8b   : > { %991 = vrot.lane.b32.xlu0 %v2922_v25, %s2125_s29  ;;  %993 = vrot.lane.b32.xlu1 %v2923_v32, %s2125_s29 }
  0x8f   : > { %v1282_v43 = vpop.permute.xlu1 %1281  ;;  %v1276_v17 = vpop.permute.xlu0 %1275  ;;  %1011 = vrot.lane.b32.xlu0 %v2924_v39, %s2127_s6  ;;  %1013 = vrot.lane.b32.xlu1 %v2925_v4, %s2127_s6 }
  0x93   : > { %v1290_v40 = vpop.permute.xlu0 %1289  ;;  %1039 = vrot.lane.b32.xlu0 %v2534_v50, %s2128_s7  ;;  %1041 = vrot.lane.b32.xlu1 %v2926_v21, %s2128_s7 }
  0x94   : > { %v1284_v11 = vpop.permute.xlu1 %1283 }
  0x97   : > { %1059 = vrot.lane.b32.xlu0 %v2559_v20, %s2129_s8  ;;  %1061 = vrot.lane.b32.xlu1 %v2551_v13, %s2129_s8  ;;  %v1350_v20 = vsel %vm1096_vm8, %v1339_v38, %v1282_v43  ;;  %v1342_v13 = vsel %vm1083_vm7, %v1276_v17, %v2603_v34 }
  0x98   : > { %v1308_v14 = vpop.permute.xlu1 %1307  ;;  %v1358_v24 = vsel %vm1105_vm9, %v1350_v20, %v1290_v40  ;;  %v2927_v40 = vld [vmem:[#allocation2_spill] sm:$0xff] }
  0x9a   : > { %v1306_v6 = vpop.permute.xlu0 %1305 }
  0x9b   : > { %1079 = vrot.lane.b32.xlu0 %v2582_v49, %s2130_s15  ;;  %1081 = vrot.lane.b32.xlu1 %v2565_v27, %s2130_s15  ;;  %v1352_v49 = vsel %vm1096_vm8, %v1342_v13, %v1284_v11 }
  0x9c   : > { %v1300_v37 = vpop.permute.xlu1 %1299  ;;  %v1360_v52 = vsel %vm1105_vm9, %v1352_v49, %v1292_v51 }
  0x9d   : > { %v1368_v7 = vsel %vm1114_vm10, %v1360_v52, %v1300_v37 }
  0x9e   : > { %v1376_v62 = vsel %vm1123_vm11, %v1368_v7, %v1308_v14 }
  0x9f   : > { %v1298_v18 = vpop.permute.xlu0 %1297 }
  0xa0   : > { %v1316_v0 = vpop.permute.xlu1 %1315  ;;  %v1366_v27 = vsel %vm1114_vm10, %v1358_v24, %v1298_v18  ;;  %v2928_v18 = vld [vmem:[#allocation3_spill] sm:$0xff] }
  0xa1   : > { %v1374_v41 = vsel %vm1123_vm11, %v1366_v27, %v1306_v6  ;;  %v1384_v45 = vsel %vm1132_vm12, %v1376_v62, %v1316_v0 }
  0xa3   : > { %v1314_v50 = vpop.permute.xlu0 %1313 }
  0xa4   : > { %v1382_v34 = vsel %vm1132_vm12, %v1374_v41, %v1314_v50 }
  0xa7   : > { %v1324_v44 = vpop.permute.xlu1 %1323 }
  0xa8   : > { %v1322_v30 = vpop.permute.xlu0 %1321  ;;  %v1392_v42 = vsel %vm1141_vm13, %v1384_v45, %v1324_v44 }
  0xa9   : > { %v1390_v48 = vsel %vm1141_vm13, %v1382_v34, %v1322_v30 }
  0xab   : > { %v1278_v1 = vpop.permute.xlu1 %1277 }
  0xac   : > { %v1330_v23 = vpop.permute.xlu0 %1329  ;;  %v1345_v47 = vsel %vm1083_vm7, %v1278_v1, %v2676_v53 }
  0xad   : > { %v1398_v33 = vsel %vm1150_vm14, %v1390_v48, %v1330_v23 }
  0xae   : > { %2032 = vmatprep.mubr.msk.bf16.mxu1 %vm1195_vm15, %v1398_v33 }
  0xaf   : > { %v1280_v5 = vpop.permute.xlu1 %1279 }
  0xb0   : > { %v1332_v2 = vpop.permute.xlu0 %1331  ;;  %v1348_v60 = vsel %vm1083_vm7, %v1280_v5, %v2685_v15 }
  0xb1   : > { %v1400_v55 = vsel %vm1150_vm14, %v1392_v42, %v1332_v2 }
  0xb2   : > { %2033 = vmatmul.mubr.msk.bf16.vlgmr.msra.gmra.mxu1 %vm1195_vm15, %v1400_v55 }
  0xb3   : > { %v1288_v57 = vpop.permute.xlu1 %1287 }
  0xb4   : > { %v1286_v3 = vpop.permute.xlu0 %1285  ;;  %v1356_v58 = vsel %vm1096_vm8, %v1348_v60, %v1288_v57 }
  0xb5   : > { %v1354_v10 = vsel %vm1096_vm8, %v1345_v47, %v1286_v3 }
  0xb7   : > { %v1296_v12 = vpop.permute.xlu1 %1295 }
  0xb8   : > { %v1294_v8 = vpop.permute.xlu0 %1293  ;;  %v1364_v54 = vsel %vm1105_vm9, %v1356_v58, %v1296_v12 }
  0xb9   : > { %v1362_v22 = vsel %vm1105_vm9, %v1354_v10, %v1294_v8 }
  0xbb   : > { %v1304_v28 = vpop.permute.xlu1 %1303 }
  0xbc   : > { %v1302_v61 = vpop.permute.xlu0 %1301  ;;  %v1372_v19 = vsel %vm1114_vm10, %v1364_v54, %v1304_v28  ;;  %v2929_v28 = vld [vmem:[#allocation4_spill] sm:$0xff] }
  0xbd   : > { %v1370_v29 = vsel %vm1114_vm10, %v1362_v22, %v1302_v61 }
  0xbf   : > { %v1312_v9 = vpop.permute.xlu1 %1311 }
  0xc0   : > { %v1310_v16 = vpop.permute.xlu0 %1309  ;;  %v1380_v35 = vsel %vm1123_vm11, %v1372_v19, %v1312_v9  ;;  %v2930_v9 = vld [vmem:[#allocation5_spill] sm:$0xff] }
  0xc1   : > { %v1378_v15 = vsel %vm1123_vm11, %v1370_v29, %v1310_v16 }
  0xc3   : > { %v1320_v63 = vpop.permute.xlu1 %1319 }
  0xc4   : > { %v1318_v46 = vpop.permute.xlu0 %1317  ;;  %v1388_v53 = vsel %vm1132_vm12, %v1380_v35, %v1320_v63 }
  0xc5   : > { %v1386_v51 = vsel %vm1132_vm12, %v1378_v15, %v1318_v46 }
  0xc7   : > { %v1328_v36 = vpop.permute.xlu1 %1327 }
  0xc8   : > { %v1396_v26 = vsel %vm1141_vm13, %v1388_v53, %v1328_v36 }
  0xc9   : > { %v1326_v56 = vpop.permute.xlu0 %1325 }
  0xca   : > { %v1394_v31 = vsel %vm1141_vm13, %v1386_v51, %v1326_v56 }
  0xcb   : > { %v1336_v59 = vpop.permute.xlu1 %1335 }
  0xcc   : > { %v1404_v25 = vsel %vm1150_vm14, %v1396_v26, %v1336_v59 }
  0xcd   : > { %v1334_v32 = vpop.permute.xlu0 %1333 }
  0xce   : > { %v1402_v43 = vsel %vm1150_vm14, %v1394_v31, %v1334_v32 }
  0xcf   : > { %2036 = vmatprep.mubr.msk.bf16.mxu1 %vm1195_vm15, %v1402_v43 }
  0xd0   : > { %2037 = vmatmul.mubr.msk.bf16.gmra.mxu1 %vm1195_vm15, %v1404_v25 }
  0xd1   : > { %v920_v17 = vpop.permute.xlu0 %919  ;;  %v922_v39 = vpop.permute.xlu1 %921 }
  0xd2   : > { %v1086_v21 = vsel %vm1083_vm7, %v2927_v40, %v920_v17  ;;  %v1089_v0 = vsel %vm1083_vm7, %v2928_v18, %v922_v39 }
  0xd5   : > { %v940_v4 = vpop.permute.xlu0 %939  ;;  %v942_v11 = vpop.permute.xlu1 %941 }
  0xd6   : > { %v1098_v37 = vsel %vm1096_vm8, %v1086_v21, %v940_v4  ;;  %v1100_v13 = vsel %vm1096_vm8, %v1089_v0, %v942_v11 }
  0xd9   : > { %v968_v14 = vpop.permute.xlu0 %967  ;;  %v970_v6 = vpop.permute.xlu1 %969 }
  0xda   : > { %v1107_v20 = vsel %vm1105_vm9, %v1098_v37, %v968_v14  ;;  %v1109_v44 = vsel %vm1105_vm9, %v1100_v13, %v970_v6 }
  0xdd   : > { %v988_v50 = vpop.permute.xlu0 %987  ;;  %v990_v38 = vpop.permute.xlu1 %989 }
  0xde   : > { %v1116_v27 = vsel %vm1114_vm10, %v1107_v20, %v988_v50  ;;  %v1118_v7 = vsel %vm1114_vm10, %v1109_v44, %v990_v38 }
  0xe1   : > { %v1008_v24 = vpop.permute.xlu0 %1007  ;;  %v1010_v49 = vpop.permute.xlu1 %1009 }
  0xe2   : > { %v1125_v30 = vsel %vm1123_vm11, %v1116_v27, %v1008_v24  ;;  %v1127_v1 = vsel %vm1123_vm11, %v1118_v7, %v1010_v49  ;;  %v2807_v24 = vld [vmem:[%s2883_s2] ss:$0 sm:$0xff] }
  0xe3   : > { %v2812_v27 = vld [vmem:[%s2884_s3] ss:$0 sm:$0xff] }
  0xe5   : > { %v1036_v52 = vpop.permute.xlu0 %1035  ;;  %v1038_v41 = vpop.permute.xlu1 %1037 }
  0xe6   : > { %v1134_v34 = vsel %vm1132_vm12, %v1125_v30, %v1036_v52  ;;  %v1136_v62 = vsel %vm1132_vm12, %v1127_v1, %v1038_v41 }
  0xe9   : > { %v1056_v48 = vpop.permute.xlu0 %1055  ;;  %v1058_v23 = vpop.permute.xlu1 %1057 }
  0xea   : > { %v1143_v33 = vsel %vm1141_vm13, %v1134_v34, %v1056_v48  ;;  %v1145_v2 = vsel %vm1141_vm13, %v1136_v62, %v1058_v23 }
  0xed   : > { %v1076_v45 = vpop.permute.xlu0 %1075  ;;  %v924_v5 = vpop.permute.xlu1 %923 }
  0xee   : > { %v1152_v42 = vsel %vm1150_vm14, %v1143_v33, %v1076_v45  ;;  %v1092_v61 = vsel %vm1083_vm7, %v2929_v28, %v924_v5 }
  0xef   : > { %2014 = vmatprep.mubr.msk.bf16.mxu0 %vm1195_vm15, %v1152_v42 }
  0xf1   : > { %v1078_v55 = vpop.permute.xlu0 %1077  ;;  %v926_v57 = vpop.permute.xlu1 %925 }
  0xf2   : > { %v1154_v3 = vsel %vm1150_vm14, %v1145_v2, %v1078_v55  ;;  %v1095_v16 = vsel %vm1083_vm7, %v2930_v9, %v926_v57 }
  0xf3   : > { %2015 = vmatmul.mubr.msk.bf16.vlgmr.msra.gmra.mxu0 %vm1195_vm15, %v1154_v3 }
  0xf5   : > { %v944_v12 = vpop.permute.xlu0 %943  ;;  %v946_v8 = vpop.permute.xlu1 %945 }
  0xf6   : > { %v1102_v60 = vsel %vm1096_vm8, %v1092_v61, %v944_v12  ;;  %v1104_v47 = vsel %vm1096_vm8, %v1095_v16, %v946_v8 }
  0xf9   : > { %v972_v63 = vpop.permute.xlu0 %971  ;;  %v974_v46 = vpop.permute.xlu1 %973 }
  0xfa   : > { %v1111_v54 = vsel %vm1105_vm9, %v1102_v60, %v972_v63  ;;  %v1113_v36 = vsel %vm1105_vm9, %v1104_v47, %v974_v46 }
  0xfd   : > { %v992_v58 = vpop.permute.xlu0 %991  ;;  %v994_v10 = vpop.permute.xlu1 %993 }
  0xfe   : > { %v1120_v56 = vsel %vm1114_vm10, %v1111_v54, %v992_v58  ;;  %v1122_v29 = vsel %vm1114_vm10, %v1113_v36, %v994_v10 }
 0x101   : > { %v1012_v22 = vpop.permute.xlu0 %1011  ;;  %v1014_v19 = vpop.permute.xlu1 %1013 }
 0x102   : > { %v1129_v35 = vsel %vm1123_vm11, %v1120_v56, %v1012_v22  ;;  %v1131_v15 = vsel %vm1123_vm11, %v1122_v29, %v1014_v19 }
 0x105   : > { %v1040_v53 = vpop.permute.xlu0 %1039  ;;  %v1042_v51 = vpop.permute.xlu1 %1041 }
 0x106   : > { %v1138_v26 = vsel %vm1132_vm12, %v1129_v35, %v1040_v53  ;;  %v1140_v59 = vsel %vm1132_vm12, %v1131_v15, %v1042_v51 }
 0x109   : > { %v1060_v31 = vpop.permute.xlu0 %1059  ;;  %v1062_v25 = vpop.permute.xlu1 %1061 }
 0x10a   : > { %v1147_v32 = vsel %vm1141_vm13, %v1138_v26, %v1060_v31  ;;  %v1149_v43 = vsel %vm1141_vm13, %v1140_v59, %v1062_v25 }
 0x10d   : > { %v1080_v17 = vpop.permute.xlu0 %1079  ;;  %v1082_v39 = vpop.permute.xlu1 %1081 }
 0x10e   : > { %v1156_v4 = vsel %vm1150_vm14, %v1147_v32, %v1080_v17  ;;  %v1158_v11 = vsel %vm1150_vm14, %v1149_v43, %v1082_v39 }
 0x10f   : > { %2018 = vmatprep.mubr.msk.bf16.mxu0 %vm1195_vm15, %v1156_v4 }
 0x110   : > { %2019 = vmatmul.mubr.msk.bf16.gmra.mxu0 %vm1195_vm15, %v1158_v11 }
 0x172   : > { %v2034_v40 = vpop.f32.mrf.mxu1 }
 0x174   : > { %v1487_v21 = vpop.f32.mrf.mxu1 }
 0x175   : > { %1526 = vrot.lane.b32.xlu0 %v1487_v21, %s2124_s28 }
 0x176   : > { %v2035_v14 = vpop.f32.mrf.mxu1 }
 0x178   : > { %v1490_v6 = vpop.f32.mrf.mxu1 }
 0x179   : > { %1530 = vrot.lane.b32.xlu0 %v2034_v40, %s2124_s28  ;;  %1528 = vrot.lane.b32.xlu1 %v1490_v6, %s2124_s28 }
 0x17d   : > { %1532 = vrot.lane.b32.xlu1 %v2035_v14, %s2124_s28 }
 0x190   : > { %v2038_v37 = vpop.f32.mrf.mxu1 }
 0x192   : > { %v1503_v18 = vpop.f32.mrf.mxu1 }
 0x193   : > { %1534 = vrot.lane.b32.xlu0 %v1503_v18, %s2124_s28 }
 0x194   : > { %v2039_v0 = vpop.f32.mrf.mxu1 }
 0x196   : > { %v1506_v50 = vpop.f32.mrf.mxu1 }
 0x197   : > { %1538 = vrot.lane.b32.xlu0 %v2038_v37, %s2124_s28  ;;  %1536 = vrot.lane.b32.xlu1 %v1506_v50, %s2124_s28 }
 0x19b   : > { %1540 = vrot.lane.b32.xlu1 %v2039_v0, %s2124_s28  ;;  %s1977_s28 = sshll.u32 %s2936_s18, 5 }
 0x19c   : > { %s2825_s16 = scalar_lea.vmem %s2885_s4, %s1977_s28 }
 0x1b3   : > { %v2016_v38 = vpop.f32.mrf.mxu0 }
 0x1b5   : > { %v1242_v20 = vpop.f32.mrf.mxu0 }
 0x1b7   : > { %v2017_v13 = vpop.f32.mrf.mxu0 }
 0x1b9   : > { %v1245_v52 = vpop.f32.mrf.mxu0 }
 0x1d0   : > { %v2020_v63 = vpop.f32.mrf.mxu0 }
 0x1d2   : > { %v1258_v46 = vpop.f32.mrf.mxu0 }
 0x1d4   : > { %v2021_v47 = vpop.f32.mrf.mxu0 }
 0x1d6   : > { %v1261_v19 = vpop.f32.mrf.mxu0 }
 0x1e7   : > { %v1527_v49 = vpop.permute.xlu0 %1526 }
 0x1e8   : > { %v1550_v44 = vsel %vm1083_vm7, %v1242_v20, %v1527_v49 }
 0x1e9   : > { %v1565_v30 = vmul.f32 %v2807_v24, %v1550_v44 }
 0x1eb   : > { %v1580_v41 = vadd.f32 %v2812_v27, %v1565_v30  ;;  %v1531_v7 = vpop.permute.xlu0 %1530  ;;  %v1529_v34 = vpop.permute.xlu1 %1528 }
 0x1ec   : > { %v1552_v1 = vsel %vm1083_vm7, %v2016_v38, %v1531_v7  ;;  %v1551_v48 = vsel %vm1083_vm7, %v1245_v52, %v1529_v34 }
 0x1ed   : > { %v1588_v23 = vmax.f32 %v1580_v41, 0.0  ;;  %v1567_v33 = vmul.f32 %v2807_v24, %v1552_v1  ;;  %v1566_v62 = vmul.f32 %v2807_v24, %v1551_v48 }
 0x1ef   : > { %v1978_v45 = vpack.c.bf16 %v1588_v23, %v1588_v23  ;;  %v1582_v5 = vadd.f32 %v2812_v27, %v1567_v33  ;;  %v1581_v42 = vadd.f32 %v2812_v27, %v1566_v62  ;;  %v1533_v2 = vpop.permute.xlu1 %1532  ;;  %v1637_v58 = vsel %vm1096_vm8, %v1588_v23, 0.0 }
 0x1f0   : > { %v1553_v55 = vsel %vm1083_vm7, %v2017_v13, %v1533_v2 }
 0x1f1   : > { %1629 = vst.msk [vmem:[%s2825_s16] sm:$0xf] %vm1628_vm0, %v1978_v45  ;;  %v1590_v57 = vmax.f32 %v1582_v5, 0.0  ;;  %v1589_v3 = vmax.f32 %v1581_v42, 0.0  ;;  %v1568_v12 = vmul.f32 %v2807_v24, %v1553_v55 }
 0x1f3   : > { %v1980_v8 = vpack.c.bf16 %v1590_v57, %v1590_v57  ;;  %v1979_v28 = vpack.c.bf16 %v1589_v3, %v1589_v3  ;;  %v1583_v61 = vadd.f32 %v2812_v27, %v1568_v12  ;;  %v1638_v60 = vsel %vm1096_vm8, %v1589_v3, 0.0 }
 0x1f4   : > { %v1639_v54 = vadd.f32 %v1638_v60, %v1637_v58  ;;  %v1640_v56 = vsel %vm1096_vm8, %v1590_v57, 0.0 }
 0x1f5   : > { %1631 = vst.msk [vmem:[%s2825_s16 + $0x8] sm:$0xf] %vm1628_vm0, %v1980_v8  ;;  %1630 = vst.msk [vmem:[%s2825_s16 + $0x4] sm:$0xf] %vm1628_vm0, %v1979_v28  ;;  %v1591_v9 = vmax.f32 %v1583_v61, 0.0 }
 0x1f6   : > { %v1641_v53 = vadd.f32 %v1640_v56, %v1639_v54 }
 0x1f7   : > { %v1981_v16 = vpack.c.bf16 %v1591_v9, %v1591_v9  ;;  %v1642_v59 = vsel %vm1096_vm8, %v1591_v9, 0.0 }
 0x1f8   : > { %v1643_v40 = vadd.f32 %v1642_v59, %v1641_v53 }
 0x1f9   : > { %1632 = vst.msk [vmem:[%s2825_s16 + $0xc] sm:$0xf] %vm1628_vm0, %v1981_v16 }
 0x205   : > { %v1535_v10 = vpop.permute.xlu0 %1534 }
 0x206   : > { %v1554_v36 = vsel %vm1083_vm7, %v1258_v46, %v1535_v10 }
 0x207   : > { %v1569_v22 = vmul.f32 %v2807_v24, %v1554_v36 }
 0x209   : > { %v1584_v29 = vadd.f32 %v2812_v27, %v1569_v22  ;;  %v1539_v35 = vpop.permute.xlu0 %1538  ;;  %v1537_v15 = vpop.permute.xlu1 %1536 }
 0x20a   : > { %v1556_v51 = vsel %vm1083_vm7, %v2020_v63, %v1539_v35  ;;  %v1555_v26 = vsel %vm1083_vm7, %v1261_v19, %v1537_v15 }
 0x20b   : > { %v1592_v31 = vmax.f32 %v1584_v29, 0.0  ;;  %v1571_v25 = vmul.f32 %v2807_v24, %v1556_v51  ;;  %v1570_v32 = vmul.f32 %v2807_v24, %v1555_v26 }
 0x20d   : > { %v1982_v43 = vpack.c.bf16 %v1592_v31, %v1592_v31  ;;  %v1644_v17 = vsel %vm1096_vm8, %v1592_v31, 0.0  ;;  %v1586_v39 = vadd.f32 %v2812_v27, %v1571_v25  ;;  %v1585_v4 = vadd.f32 %v2812_v27, %v1570_v32  ;;  %v1541_v11 = vpop.permute.xlu1 %1540 }
 0x20e   : > { %v1557_v21 = vsel %vm1083_vm7, %v2021_v47, %v1541_v11  ;;  %v1645_v18 = vadd.f32 %v1644_v17, %v1643_v40 }
 0x20f   : > { %1633 = vst.msk [vmem:[%s2825_s16 + $0x10] sm:$0xf] %vm1628_vm0, %v1982_v43  ;;  %v1594_v14 = vmax.f32 %v1586_v39, 0.0  ;;  %v1593_v6 = vmax.f32 %v1585_v4, 0.0  ;;  %v1572_v37 = vmul.f32 %v2807_v24, %v1557_v21 }
 0x211   : > { %v1984_v0 = vpack.c.bf16 %v1594_v14, %v1594_v14  ;;  %v1983_v50 = vpack.c.bf16 %v1593_v6, %v1593_v6  ;;  %v1646_v38 = vsel %vm1096_vm8, %v1593_v6, 0.0  ;;  %v1587_v13 = vadd.f32 %v2812_v27, %v1572_v37 }
 0x212   : > { %v1647_v20 = vadd.f32 %v1646_v38, %v1645_v18  ;;  %v1648_v49 = vsel %vm1096_vm8, %v1594_v14, 0.0 }
 0x213   : > { %1635 = vst.msk [vmem:[%s2825_s16 + $0x18] sm:$0xf] %vm1628_vm0, %v1984_v0  ;;  %1634 = vst.msk [vmem:[%s2825_s16 + $0x14] sm:$0xf] %vm1628_vm0, %v1983_v50  ;;  %v1595_v30 = vmax.f32 %v1587_v13, 0.0 }
 0x214   : > { %v1649_v44 = vadd.f32 %v1648_v49, %v1647_v20 }
 0x215   : > { %v1985_v52 = vpack.c.bf16 %v1595_v30, %v1595_v30  ;;  %v1650_v24 = vsel %vm1096_vm8, %v1595_v30, 0.0 }
 0x216   : > { %v1651_v41 = vadd.f32 %v1650_v24, %v1649_v44 }
 0x217   : > { %1636 = vst.msk [vmem:[%s2825_s16 + $0x1c] sm:$0xf] %vm1628_vm0, %v1985_v52 }
 0x218   : > { %v1652_v7 = vrot.slane %v1651_v41, 4 }
 0x21a   : > { %v1653_v34 = vadd.f32 %v1652_v7, %v1651_v41 }
 0x21c   : > { %v1654_v1 = vrot.slane %v1653_v34, 2 }
 0x21e   : > { %v1655_v48 = vadd.f32 %v1654_v1, %v1653_v34 }
 0x220   : > { %v1656_v27 = vrot.slane %v1655_v48, 1 }
 0x222   : > { %v1657_v23 = vadd.f32 %v1656_v27, %v1655_v48 }
 0x224   : > { %v1658_v33 = vmul.f32 0.015625, %v1657_v23 }
 0x226   : > { %1660 = vst.msk [vmem:[%s325_s23] sm:$0x1] %vm1659_vm1, %v1658_v33 }
 0x227 PF: > { %s16_s20 = sadd.s32 1, %s2120_s20   ;;  %s2931_s18 = smov %s2116_s19 }
 0x228   : > { %p13_p5 = scmp.ge.s32.totalorder %s16_s20, 4   ;;  %s2932_s19 = smov %s2934_s21 }
 0x22a   :  { %15 = sbr.rel (!%p13_p5) target bundleno = 2 (0x2), region = 90 }

</bundles_post_ra>
